<compile_context>
chip_gen: v7x
topology: tpu7x:2x2x1
jax: 0.10.0
libtpu: 0.0.40
codegen_flags: <defaults>
</compile_context>

<pallas_src>
import functools
import math

import jax
import jax.numpy as jnp
from jax.experimental import pallas as pl
from jax.experimental.pallas import tpu as pltpu


# ----------------------------------------------------------------------------
# Small helpers
# ----------------------------------------------------------------------------
def _gelu(x):
    # tanh-approx GELU (f32)
    return 0.5 * x * (1.0 + jnp.tanh(0.7978845608028654 * (x + 0.044715 * x * x * x)))


def _bspec(tail):
    """BlockSpec for a (B, *tail) array, blocked over grid axis 0 (batch squeezed)."""
    zeros = (0,) * len(tail)
    return pl.BlockSpec((None,) + tuple(tail), lambda b: (b,) + zeros)


def _wspec(shape):
    """BlockSpec for a weight: full array every grid step (no re-DMA between steps)."""
    zeros = (0,) * len(shape)
    return pl.BlockSpec(tuple(shape), lambda b: zeros)


_PARALLEL = pltpu.CompilerParams(dimension_semantics=("parallel",))


# ----------------------------------------------------------------------------
# Fused attention block: QKV -> MHA -> out-proj -> residual -> LayerNorm
# ----------------------------------------------------------------------------
def _attn_block_kernel(*args, num_heads, scale, eps, self_attn, use_mask):
    if self_attn:
        if use_mask:
            (x_ref, wqkv_ref, bqkv_ref, wo_ref, bo_ref,
             g_ref, beta_ref, mask_ref, o_ref) = args
        else:
            (x_ref, wqkv_ref, bqkv_ref, wo_ref, bo_ref,
             g_ref, beta_ref, o_ref) = args
            mask_ref = None
        xq = x_ref[...]                                           # (Tq, C) f32
        C = xq.shape[-1]
        qkv = jnp.dot(xq.astype(jnp.bfloat16), wqkv_ref[...],
                      preferred_element_type=jnp.float32) + bqkv_ref[...]
        q, k, v = qkv[:, :C], qkv[:, C:2 * C], qkv[:, 2 * C:]
    else:
        if use_mask:
            (x_ref, xkv_ref, wq_ref, bq_ref, wkv_ref, bkv_ref, wo_ref, bo_ref,
             g_ref, beta_ref, mask_ref, o_ref) = args
        else:
            (x_ref, xkv_ref, wq_ref, bq_ref, wkv_ref, bkv_ref, wo_ref, bo_ref,
             g_ref, beta_ref, o_ref) = args
            mask_ref = None
        xq = x_ref[...]                                           # (Tq, C)
        xkv = xkv_ref[...]                                        # (Tk, C)
        C = xq.shape[-1]
        q = jnp.dot(xq.astype(jnp.bfloat16), wq_ref[...],
                    preferred_element_type=jnp.float32) + bq_ref[...]
        kv = jnp.dot(xkv.astype(jnp.bfloat16), wkv_ref[...],
                     preferred_element_type=jnp.float32) + bkv_ref[...]
        k, v = kv[:, :C], kv[:, C:]

    dh = C // num_heads
    heads = []
    for h in range(num_heads):
        qh = q[:, h * dh:(h + 1) * dh].astype(jnp.bfloat16)
        kh = k[:, h * dh:(h + 1) * dh].astype(jnp.bfloat16)
        vh = v[:, h * dh:(h + 1) * dh].astype(jnp.bfloat16)
        # (Tq, dh) . (Tk, dh)^T -> (Tq, Tk), f32 accumulation on the MXU
        s = jax.lax.dot_general(qh, kh, (((1,), (1,)), ((), ())),
                                preferred_element_type=jnp.float32) * scale
        if use_mask:
            s = s + mask_ref[...]                                 # (1, Tk) bcast, f32
        m = jnp.max(s, axis=-1, keepdims=True)
        p = jnp.exp(s - m)
        p = p * pl.reciprocal(jnp.sum(p, axis=-1, keepdims=True), approx=True)
        heads.append(jnp.dot(p.astype(jnp.bfloat16), vh,
                             preferred_element_type=jnp.float32))  # (Tq, dh)
    attn = jnp.concatenate(heads, axis=-1)                         # (Tq, C)

    y = jnp.dot(attn.astype(jnp.bfloat16), wo_ref[...],
                preferred_element_type=jnp.float32) + bo_ref[...]
    hres = xq + y
    mu = jnp.mean(hres, axis=-1, keepdims=True)
    xc = hres - mu
    var = jnp.mean(xc * xc, axis=-1, keepdims=True)
    o_ref[...] = xc * jax.lax.rsqrt(var + eps) * g_ref[...] + beta_ref[...]


def attn_block(x_q, x_kv, ap, ln, num_heads, mask=None, self_attn=False, eps=1e-5):
    """x_q: (B,Tq,C), x_kv: (B,Tk,C); mask: (B,Tk) additive (0 / -1e9) or None."""
    B, Tq, C = x_q.shape
    Tk = x_kv.shape[1]
    scale = 1.0 / math.sqrt(C // num_heads)
    use_mask = mask is not None

    inputs = [x_q]
    in_specs = [_bspec((Tq, C))]
    if self_attn:
        wqkv, bqkv = ap["wqkv"]
        inputs += [wqkv, bqkv]
        in_specs += [_wspec(wqkv.shape), _wspec(bqkv.shape)]
    else:
        wq, bq = ap["wq"]
        wkv, bkv = ap["wkv"]
        inputs += [x_kv, wq, bq, wkv, bkv]
        in_specs += [_bspec((Tk, C)), _wspec(wq.shape), _wspec(bq.shape),
                     _wspec(wkv.shape), _wspec(bkv.shape)]
    wo, bo = ap["wo"]
    g, beta = ln
    inputs += [wo, bo, g, beta]
    in_specs += [_wspec(wo.shape), _wspec(bo.shape),
                 _wspec(g.shape), _wspec(beta.shape)]
    if use_mask:
        inputs.append(mask.reshape(B, 1, Tk).astype(jnp.float32))
        in_specs.append(_bspec((1, Tk)))

    return pl.pallas_call(
        functools.partial(_attn_block_kernel, num_heads=num_heads, scale=scale,
                          eps=eps, self_attn=self_attn, use_mask=use_mask),
        grid=(B,),
        out_shape=jax.ShapeDtypeStruct((B, Tq, C), jnp.float32),
        in_specs=in_specs,
        out_specs=_bspec((Tq, C)),
        compiler_params=_PARALLEL,
    )(*inputs)


# ----------------------------------------------------------------------------
# Fused conv-FFN block: conv1(+ReLU) -> conv2 -> residual -> LayerNorm
# (im2col realized in-kernel via zero-padded VMEM scratch + static tap slices)
# ----------------------------------------------------------------------------
def _ffn_block_kernel(x_ref, w1_ref, b1_ref, w2_ref, b2_ref, g_ref, beta_ref,
                      o_ref, xpad_ref, f1pad_ref, *, kernel, eps):
    T, C = x_ref.shape
    F = w1_ref.shape[-1]
    pad = kernel // 2
    x = x_ref[...]                                        # (T, C) f32

    xpad_ref[...] = jnp.zeros(xpad_ref.shape, jnp.float32)
    xpad_ref[pad:pad + T, :] = x
    acc1 = jnp.zeros((T, F), jnp.float32)
    for k in range(kernel):
        xk = xpad_ref[k:k + T, :].astype(jnp.bfloat16)
        acc1 = acc1 + jnp.dot(xk, w1_ref[k], preferred_element_type=jnp.float32)
    f1 = jnp.maximum(acc1 + b1_ref[...], 0.0)             # ReLU

    f1pad_ref[...] = jnp.zeros(f1pad_ref.shape, jnp.float32)
    f1pad_ref[pad:pad + T, :] = f1
    acc2 = jnp.zeros((T, C), jnp.float32)
    for k in range(kernel):
        fk = f1pad_ref[k:k + T, :].astype(jnp.bfloat16)
        acc2 = acc2 + jnp.dot(fk, w2_ref[k], preferred_element_type=jnp.float32)

    y = x + acc2 + b2_ref[...]                            # residual
    mu = jnp.mean(y, axis=-1, keepdims=True)
    yc = y - mu
    var = jnp.mean(yc * yc, axis=-1, keepdims=True)
    o_ref[...] = yc * jax.lax.rsqrt(var + eps) * g_ref[...] + beta_ref[...]


def ffn_block(x, ff1, ff2, ln, kernel_size, eps=1e-5):
    B, T, C = x.shape
    w1, b1 = ff1
    w2, b2 = ff2
    g, beta = ln
    F = w1.shape[-1]
    pad = kernel_size // 2
    return pl.pallas_call(
        functools.partial(_ffn_block_kernel, kernel=kernel_size, eps=eps),
        grid=(B,),
        out_shape=jax.ShapeDtypeStruct((B, T, C), jnp.float32),
        in_specs=[_bspec((T, C)), _wspec(w1.shape), _wspec(b1.shape),
                  _wspec(w2.shape), _wspec(b2.shape),
                  _wspec(g.shape), _wspec(beta.shape)],
        out_specs=_bspec((T, C)),
        scratch_shapes=[pltpu.VMEM((T + 2 * pad, C), jnp.float32),
                        pltpu.VMEM((T + 2 * pad, F), jnp.float32)],
        compiler_params=_PARALLEL,
    )(x, w1, b1, w2, b2, g, beta)


# ----------------------------------------------------------------------------
# Fused Positional Convolution Embedding: grouped conv (per-group matmuls)
# + GELU + residual
# ----------------------------------------------------------------------------
def _pce_kernel(x_ref, w_ref, b_ref, o_ref, xpad_ref, *, kernel, groups):
    T, C = x_ref.shape
    pad = kernel // 2
    cg = C // groups
    x = x_ref[...]
    xpad_ref[...] = jnp.zeros(xpad_ref.shape, jnp.float32)
    xpad_ref[pad:pad + T, :] = x
    outs = []
    for g in range(groups):
        acc = jnp.zeros((T, cg), jnp.float32)
        for k in range(kernel):
            xk = xpad_ref[k:k + T, g * cg:(g + 1) * cg].astype(jnp.bfloat16)
            acc = acc + jnp.dot(xk, w_ref[k * groups + g],
                                preferred_element_type=jnp.float32)
        outs.append(acc)
    conv = jnp.concatenate(outs, axis=-1) + b_ref[...]
    o_ref[...] = x + _gelu(conv)


def pce_block(x, pce_p, kernel_size, groups):
    B, T, C = x.shape
    w, b = pce_p
    pad = kernel_size // 2
    return pl.pallas_call(
        functools.partial(_pce_kernel, kernel=kernel_size, groups=groups),
        grid=(B,),
        out_shape=jax.ShapeDtypeStruct((B, T, C), jnp.float32),
        in_specs=[_bspec((T, C)), _wspec(w.shape), _wspec(b.shape)],
        out_specs=_bspec((T, C)),
        scratch_shapes=[pltpu.VMEM((T + 2 * pad, C), jnp.float32)],
        compiler_params=_PARALLEL,
    )(x, w, b)


# ----------------------------------------------------------------------------
# Feature-extractor strided conv: conv(+bias)+GELU, optionally fused final proj.
# Strided access handled with unit-stride parity slabs (no HBM im2col inflation).
# ----------------------------------------------------------------------------
def _fe_conv_kernel(*args, kernel, stride, t_out, fuse_proj):
    if fuse_proj:
        xs_ref, w_ref, b_ref, wp_ref, bp_ref, o_ref = args
    else:
        xs_ref, w_ref, b_ref, o_ref = args
    acc = jnp.zeros((t_out, w_ref.shape[-1]), jnp.float32)
    for k in range(kernel):
        r, off = k % stride, k // stride
        xk = xs_ref[r, off:off + t_out, :].astype(jnp.bfloat16)
        acc = acc + jnp.dot(xk, w_ref[k], preferred_element_type=jnp.float32)
    h = _gelu(acc + b_ref[...])
    if fuse_proj:
        h = jnp.dot(h.astype(jnp.bfloat16), wp_ref[...],
                    preferred_element_type=jnp.float32) + bp_ref[...]
    o_ref[...] = h


def fe_conv(x, conv_p, kernel, stride, proj_p=None):
    """x: (B, T, Cin); strided conv, no padding (matches Conv1d(k, stride))."""
    B, T, Cin = x.shape
    w, b = conv_p
    t_out = (T - kernel) // stride + 1
    L = -(-T // stride)
    slabs = []
    for r in range(stride):
        sl = x[:, r::stride, :]
        if sl.shape[1] < L:
            sl = jnp.pad(sl, ((0, 0), (0, L - sl.shape[1]), (0, 0)))
        slabs.append(sl)
    xs = jnp.stack(slabs, axis=1)                       # (B, stride, L, Cin)

    fuse_proj = proj_p is not None
    inputs = [xs, w, b]
    in_specs = [_bspec((stride, L, Cin)), _wspec(w.shape), _wspec(b.shape)]
    out_dim = w.shape[-1]
    if fuse_proj:
        wp, bp = proj_p
        inputs += [wp, bp]
        in_specs += [_wspec(wp.shape), _wspec(bp.shape)]
        out_dim = wp.shape[-1]

    return pl.pallas_call(
        functools.partial(_fe_conv_kernel, kernel=kernel, stride=stride,
                          t_out=t_out, fuse_proj=fuse_proj),
        grid=(B,),
        out_shape=jax.ShapeDtypeStruct((B, t_out, out_dim), jnp.float32),
        in_specs=in_specs,
        out_specs=_bspec((t_out, out_dim)),
        compiler_params=_PARALLEL,
    )(*inputs)


# ----------------------------------------------------------------------------
# Fused head: GELU -> LayerNorm -> classifier Linear
# ----------------------------------------------------------------------------
def _head_kernel(x_ref, g_ref, beta_ref, wc_ref, bc_ref, o_ref, *, eps):
    x = _gelu(x_ref[...])
    mu = jnp.mean(x, axis=-1, keepdims=True)
    xc = x - mu
    var = jnp.mean(xc * xc, axis=-1, keepdims=True)
    h = xc * jax.lax.rsqrt(var + eps) * g_ref[...] + beta_ref[...]
    o_ref[...] = jnp.dot(h.astype(jnp.bfloat16), wc_ref[...],
                         preferred_element_type=jnp.float32) + bc_ref[...]


def head_block(x, ln, cls_p, eps=1e-5):
    B, T, C = x.shape
    g, beta = ln
    wc, bc = cls_p
    return pl.pallas_call(
        functools.partial(_head_kernel, eps=eps),
        grid=(B,),
        out_shape=jax.ShapeDtypeStruct((B, T, wc.shape[-1]), jnp.float32),
        in_specs=[_bspec((T, C)), _wspec(g.shape), _wspec(beta.shape),
                  _wspec(wc.shape), _wspec(bc.shape)],
        out_specs=_bspec((T, wc.shape[-1])),
        compiler_params=_PARALLEL,
    )(x, g, beta, wc, bc)


# ----------------------------------------------------------------------------
# Model assembly
# ----------------------------------------------------------------------------
def feature_extractor(x, lengths, p, fe_kernel, fe_stride):
    n = len(p["convs"])
    for i, conv_p in enumerate(p["convs"]):
        proj = p["proj"] if i == n - 1 else None        # fuse final Linear proj
        x = fe_conv(x, conv_p, fe_kernel, fe_stride, proj_p=proj)
        lengths = (lengths - fe_kernel) // fe_stride + 1
    return x, lengths


def encoder(x, lengths, p, num_heads, ksize, pce_kernel, pce_groups):
    B, T, C = x.shape
    x = pce_block(x, p["pce"], pce_kernel, pce_groups)
    mask = jnp.where(jnp.arange(T)[None, :] < lengths[:, None],
                     0.0, -1e9).astype(jnp.float32)     # (B, T) key padding mask
    for lp in p["layers"]:
        x = attn_block(x, x, lp["attn"], lp["ln1"], num_heads,
                       mask=mask, self_attn=True)
        x = ffn_block(x, lp["ff1"], lp["ff2"], lp["ln2"], ksize)
    return x


def decoder(enc_out, dec_input, p, num_heads, ksize):
    # forward() calls decoder(enc_out, dec_input) with no lengths -> no masks,
    # so no mask tensor is built or DMA'd at all.
    x = dec_input
    for lp in p["layers"]:
        x = attn_block(x, x, lp["self_attn"], lp["ln1"], num_heads, self_attn=True)
        x = attn_block(x, enc_out, lp["cross_attn"], lp["ln2"], num_heads,
                       self_attn=False)
        x = ffn_block(x, lp["ff1"], lp["ff2"], lp["ln3"], ksize)
    return x


def downsample(enc_out, input_lengths, ds_rate):
    # nearest-exact interpolation along time to round(T * ds_rate) (JAX glue).
    B, T, C = enc_out.shape
    max_label_length = int(round(T * ds_rate))
    src = jnp.floor((jnp.arange(max_label_length) + 0.5) *
                    (T / max_label_length)).astype(jnp.int32)
    src = jnp.clip(src, 0, T - 1)
    y = enc_out[:, src, :]
    outputs_lens = jnp.ceil(input_lengths.astype(jnp.float32) * ds_rate).astype(jnp.int32)
    return y, outputs_lens


def my_e2e_forward(params, cfg, input_sequence, input_lengths, tau):
    # tau is only consumed by Quantize, which the reference forward never calls.
    del tau
    x, lens2 = feature_extractor(input_sequence, input_lengths, params["fe"],
                                 cfg["fe_kernel"], cfg["fe_stride"])
    enc_out = encoder(x, lens2, params["enc"], cfg["enc_heads"],
                      cfg["enc_kernel"], cfg["pce_kernel"], cfg["pce_groups"])
    dec_input, outputs_lens = downsample(enc_out, lens2, cfg["ds_rate"])
    dec_out = decoder(enc_out, dec_input, params["dec"], cfg["dec_heads"],
                      cfg["dec_kernel"])
    outputs = head_block(dec_out, params["final_ln"], params["classifier"])
    return outputs, outputs_lens


# ----------------------------------------------------------------------------
# Deterministic parameter init (synthetic; no checkpoint)
#   weights -> bf16 (MXU operands), biases / LN params -> f32 (1, N)
# ----------------------------------------------------------------------------
def _uniform(key, shape, fan_in, dtype):
    lim = 1.0 / math.sqrt(fan_in)
    return jax.random.uniform(key, shape, jnp.float32, -lim, lim).astype(dtype)


def _init_linear(key, fan_in, fan_out):
    kw, kb = jax.random.split(key)
    w = _uniform(kw, (fan_in, fan_out), fan_in, jnp.bfloat16)
    b = _uniform(kb, (1, fan_out), fan_in, jnp.float32)
    return w, b


def _init_conv(key, kernel, cin, cout):
    kw, kb = jax.random.split(key)
    w = _uniform(kw, (kernel, cin, cout), kernel * cin, jnp.bfloat16)
    b = _uniform(kb, (1, cout), kernel * cin, jnp.float32)
    return w, b


def _init_ln(C):
    return jnp.ones((1, C), jnp.float32), jnp.zeros((1, C), jnp.float32)


def _init_attn_self(key, C):
    k1, k2, k3, k4 = jax.random.split(key, 4)
    wq, bq = _init_linear(k1, C, C)
    wk, bk = _init_linear(k2, C, C)
    wv, bv = _init_linear(k3, C, C)
    return {"wqkv": (jnp.concatenate([wq, wk, wv], axis=1),
                     jnp.concatenate([bq, bk, bv], axis=1)),
            "wo": _init_linear(k4, C, C)}


def _init_attn_cross(key, C):
    k1, k2, k3, k4 = jax.random.split(key, 4)
    wq, bq = _init_linear(k1, C, C)
    wk, bk = _init_linear(k2, C, C)
    wv, bv = _init_linear(k3, C, C)
    return {"wq": (wq, bq),
            "wkv": (jnp.concatenate([wk, wv], axis=1),
                    jnp.concatenate([bk, bv], axis=1)),
            "wo": _init_linear(k4, C, C)}


def _init_grouped_conv(key, C, groups, kernel):
    cg = C // groups
    kw, kb = jax.random.split(key)
    # per-(tap, group) weight, indexed as w[k * groups + g] -> (cg, cg)
    w = _uniform(kw, (kernel * groups, cg, cg), kernel * cg, jnp.bfloat16)
    b = _uniform(kb, (1, C), kernel * cg, jnp.float32)
    return w, b


def _init_enc_layer(key, C, filt, ksize):
    k1, k2, k3 = jax.random.split(key, 3)
    return {"attn": _init_attn_self(k1, C), "ln1": _init_ln(C),
            "ff1": _init_conv(k2, ksize, C, filt),
            "ff2": _init_conv(k3, ksize, filt, C),
            "ln2": _init_ln(C)}


def _init_dec_layer(key, C, filt, ksize):
    k1, k2, k3, k4 = jax.random.split(key, 4)
    return {"self_attn": _init_attn_self(k1, C), "ln1": _init_ln(C),
            "cross_attn": _init_attn_cross(k2, C), "ln2": _init_ln(C),
            "ff1": _init_conv(k3, ksize, C, filt),
            "ff2": _init_conv(k4, ksize, filt, C),
            "ln3": _init_ln(C)}


def init_params(key, cfg):
    D, C = cfg["dim_in"], cfg["hidden"]
    keys = iter(jax.random.split(key, 256))

    fe_convs, cin = [], D
    for _ in range(cfg["fe_layers"]):
        fe_convs.append(_init_conv(next(keys), cfg["fe_kernel"], cin,
                                   cfg["fe_channel"]))
        cin = cfg["fe_channel"]
    fe = {"convs": fe_convs, "proj": _init_linear(next(keys), cfg["fe_channel"], C)}

    enc = {"pce": _init_grouped_conv(next(keys), C, cfg["pce_groups"],
                                     cfg["pce_kernel"]),
           "layers": [_init_enc_layer(next(keys), C, cfg["enc_filter"],
                                      cfg["enc_kernel"])
                      for _ in range(cfg["enc_layers"])]}
    dec = {"layers": [_init_dec_layer(next(keys), C, cfg["dec_filter"],
                                      cfg["dec_kernel"])
                      for _ in range(cfg["dec_layers"])]}
    return {"fe": fe, "enc": enc, "dec": dec,
            "final_ln": _init_ln(C),
            "classifier": _init_linear(next(keys), C, C)}


# ----------------------------------------------------------------------------
if __name__ == "__main__":
    cfg = dict(
        dim_in=8,          # D (input feature dim)
        hidden=32,         # enc_att_hidden_dim == dec_att_hidden_dim == fe_out_dim
        fe_layers=2, fe_channel=16, fe_kernel=3, fe_stride=2,
        pce_kernel=5, pce_groups=4,
        enc_layers=2, enc_heads=4, enc_kernel=3, enc_filter=64,
        dec_layers=2, dec_heads=4, dec_kernel=3, dec_filter=64,
        ds_rate=0.4,
    )

    key = jax.random.PRNGKey(0)
    k_in, k_par = jax.random.split(key)

    B, Tin, D = 2, 64, cfg["dim_in"]
    input_sequence = jax.random.normal(k_in, (B, Tin, D), jnp.float32)  # [B, Tin, D]
    input_lengths = jnp.array([64, 48], jnp.int32)                      # [B]
    tau = 2.0  # unused: Quantize is never invoked in the reference forward

    params = init_params(k_par, cfg)

    fwd = jax.jit(lambda p, x, l: my_e2e_forward(p, cfg, x, l, tau))
    outputs, outputs_lens = fwd(params, input_sequence, input_lengths)
    jax.block_until_ready(outputs)
    jax.block_until_ready(outputs_lens)

    assert outputs.ndim == 3 and outputs.shape[0] == B
    assert outputs.shape[2] == cfg["hidden"]
    assert outputs_lens.shape == (B,)
    print("KERNEL_OK")
</pallas_src>

<mosaic_0001>
module attributes {stable_mosaic.version = 11 : i64} {
  func.func @_pce_kernel(%arg0: i32, %arg1: memref<1x15x32xf32, #tpu.memory_space<vmem>>, %arg2: memref<20x8x8xbf16, #tpu.memory_space<vmem>>, %arg3: memref<1x32xf32, #tpu.memory_space<vmem>>, %arg4: memref<1x15x32xf32, #tpu.memory_space<vmem>>, %arg5: memref<19x32xf32, #tpu.memory_space<vmem>>) attributes {dimension_semantics = [#tpu.dimension_semantics<parallel>], iteration_bounds = array<i64: 2>, scalar_prefetch = 0 : i64, scratch_operands = 1 : i64, tpu.core_type = #tpu.core_type<tc>, window_params = [{transform_indices = @transform_0, window_bounds = array<i64: 1, 15, 32>}, {pipeline_mode = #tpu.pipeline_mode<synchronous>, transform_indices = @transform_1, window_bounds = array<i64: 20, 8, 8>}, {pipeline_mode = #tpu.pipeline_mode<synchronous>, transform_indices = @transform_2, window_bounds = array<i64: 1, 32>}, {transform_indices = @transform_3, window_bounds = array<i64: 1, 15, 32>}]} {
    %c0 = arith.constant 0 : index
    %c0_0 = arith.constant 0 : index
    %c0_1 = arith.constant 0 : index
    %0 = vector.load %arg1[%c0, %c0_0, %c0_1] : memref<1x15x32xf32, #tpu.memory_space<vmem>>, vector<1x15x32xf32>
    %1 = vector.shape_cast %0 : vector<1x15x32xf32> to vector<15x32xf32>
    %cst = arith.constant 0.000000e+00 : f32
    %2 = vector.broadcast %cst : f32 to vector<19x32xf32>
    %c0_2 = arith.constant 0 : index
    %c0_3 = arith.constant 0 : index
    %3 = vector.load %arg5[%c0_2, %c0_3] : memref<19x32xf32, #tpu.memory_space<vmem>>, vector<19x32xf32>
    tpu.vector_store %arg5[%c0_2, %c0_3], %2 {strides = array<i32>} : memref<19x32xf32, #tpu.memory_space<vmem>>, vector<19x32xf32>,
    %c2 = arith.constant 2 : index
    %c0_4 = arith.constant 0 : index
    %4 = vector.load %arg5[%c2, %c0_4] : memref<19x32xf32, #tpu.memory_space<vmem>>, vector<15x32xf32>
    tpu.vector_store %arg5[%c2, %c0_4], %1 {strides = array<i32>} : memref<19x32xf32, #tpu.memory_space<vmem>>, vector<15x32xf32>,
    %cst_5 = arith.constant 0.000000e+00 : f32
    %5 = vector.broadcast %cst_5 : f32 to vector<15x8xf32>
    %c0_6 = arith.constant 0 : index
    %c0_7 = arith.constant 0 : index
    %6 = vector.load %arg5[%c0_6, %c0_7] : memref<19x32xf32, #tpu.memory_space<vmem>>, vector<15x8xf32>
    %7 = arith.truncf %6 : vector<15x8xf32> to vector<15x8xbf16>
    %c0_8 = arith.constant 0 : index
    %c0_9 = arith.constant 0 : index
    %c0_10 = arith.constant 0 : index
    %8 = vector.load %arg2[%c0_8, %c0_9, %c0_10] : memref<20x8x8xbf16, #tpu.memory_space<vmem>>, vector<1x8x8xbf16>
    %9 = vector.shape_cast %8 : vector<1x8x8xbf16> to vector<8x8xbf16>
    %cst_11 = arith.constant dense<0.000000e+00> : vector<15x8xf32>
    %10 = tpu.matmul %7, %9, %cst_11 {dimension_numbers = #tpu.dot_dimension_numbers<[1], [0], [0], [1], [0, 0, 1, 1], [], []>} : vector<15x8xbf16>, vector<8x8xbf16>, vector<15x8xf32> -> vector<15x8xf32>
    %11 = arith.addf %5, %10 : vector<15x8xf32>
    %c1 = arith.constant 1 : index
    %c0_12 = arith.constant 0 : index
    %12 = vector.load %arg5[%c1, %c0_12] : memref<19x32xf32, #tpu.memory_space<vmem>>, vector<15x8xf32>
    %13 = arith.truncf %12 : vector<15x8xf32> to vector<15x8xbf16>
    %c4 = arith.constant 4 : index
    %c0_13 = arith.constant 0 : index
    %c0_14 = arith.constant 0 : index
    %14 = vector.load %arg2[%c4, %c0_13, %c0_14] : memref<20x8x8xbf16, #tpu.memory_space<vmem>>, vector<1x8x8xbf16>
    %15 = vector.shape_cast %14 : vector<1x8x8xbf16> to vector<8x8xbf16>
    %cst_15 = arith.constant dense<0.000000e+00> : vector<15x8xf32>
    %16 = tpu.matmul %13, %15, %cst_15 {dimension_numbers = #tpu.dot_dimension_numbers<[1], [0], [0], [1], [0, 0, 1, 1], [], []>} : vector<15x8xbf16>, vector<8x8xbf16>, vector<15x8xf32> -> vector<15x8xf32>
    %17 = arith.addf %11, %16 : vector<15x8xf32>
    %c2_16 = arith.constant 2 : index
    %c0_17 = arith.constant 0 : index
    %18 = vector.load %arg5[%c2_16, %c0_17] : memref<19x32xf32, #tpu.memory_space<vmem>>, vector<15x8xf32>
    %19 = arith.truncf %18 : vector<15x8xf32> to vector<15x8xbf16>
    %c8 = arith.constant 8 : index
    %c0_18 = arith.constant 0 : index
    %c0_19 = arith.constant 0 : index
    %20 = vector.load %arg2[%c8, %c0_18, %c0_19] : memref<20x8x8xbf16, #tpu.memory_space<vmem>>, vector<1x8x8xbf16>
    %21 = vector.shape_cast %20 : vector<1x8x8xbf16> to vector<8x8xbf16>
    %cst_20 = arith.constant dense<0.000000e+00> : vector<15x8xf32>
    %22 = tpu.matmul %19, %21, %cst_20 {dimension_numbers = #tpu.dot_dimension_numbers<[1], [0], [0], [1], [0, 0, 1, 1], [], []>} : vector<15x8xbf16>, vector<8x8xbf16>, vector<15x8xf32> -> vector<15x8xf32>
    %23 = arith.addf %17, %22 : vector<15x8xf32>
    %c3 = arith.constant 3 : index
    %c0_21 = arith.constant 0 : index
    %24 = vector.load %arg5[%c3, %c0_21] : memref<19x32xf32, #tpu.memory_space<vmem>>, vector<15x8xf32>
    %25 = arith.truncf %24 : vector<15x8xf32> to vector<15x8xbf16>
    %c12 = arith.constant 12 : index
    %c0_22 = arith.constant 0 : index
    %c0_23 = arith.constant 0 : index
    %26 = vector.load %arg2[%c12, %c0_22, %c0_23] : memref<20x8x8xbf16, #tpu.memory_space<vmem>>, vector<1x8x8xbf16>
    %27 = vector.shape_cast %26 : vector<1x8x8xbf16> to vector<8x8xbf16>
    %cst_24 = arith.constant dense<0.000000e+00> : vector<15x8xf32>
    %28 = tpu.matmul %25, %27, %cst_24 {dimension_numbers = #tpu.dot_dimension_numbers<[1], [0], [0], [1], [0, 0, 1, 1], [], []>} : vector<15x8xbf16>, vector<8x8xbf16>, vector<15x8xf32> -> vector<15x8xf32>
    %29 = arith.addf %23, %28 : vector<15x8xf32>
    %c4_25 = arith.constant 4 : index
    %c0_26 = arith.constant 0 : index
    %30 = vector.load %arg5[%c4_25, %c0_26] : memref<19x32xf32, #tpu.memory_space<vmem>>, vector<15x8xf32>
    %31 = arith.truncf %30 : vector<15x8xf32> to vector<15x8xbf16>
    %c16 = arith.constant 16 : index
    %c0_27 = arith.constant 0 : index
    %c0_28 = arith.constant 0 : index
    %32 = vector.load %arg2[%c16, %c0_27, %c0_28] : memref<20x8x8xbf16, #tpu.memory_space<vmem>>, vector<1x8x8xbf16>
    %33 = vector.shape_cast %32 : vector<1x8x8xbf16> to vector<8x8xbf16>
    %cst_29 = arith.constant dense<0.000000e+00> : vector<15x8xf32>
    %34 = tpu.matmul %31, %33, %cst_29 {dimension_numbers = #tpu.dot_dimension_numbers<[1], [0], [0], [1], [0, 0, 1, 1], [], []>} : vector<15x8xbf16>, vector<8x8xbf16>, vector<15x8xf32> -> vector<15x8xf32>
    %35 = arith.addf %29, %34 : vector<15x8xf32>
    %cst_30 = arith.constant 0.000000e+00 : f32
    %36 = vector.broadcast %cst_30 : f32 to vector<15x8xf32>
    %c0_31 = arith.constant 0 : index
    %c8_32 = arith.constant 8 : index
    %37 = vector.load %arg5[%c0_31, %c8_32] : memref<19x32xf32, #tpu.memory_space<vmem>>, vector<15x8xf32>
    %38 = arith.truncf %37 : vector<15x8xf32> to vector<15x8xbf16>
    %c1_33 = arith.constant 1 : index
    %c0_34 = arith.constant 0 : index
    %c0_35 = arith.constant 0 : index
    %39 = vector.load %arg2[%c1_33, %c0_34, %c0_35] : memref<20x8x8xbf16, #tpu.memory_space<vmem>>, vector<1x8x8xbf16>
    %40 = vector.shape_cast %39 : vector<1x8x8xbf16> to vector<8x8xbf16>
    %cst_36 = arith.constant dense<0.000000e+00> : vector<15x8xf32>
    %41 = tpu.matmul %38, %40, %cst_36 {dimension_numbers = #tpu.dot_dimension_numbers<[1], [0], [0], [1], [0, 0, 1, 1], [], []>} : vector<15x8xbf16>, vector<8x8xbf16>, vector<15x8xf32> -> vector<15x8xf32>
    %42 = arith.addf %36, %41 : vector<15x8xf32>
    %c1_37 = arith.constant 1 : index
    %c8_38 = arith.constant 8 : index
    %43 = vector.load %arg5[%c1_37, %c8_38] : memref<19x32xf32, #tpu.memory_space<vmem>>, vector<15x8xf32>
    %44 = arith.truncf %43 : vector<15x8xf32> to vector<15x8xbf16>
    %c5 = arith.constant 5 : index
    %c0_39 = arith.constant 0 : index
    %c0_40 = arith.constant 0 : index
    %45 = vector.load %arg2[%c5, %c0_39, %c0_40] : memref<20x8x8xbf16, #tpu.memory_space<vmem>>, vector<1x8x8xbf16>
    %46 = vector.shape_cast %45 : vector<1x8x8xbf16> to vector<8x8xbf16>
    %cst_41 = arith.constant dense<0.000000e+00> : vector<15x8xf32>
    %47 = tpu.matmul %44, %46, %cst_41 {dimension_numbers = #tpu.dot_dimension_numbers<[1], [0], [0], [1], [0, 0, 1, 1], [], []>} : vector<15x8xbf16>, vector<8x8xbf16>, vector<15x8xf32> -> vector<15x8xf32>
    %48 = arith.addf %42, %47 : vector<15x8xf32>
    %c2_42 = arith.constant 2 : index
    %c8_43 = arith.constant 8 : index
    %49 = vector.load %arg5[%c2_42, %c8_43] : memref<19x32xf32, #tpu.memory_space<vmem>>, vector<15x8xf32>
    %50 = arith.truncf %49 : vector<15x8xf32> to vector<15x8xbf16>
    %c9 = arith.constant 9 : index
    %c0_44 = arith.constant 0 : index
    %c0_45 = arith.constant 0 : index
    %51 = vector.load %arg2[%c9, %c0_44, %c0_45] : memref<20x8x8xbf16, #tpu.memory_space<vmem>>, vector<1x8x8xbf16>
    %52 = vector.shape_cast %51 : vector<1x8x8xbf16> to vector<8x8xbf16>
    %cst_46 = arith.constant dense<0.000000e+00> : vector<15x8xf32>
    %53 = tpu.matmul %50, %52, %cst_46 {dimension_numbers = #tpu.dot_dimension_numbers<[1], [0], [0], [1], [0, 0, 1, 1], [], []>} : vector<15x8xbf16>, vector<8x8xbf16>, vector<15x8xf32> -> vector<15x8xf32>
    %54 = arith.addf %48, %53 : vector<15x8xf32>
    %c3_47 = arith.constant 3 : index
    %c8_48 = arith.constant 8 : index
    %55 = vector.load %arg5[%c3_47, %c8_48] : memref<19x32xf32, #tpu.memory_space<vmem>>, vector<15x8xf32>
    %56 = arith.truncf %55 : vector<15x8xf32> to vector<15x8xbf16>
    %c13 = arith.constant 13 : index
    %c0_49 = arith.constant 0 : index
    %c0_50 = arith.constant 0 : index
    %57 = vector.load %arg2[%c13, %c0_49, %c0_50] : memref<20x8x8xbf16, #tpu.memory_space<vmem>>, vector<1x8x8xbf16>
    %58 = vector.shape_cast %57 : vector<1x8x8xbf16> to vector<8x8xbf16>
    %cst_51 = arith.constant dense<0.000000e+00> : vector<15x8xf32>
    %59 = tpu.matmul %56, %58, %cst_51 {dimension_numbers = #tpu.dot_dimension_numbers<[1], [0], [0], [1], [0, 0, 1, 1], [], []>} : vector<15x8xbf16>, vector<8x8xbf16>, vector<15x8xf32> -> vector<15x8xf32>
    %60 = arith.addf %54, %59 : vector<15x8xf32>
    %c4_52 = arith.constant 4 : index
    %c8_53 = arith.constant 8 : index
    %61 = vector.load %arg5[%c4_52, %c8_53] : memref<19x32xf32, #tpu.memory_space<vmem>>, vector<15x8xf32>
    %62 = arith.truncf %61 : vector<15x8xf32> to vector<15x8xbf16>
    %c17 = arith.constant 17 : index
    %c0_54 = arith.constant 0 : index
    %c0_55 = arith.constant 0 : index
    %63 = vector.load %arg2[%c17, %c0_54, %c0_55] : memref<20x8x8xbf16, #tpu.memory_space<vmem>>, vector<1x8x8xbf16>
    %64 = vector.shape_cast %63 : vector<1x8x8xbf16> to vector<8x8xbf16>
    %cst_56 = arith.constant dense<0.000000e+00> : vector<15x8xf32>
    %65 = tpu.matmul %62, %64, %cst_56 {dimension_numbers = #tpu.dot_dimension_numbers<[1], [0], [0], [1], [0, 0, 1, 1], [], []>} : vector<15x8xbf16>, vector<8x8xbf16>, vector<15x8xf32> -> vector<15x8xf32>
    %66 = arith.addf %60, %65 : vector<15x8xf32>
    %cst_57 = arith.constant 0.000000e+00 : f32
    %67 = vector.broadcast %cst_57 : f32 to vector<15x8xf32>
    %c0_58 = arith.constant 0 : index
    %c16_59 = arith.constant 16 : index
    %68 = vector.load %arg5[%c0_58, %c16_59] : memref<19x32xf32, #tpu.memory_space<vmem>>, vector<15x8xf32>
    %69 = arith.truncf %68 : vector<15x8xf32> to vector<15x8xbf16>
    %c2_60 = arith.constant 2 : index
    %c0_61 = arith.constant 0 : index
    %c0_62 = arith.constant 0 : index
    %70 = vector.load %arg2[%c2_60, %c0_61, %c0_62] : memref<20x8x8xbf16, #tpu.memory_space<vmem>>, vector<1x8x8xbf16>
    %71 = vector.shape_cast %70 : vector<1x8x8xbf16> to vector<8x8xbf16>
    %cst_63 = arith.constant dense<0.000000e+00> : vector<15x8xf32>
    %72 = tpu.matmul %69, %71, %cst_63 {dimension_numbers = #tpu.dot_dimension_numbers<[1], [0], [0], [1], [0, 0, 1, 1], [], []>} : vector<15x8xbf16>, vector<8x8xbf16>, vector<15x8xf32> -> vector<15x8xf32>
    %73 = arith.addf %67, %72 : vector<15x8xf32>
    %c1_64 = arith.constant 1 : index
    %c16_65 = arith.constant 16 : index
    %74 = vector.load %arg5[%c1_64, %c16_65] : memref<19x32xf32, #tpu.memory_space<vmem>>, vector<15x8xf32>
    %75 = arith.truncf %74 : vector<15x8xf32> to vector<15x8xbf16>
    %c6 = arith.constant 6 : index
    %c0_66 = arith.constant 0 : index
    %c0_67 = arith.constant 0 : index
    %76 = vector.load %arg2[%c6, %c0_66, %c0_67] : memref<20x8x8xbf16, #tpu.memory_space<vmem>>, vector<1x8x8xbf16>
    %77 = vector.shape_cast %76 : vector<1x8x8xbf16> to vector<8x8xbf16>
    %cst_68 = arith.constant dense<0.000000e+00> : vector<15x8xf32>
    %78 = tpu.matmul %75, %77, %cst_68 {dimension_numbers = #tpu.dot_dimension_numbers<[1], [0], [0], [1], [0, 0, 1, 1], [], []>} : vector<15x8xbf16>, vector<8x8xbf16>, vector<15x8xf32> -> vector<15x8xf32>
    %79 = arith.addf %73, %78 : vector<15x8xf32>
    %c2_69 = arith.constant 2 : index
    %c16_70 = arith.constant 16 : index
    %80 = vector.load %arg5[%c2_69, %c16_70] : memref<19x32xf32, #tpu.memory_space<vmem>>, vector<15x8xf32>
    %81 = arith.truncf %80 : vector<15x8xf32> to vector<15x8xbf16>
    %c10 = arith.constant 10 : index
    %c0_71 = arith.constant 0 : index
    %c0_72 = arith.constant 0 : index
    %82 = vector.load %arg2[%c10, %c0_71, %c0_72] : memref<20x8x8xbf16, #tpu.memory_space<vmem>>, vector<1x8x8xbf16>
    %83 = vector.shape_cast %82 : vector<1x8x8xbf16> to vector<8x8xbf16>
    %cst_73 = arith.constant dense<0.000000e+00> : vector<15x8xf32>
    %84 = tpu.matmul %81, %83, %cst_73 {dimension_numbers = #tpu.dot_dimension_numbers<[1], [0], [0], [1], [0, 0, 1, 1], [], []>} : vector<15x8xbf16>, vector<8x8xbf16>, vector<15x8xf32> -> vector<15x8xf32>
    %85 = arith.addf %79, %84 : vector<15x8xf32>
    %c3_74 = arith.constant 3 : index
    %c16_75 = arith.constant 16 : index
    %86 = vector.load %arg5[%c3_74, %c16_75] : memref<19x32xf32, #tpu.memory_space<vmem>>, vector<15x8xf32>
    %87 = arith.truncf %86 : vector<15x8xf32> to vector<15x8xbf16>
    %c14 = arith.constant 14 : index
    %c0_76 = arith.constant 0 : index
    %c0_77 = arith.constant 0 : index
    %88 = vector.load %arg2[%c14, %c0_76, %c0_77] : memref<20x8x8xbf16, #tpu.memory_space<vmem>>, vector<1x8x8xbf16>
    %89 = vector.shape_cast %88 : vector<1x8x8xbf16> to vector<8x8xbf16>
    %cst_78 = arith.constant dense<0.000000e+00> : vector<15x8xf32>
    %90 = tpu.matmul %87, %89, %cst_78 {dimension_numbers = #tpu.dot_dimension_numbers<[1], [0], [0], [1], [0, 0, 1, 1], [], []>} : vector<15x8xbf16>, vector<8x8xbf16>, vector<15x8xf32> -> vector<15x8xf32>
    %91 = arith.addf %85, %90 : vector<15x8xf32>
    %c4_79 = arith.constant 4 : index
    %c16_80 = arith.constant 16 : index
    %92 = vector.load %arg5[%c4_79, %c16_80] : memref<19x32xf32, #tpu.memory_space<vmem>>, vector<15x8xf32>
    %93 = arith.truncf %92 : vector<15x8xf32> to vector<15x8xbf16>
    %c18 = arith.constant 18 : index
    %c0_81 = arith.constant 0 : index
    %c0_82 = arith.constant 0 : index
    %94 = vector.load %arg2[%c18, %c0_81, %c0_82] : memref<20x8x8xbf16, #tpu.memory_space<vmem>>, vector<1x8x8xbf16>
    %95 = vector.shape_cast %94 : vector<1x8x8xbf16> to vector<8x8xbf16>
    %cst_83 = arith.constant dense<0.000000e+00> : vector<15x8xf32>
    %96 = tpu.matmul %93, %95, %cst_83 {dimension_numbers = #tpu.dot_dimension_numbers<[1], [0], [0], [1], [0, 0, 1, 1], [], []>} : vector<15x8xbf16>, vector<8x8xbf16>, vector<15x8xf32> -> vector<15x8xf32>
    %97 = arith.addf %91, %96 : vector<15x8xf32>
    %cst_84 = arith.constant 0.000000e+00 : f32
    %98 = vector.broadcast %cst_84 : f32 to vector<15x8xf32>
    %c0_85 = arith.constant 0 : index
    %c24 = arith.constant 24 : index
    %99 = vector.load %arg5[%c0_85, %c24] : memref<19x32xf32, #tpu.memory_space<vmem>>, vector<15x8xf32>
    %100 = arith.truncf %99 : vector<15x8xf32> to vector<15x8xbf16>
    %c3_86 = arith.constant 3 : index
    %c0_87 = arith.constant 0 : index
    %c0_88 = arith.constant 0 : index
    %101 = vector.load %arg2[%c3_86, %c0_87, %c0_88] : memref<20x8x8xbf16, #tpu.memory_space<vmem>>, vector<1x8x8xbf16>
    %102 = vector.shape_cast %101 : vector<1x8x8xbf16> to vector<8x8xbf16>
    %cst_89 = arith.constant dense<0.000000e+00> : vector<15x8xf32>
    %103 = tpu.matmul %100, %102, %cst_89 {dimension_numbers = #tpu.dot_dimension_numbers<[1], [0], [0], [1], [0, 0, 1, 1], [], []>} : vector<15x8xbf16>, vector<8x8xbf16>, vector<15x8xf32> -> vector<15x8xf32>
    %104 = arith.addf %98, %103 : vector<15x8xf32>
    %c1_90 = arith.constant 1 : index
    %c24_91 = arith.constant 24 : index
    %105 = vector.load %arg5[%c1_90, %c24_91] : memref<19x32xf32, #tpu.memory_space<vmem>>, vector<15x8xf32>
    %106 = arith.truncf %105 : vector<15x8xf32> to vector<15x8xbf16>
    %c7 = arith.constant 7 : index
    %c0_92 = arith.constant 0 : index
    %c0_93 = arith.constant 0 : index
    %107 = vector.load %arg2[%c7, %c0_92, %c0_93] : memref<20x8x8xbf16, #tpu.memory_space<vmem>>, vector<1x8x8xbf16>
    %108 = vector.shape_cast %107 : vector<1x8x8xbf16> to vector<8x8xbf16>
    %cst_94 = arith.constant dense<0.000000e+00> : vector<15x8xf32>
    %109 = tpu.matmul %106, %108, %cst_94 {dimension_numbers = #tpu.dot_dimension_numbers<[1], [0], [0], [1], [0, 0, 1, 1], [], []>} : vector<15x8xbf16>, vector<8x8xbf16>, vector<15x8xf32> -> vector<15x8xf32>
    %110 = arith.addf %104, %109 : vector<15x8xf32>
    %c2_95 = arith.constant 2 : index
    %c24_96 = arith.constant 24 : index
    %111 = vector.load %arg5[%c2_95, %c24_96] : memref<19x32xf32, #tpu.memory_space<vmem>>, vector<15x8xf32>
    %112 = arith.truncf %111 : vector<15x8xf32> to vector<15x8xbf16>
    %c11 = arith.constant 11 : index
    %c0_97 = arith.constant 0 : index
    %c0_98 = arith.constant 0 : index
    %113 = vector.load %arg2[%c11, %c0_97, %c0_98] : memref<20x8x8xbf16, #tpu.memory_space<vmem>>, vector<1x8x8xbf16>
    %114 = vector.shape_cast %113 : vector<1x8x8xbf16> to vector<8x8xbf16>
    %cst_99 = arith.constant dense<0.000000e+00> : vector<15x8xf32>
    %115 = tpu.matmul %112, %114, %cst_99 {dimension_numbers = #tpu.dot_dimension_numbers<[1], [0], [0], [1], [0, 0, 1, 1], [], []>} : vector<15x8xbf16>, vector<8x8xbf16>, vector<15x8xf32> -> vector<15x8xf32>
    %116 = arith.addf %110, %115 : vector<15x8xf32>
    %c3_100 = arith.constant 3 : index
    %c24_101 = arith.constant 24 : index
    %117 = vector.load %arg5[%c3_100, %c24_101] : memref<19x32xf32, #tpu.memory_space<vmem>>, vector<15x8xf32>
    %118 = arith.truncf %117 : vector<15x8xf32> to vector<15x8xbf16>
    %c15 = arith.constant 15 : index
    %c0_102 = arith.constant 0 : index
    %c0_103 = arith.constant 0 : index
    %119 = vector.load %arg2[%c15, %c0_102, %c0_103] : memref<20x8x8xbf16, #tpu.memory_space<vmem>>, vector<1x8x8xbf16>
    %120 = vector.shape_cast %119 : vector<1x8x8xbf16> to vector<8x8xbf16>
    %cst_104 = arith.constant dense<0.000000e+00> : vector<15x8xf32>
    %121 = tpu.matmul %118, %120, %cst_104 {dimension_numbers = #tpu.dot_dimension_numbers<[1], [0], [0], [1], [0, 0, 1, 1], [], []>} : vector<15x8xbf16>, vector<8x8xbf16>, vector<15x8xf32> -> vector<15x8xf32>
    %122 = arith.addf %116, %121 : vector<15x8xf32>
    %c4_105 = arith.constant 4 : index
    %c24_106 = arith.constant 24 : index
    %123 = vector.load %arg5[%c4_105, %c24_106] : memref<19x32xf32, #tpu.memory_space<vmem>>, vector<15x8xf32>
    %124 = arith.truncf %123 : vector<15x8xf32> to vector<15x8xbf16>
    %c19 = arith.constant 19 : index
    %c0_107 = arith.constant 0 : index
    %c0_108 = arith.constant 0 : index
    %125 = vector.load %arg2[%c19, %c0_107, %c0_108] : memref<20x8x8xbf16, #tpu.memory_space<vmem>>, vector<1x8x8xbf16>
    %126 = vector.shape_cast %125 : vector<1x8x8xbf16> to vector<8x8xbf16>
    %cst_109 = arith.constant dense<0.000000e+00> : vector<15x8xf32>
    %127 = tpu.matmul %124, %126, %cst_109 {dimension_numbers = #tpu.dot_dimension_numbers<[1], [0], [0], [1], [0, 0, 1, 1], [], []>} : vector<15x8xbf16>, vector<8x8xbf16>, vector<15x8xf32> -> vector<15x8xf32>
    %128 = arith.addf %122, %127 : vector<15x8xf32>
    %129 = tpu.concatenate %35, %66, %97, %128 in 1 : vector<15x8xf32>, vector<15x8xf32>, vector<15x8xf32>, vector<15x8xf32> -> vector<15x32xf32>
    %c0_110 = arith.constant 0 : index
    %c0_111 = arith.constant 0 : index
    %130 = vector.load %arg3[%c0_110, %c0_111] : memref<1x32xf32, #tpu.memory_space<vmem>>, vector<1x32xf32>
    %131 = vector.broadcast %130 : vector<1x32xf32> to vector<15x32xf32>
    %132 = arith.addf %129, %131 : vector<15x32xf32>
    %cst_112 = arith.constant 5.000000e-01 : f32
    %133 = vector.broadcast %cst_112 : f32 to vector<15x32xf32>
    %134 = arith.mulf %133, %132 : vector<15x32xf32>
    %cst_113 = arith.constant 4.471500e-02 : f32
    %135 = vector.broadcast %cst_113 : f32 to vector<15x32xf32>
    %136 = arith.mulf %135, %132 : vector<15x32xf32>
    %137 = arith.mulf %136, %132 : vector<15x32xf32>
    %138 = arith.mulf %137, %132 : vector<15x32xf32>
    %139 = arith.addf %132, %138 : vector<15x32xf32>
    %cst_114 = arith.constant 0.797884583 : f32
    %140 = vector.broadcast %cst_114 : f32 to vector<15x32xf32>
    %141 = arith.mulf %140, %139 : vector<15x32xf32>
    %142 = math.tanh %141 : vector<15x32xf32>
    %cst_115 = arith.constant 1.000000e+00 : f32
    %143 = vector.broadcast %cst_115 : f32 to vector<15x32xf32>
    %144 = arith.addf %143, %142 : vector<15x32xf32>
    %145 = arith.mulf %134, %144 : vector<15x32xf32>
    %146 = arith.addf %1, %145 : vector<15x32xf32>
    %c0_116 = arith.constant 0 : index
    %c0_117 = arith.constant 0 : index
    %c0_118 = arith.constant 0 : index
    %147 = vector.load %arg4[%c0_116, %c0_117, %c0_118] : memref<1x15x32xf32, #tpu.memory_space<vmem>>, vector<1x15x32xf32>
    %148 = vector.shape_cast %147 : vector<1x15x32xf32> to vector<15x32xf32>
    %149 = vector.shape_cast %146 : vector<15x32xf32> to vector<1x15x32xf32>
    tpu.vector_store %arg4[%c0_116, %c0_117, %c0_118], %149 {strides = array<i32>} : memref<1x15x32xf32, #tpu.memory_space<vmem>>, vector<1x15x32xf32>,
    return
  }
  func.func @transform_0(%arg0: i32) -> (i32, i32, i32) {
    %c0_i32 = arith.constant 0 : i32
    %c0_i32_0 = arith.constant 0 : i32
    %c0_i32_1 = arith.constant 0 : i32
    return %arg0, %c0_i32, %c0_i32_0 : i32, i32, i32
  }
  func.func @transform_1(%arg0: i32) -> (i32, i32, i32) {
    %c0_i32 = arith.constant 0 : i32
    %c0_i32_0 = arith.constant 0 : i32
    %c0_i32_1 = arith.constant 0 : i32
    %c0_i32_2 = arith.constant 0 : i32
    return %c0_i32, %c0_i32_0, %c0_i32_1 : i32, i32, i32
  }
  func.func @transform_2(%arg0: i32) -> (i32, i32) {
    %c0_i32 = arith.constant 0 : i32
    %c0_i32_0 = arith.constant 0 : i32
    %c0_i32_1 = arith.constant 0 : i32
    return %c0_i32, %c0_i32_0 : i32, i32
  }
  func.func @transform_3(%arg0: i32) -> (i32, i32, i32) {
    %c0_i32 = arith.constant 0 : i32
    %c0_i32_0 = arith.constant 0 : i32
    %c0_i32_1 = arith.constant 0 : i32
    return %arg0, %c0_i32, %c0_i32_0 : i32, i32, i32
  }
}

module attributes {stable_mosaic.version = 11 : i64} {
  func.func @_fe_conv_kernel(%arg0: i32, %arg1: memref<1x2x16x16xf32, #tpu.memory_space<vmem>>, %arg2: memref<3x16x16xbf16, #tpu.memory_space<vmem>>, %arg3: memref<1x16xf32, #tpu.memory_space<vmem>>, %arg4: memref<16x32xbf16, #tpu.memory_space<vmem>>, %arg5: memref<1x32xf32, #tpu.memory_space<vmem>>, %arg6: memref<1x15x32xf32, #tpu.memory_space<vmem>>) attributes {dimension_semantics = [#tpu.dimension_semantics<parallel>], iteration_bounds = array<i64: 2>, scalar_prefetch = 0 : i64, scratch_operands = 0 : i64, tpu.core_type = #tpu.core_type<tc>, window_params = [{transform_indices = @transform_0, window_bounds = array<i64: 1, 2, 16, 16>}, {pipeline_mode = #tpu.pipeline_mode<synchronous>, transform_indices = @transform_1, window_bounds = array<i64: 3, 16, 16>}, {pipeline_mode = #tpu.pipeline_mode<synchronous>, transform_indices = @transform_2, window_bounds = array<i64: 1, 16>}, {pipeline_mode = #tpu.pipeline_mode<synchronous>, transform_indices = @transform_3, window_bounds = array<i64: 16, 32>}, {pipeline_mode = #tpu.pipeline_mode<synchronous>, transform_indices = @transform_4, window_bounds = array<i64: 1, 32>}, {transform_indices = @transform_5, window_bounds = array<i64: 1, 15, 32>}]} {
    %cst = arith.constant 0.000000e+00 : f32
    %0 = vector.broadcast %cst : f32 to vector<15x16xf32>
    %c0 = arith.constant 0 : index
    %c0_0 = arith.constant 0 : index
    %c0_1 = arith.constant 0 : index
    %c0_2 = arith.constant 0 : index
    %1 = vector.load %arg1[%c0, %c0_0, %c0_1, %c0_2] : memref<1x2x16x16xf32, #tpu.memory_space<vmem>>, vector<1x1x15x16xf32>
    %2 = vector.shape_cast %1 : vector<1x1x15x16xf32> to vector<15x16xf32>
    %3 = arith.truncf %2 : vector<15x16xf32> to vector<15x16xbf16>
    %c0_3 = arith.constant 0 : index
    %c0_4 = arith.constant 0 : index
    %c0_5 = arith.constant 0 : index
    %4 = vector.load %arg2[%c0_3, %c0_4, %c0_5] : memref<3x16x16xbf16, #tpu.memory_space<vmem>>, vector<1x16x16xbf16>
    %5 = vector.shape_cast %4 : vector<1x16x16xbf16> to vector<16x16xbf16>
    %cst_6 = arith.constant dense<0.000000e+00> : vector<15x16xf32>
    %6 = tpu.matmul %3, %5, %cst_6 {dimension_numbers = #tpu.dot_dimension_numbers<[1], [0], [0], [1], [0, 0, 1, 1], [], []>} : vector<15x16xbf16>, vector<16x16xbf16>, vector<15x16xf32> -> vector<15x16xf32>
    %7 = arith.addf %0, %6 : vector<15x16xf32>
    %c0_7 = arith.constant 0 : index
    %c1 = arith.constant 1 : index
    %c0_8 = arith.constant 0 : index
    %c0_9 = arith.constant 0 : index
    %8 = vector.load %arg1[%c0_7, %c1, %c0_8, %c0_9] : memref<1x2x16x16xf32, #tpu.memory_space<vmem>>, vector<1x1x15x16xf32>
    %9 = vector.shape_cast %8 : vector<1x1x15x16xf32> to vector<15x16xf32>
    %10 = arith.truncf %9 : vector<15x16xf32> to vector<15x16xbf16>
    %c1_10 = arith.constant 1 : index
    %c0_11 = arith.constant 0 : index
    %c0_12 = arith.constant 0 : index
    %11 = vector.load %arg2[%c1_10, %c0_11, %c0_12] : memref<3x16x16xbf16, #tpu.memory_space<vmem>>, vector<1x16x16xbf16>
    %12 = vector.shape_cast %11 : vector<1x16x16xbf16> to vector<16x16xbf16>
    %cst_13 = arith.constant dense<0.000000e+00> : vector<15x16xf32>
    %13 = tpu.matmul %10, %12, %cst_13 {dimension_numbers = #tpu.dot_dimension_numbers<[1], [0], [0], [1], [0, 0, 1, 1], [], []>} : vector<15x16xbf16>, vector<16x16xbf16>, vector<15x16xf32> -> vector<15x16xf32>
    %14 = arith.addf %7, %13 : vector<15x16xf32>
    %c0_14 = arith.constant 0 : index
    %c0_15 = arith.constant 0 : index
    %c1_16 = arith.constant 1 : index
    %c0_17 = arith.constant 0 : index
    %15 = vector.load %arg1[%c0_14, %c0_15, %c1_16, %c0_17] : memref<1x2x16x16xf32, #tpu.memory_space<vmem>>, vector<1x1x15x16xf32>
    %16 = vector.shape_cast %15 : vector<1x1x15x16xf32> to vector<15x16xf32>
    %17 = arith.truncf %16 : vector<15x16xf32> to vector<15x16xbf16>
    %c2 = arith.constant 2 : index
    %c0_18 = arith.constant 0 : index
    %c0_19 = arith.constant 0 : index
    %18 = vector.load %arg2[%c2, %c0_18, %c0_19] : memref<3x16x16xbf16, #tpu.memory_space<vmem>>, vector<1x16x16xbf16>
    %19 = vector.shape_cast %18 : vector<1x16x16xbf16> to vector<16x16xbf16>
    %cst_20 = arith.constant dense<0.000000e+00> : vector<15x16xf32>
    %20 = tpu.matmul %17, %19, %cst_20 {dimension_numbers = #tpu.dot_dimension_numbers<[1], [0], [0], [1], [0, 0, 1, 1], [], []>} : vector<15x16xbf16>, vector<16x16xbf16>, vector<15x16xf32> -> vector<15x16xf32>
    %21 = arith.addf %14, %20 : vector<15x16xf32>
    %c0_21 = arith.constant 0 : index
    %c0_22 = arith.constant 0 : index
    %22 = vector.load %arg3[%c0_21, %c0_22] : memref<1x16xf32, #tpu.memory_space<vmem>>, vector<1x16xf32>
    %23 = vector.broadcast %22 : vector<1x16xf32> to vector<15x16xf32>
    %24 = arith.addf %21, %23 : vector<15x16xf32>
    %cst_23 = arith.constant 5.000000e-01 : f32
    %25 = vector.broadcast %cst_23 : f32 to vector<15x16xf32>
    %26 = arith.mulf %25, %24 : vector<15x16xf32>
    %cst_24 = arith.constant 4.471500e-02 : f32
    %27 = vector.broadcast %cst_24 : f32 to vector<15x16xf32>
    %28 = arith.mulf %27, %24 : vector<15x16xf32>
    %29 = arith.mulf %28, %24 : vector<15x16xf32>
    %30 = arith.mulf %29, %24 : vector<15x16xf32>
    %31 = arith.addf %24, %30 : vector<15x16xf32>
    %cst_25 = arith.constant 0.797884583 : f32
    %32 = vector.broadcast %cst_25 : f32 to vector<15x16xf32>
    %33 = arith.mulf %32, %31 : vector<15x16xf32>
    %34 = math.tanh %33 : vector<15x16xf32>
    %cst_26 = arith.constant 1.000000e+00 : f32
    %35 = vector.broadcast %cst_26 : f32 to vector<15x16xf32>
    %36 = arith.addf %35, %34 : vector<15x16xf32>
    %37 = arith.mulf %26, %36 : vector<15x16xf32>
    %38 = arith.truncf %37 : vector<15x16xf32> to vector<15x16xbf16>
    %c0_27 = arith.constant 0 : index
    %c0_28 = arith.constant 0 : index
    %39 = vector.load %arg4[%c0_27, %c0_28] : memref<16x32xbf16, #tpu.memory_space<vmem>>, vector<16x32xbf16>
    %cst_29 = arith.constant dense<0.000000e+00> : vector<15x32xf32>
    %40 = tpu.matmul %38, %39, %cst_29 {dimension_numbers = #tpu.dot_dimension_numbers<[1], [0], [0], [1], [0, 0, 1, 1], [], []>} : vector<15x16xbf16>, vector<16x32xbf16>, vector<15x32xf32> -> vector<15x32xf32>
    %c0_30 = arith.constant 0 : index
    %c0_31 = arith.constant 0 : index
    %41 = vector.load %arg5[%c0_30, %c0_31] : memref<1x32xf32, #tpu.memory_space<vmem>>, vector<1x32xf32>
    %42 = vector.broadcast %41 : vector<1x32xf32> to vector<15x32xf32>
    %43 = arith.addf %40, %42 : vector<15x32xf32>
    %c0_32 = arith.constant 0 : index
    %c0_33 = arith.constant 0 : index
    %c0_34 = arith.constant 0 : index
    %44 = vector.load %arg6[%c0_32, %c0_33, %c0_34] : memref<1x15x32xf32, #tpu.memory_space<vmem>>, vector<1x15x32xf32>
    %45 = vector.shape_cast %44 : vector<1x15x32xf32> to vector<15x32xf32>
    %46 = vector.shape_cast %43 : vector<15x32xf32> to vector<1x15x32xf32>
    tpu.vector_store %arg6[%c0_32, %c0_33, %c0_34], %46 {strides = array<i32>} : memref<1x15x32xf32, #tpu.memory_space<vmem>>, vector<1x15x32xf32>,
    return
  }
  func.func @transform_0(%arg0: i32) -> (i32, i32, i32, i32) {
    %c0_i32 = arith.constant 0 : i32
    %c0_i32_0 = arith.constant 0 : i32
    %c0_i32_1 = arith.constant 0 : i32
    %c0_i32_2 = arith.constant 0 : i32
    return %arg0, %c0_i32, %c0_i32_0, %c0_i32_1 : i32, i32, i32, i32
  }
  func.func @transform_1(%arg0: i32) -> (i32, i32, i32) {
    %c0_i32 = arith.constant 0 : i32
    %c0_i32_0 = arith.constant 0 : i32
    %c0_i32_1 = arith.constant 0 : i32
    %c0_i32_2 = arith.constant 0 : i32
    return %c0_i32, %c0_i32_0, %c0_i32_1 : i32, i32, i32
  }
  func.func @transform_2(%arg0: i32) -> (i32, i32) {
    %c0_i32 = arith.constant 0 : i32
    %c0_i32_0 = arith.constant 0 : i32
    %c0_i32_1 = arith.constant 0 : i32
    return %c0_i32, %c0_i32_0 : i32, i32
  }
  func.func @transform_3(%arg0: i32) -> (i32, i32) {
    %c0_i32 = arith.constant 0 : i32
    %c0_i32_0 = arith.constant 0 : i32
    %c0_i32_1 = arith.constant 0 : i32
    return %c0_i32, %c0_i32_0 : i32, i32
  }
  func.func @transform_4(%arg0: i32) -> (i32, i32) {
    %c0_i32 = arith.constant 0 : i32
    %c0_i32_0 = arith.constant 0 : i32
    %c0_i32_1 = arith.constant 0 : i32
    return %c0_i32, %c0_i32_0 : i32, i32
  }
  func.func @transform_5(%arg0: i32) -> (i32, i32, i32) {
    %c0_i32 = arith.constant 0 : i32
    %c0_i32_0 = arith.constant 0 : i32
    %c0_i32_1 = arith.constant 0 : i32
    return %arg0, %c0_i32, %c0_i32_0 : i32, i32, i32
  }
}

module attributes {stable_mosaic.version = 11 : i64} {
  func.func @_attn_block_kernel(%arg0: i32, %arg1: memref<1x15x32xf32, #tpu.memory_space<vmem>>, %arg2: memref<32x96xbf16, #tpu.memory_space<vmem>>, %arg3: memref<1x96xf32, #tpu.memory_space<vmem>>, %arg4: memref<32x32xbf16, #tpu.memory_space<vmem>>, %arg5: memref<1x32xf32, #tpu.memory_space<vmem>>, %arg6: memref<1x32xf32, #tpu.memory_space<vmem>>, %arg7: memref<1x32xf32, #tpu.memory_space<vmem>>, %arg8: memref<1x1x15xf32, #tpu.memory_space<vmem>>, %arg9: memref<1x15x32xf32, #tpu.memory_space<vmem>>) attributes {dimension_semantics = [#tpu.dimension_semantics<parallel>], iteration_bounds = array<i64: 2>, scalar_prefetch = 0 : i64, scratch_operands = 0 : i64, tpu.core_type = #tpu.core_type<tc>, window_params = [{transform_indices = @transform_0, window_bounds = array<i64: 1, 15, 32>}, {pipeline_mode = #tpu.pipeline_mode<synchronous>, transform_indices = @transform_1, window_bounds = array<i64: 32, 96>}, {pipeline_mode = #tpu.pipeline_mode<synchronous>, transform_indices = @transform_2, window_bounds = array<i64: 1, 96>}, {pipeline_mode = #tpu.pipeline_mode<synchronous>, transform_indices = @transform_3, window_bounds = array<i64: 32, 32>}, {pipeline_mode = #tpu.pipeline_mode<synchronous>, transform_indices = @transform_4, window_bounds = array<i64: 1, 32>}, {pipeline_mode = #tpu.pipeline_mode<synchronous>, transform_indices = @transform_5, window_bounds = array<i64: 1, 32>}, {pipeline_mode = #tpu.pipeline_mode<synchronous>, transform_indices = @transform_6, window_bounds = array<i64: 1, 32>}, {transform_indices = @transform_7, window_bounds = array<i64: 1, 1, 15>}, {transform_indices = @transform_8, window_bounds = array<i64: 1, 15, 32>}]} {
    %c0 = arith.constant 0 : index
    %c0_0 = arith.constant 0 : index
    %c0_1 = arith.constant 0 : index
    %0 = vector.load %arg1[%c0, %c0_0, %c0_1] : memref<1x15x32xf32, #tpu.memory_space<vmem>>, vector<1x15x32xf32>
    %1 = vector.shape_cast %0 : vector<1x15x32xf32> to vector<15x32xf32>
    %2 = arith.truncf %1 : vector<15x32xf32> to vector<15x32xbf16>
    %c0_2 = arith.constant 0 : index
    %c0_3 = arith.constant 0 : index
    %3 = vector.load %arg2[%c0_2, %c0_3] : memref<32x96xbf16, #tpu.memory_space<vmem>>, vector<32x96xbf16>
    %cst = arith.constant dense<0.000000e+00> : vector<15x96xf32>
    %4 = tpu.matmul %2, %3, %cst {dimension_numbers = #tpu.dot_dimension_numbers<[1], [0], [0], [1], [0, 0, 1, 1], [], []>} : vector<15x32xbf16>, vector<32x96xbf16>, vector<15x96xf32> -> vector<15x96xf32>
    %c0_4 = arith.constant 0 : index
    %c0_5 = arith.constant 0 : index
    %5 = vector.load %arg3[%c0_4, %c0_5] : memref<1x96xf32, #tpu.memory_space<vmem>>, vector<1x96xf32>
    %6 = vector.broadcast %5 : vector<1x96xf32> to vector<15x96xf32>
    %7 = arith.addf %4, %6 : vector<15x96xf32>
    %8 = vector.extract_strided_slice %7 {offsets = [0, 0], sizes = [15, 32], strides = [1, 1]} : vector<15x96xf32> to vector<15x32xf32>
    %9 = vector.extract_strided_slice %7 {offsets = [0, 32], sizes = [15, 32], strides = [1, 1]} : vector<15x96xf32> to vector<15x32xf32>
    %10 = vector.extract_strided_slice %7 {offsets = [0, 64], sizes = [15, 32], strides = [1, 1]} : vector<15x96xf32> to vector<15x32xf32>
    %11 = vector.extract_strided_slice %8 {offsets = [0, 0], sizes = [15, 8], strides = [1, 1]} : vector<15x32xf32> to vector<15x8xf32>
    %12 = arith.truncf %11 : vector<15x8xf32> to vector<15x8xbf16>
    %13 = vector.extract_strided_slice %9 {offsets = [0, 0], sizes = [15, 8], strides = [1, 1]} : vector<15x32xf32> to vector<15x8xf32>
    %14 = arith.truncf %13 : vector<15x8xf32> to vector<15x8xbf16>
    %15 = vector.extract_strided_slice %10 {offsets = [0, 0], sizes = [15, 8], strides = [1, 1]} : vector<15x32xf32> to vector<15x8xf32>
    %16 = arith.truncf %15 : vector<15x8xf32> to vector<15x8xbf16>
    %cst_6 = arith.constant dense<0.000000e+00> : vector<15x15xf32>
    %17 = tpu.matmul %12, %14, %cst_6 {dimension_numbers = #tpu.dot_dimension_numbers<[1], [1], [0], [0], [0, 0, 1, 0], [], []>} : vector<15x8xbf16>, vector<15x8xbf16>, vector<15x15xf32> -> vector<15x15xf32>
    %cst_7 = arith.constant 0.353553385 : f32
    %18 = vector.broadcast %cst_7 : f32 to vector<15x15xf32>
    %19 = arith.mulf %17, %18 : vector<15x15xf32>
    %c0_8 = arith.constant 0 : index
    %c0_9 = arith.constant 0 : index
    %c0_10 = arith.constant 0 : index
    %20 = vector.load %arg8[%c0_8, %c0_9, %c0_10] : memref<1x1x15xf32, #tpu.memory_space<vmem>>, vector<1x1x15xf32>
    %21 = vector.shape_cast %20 : vector<1x1x15xf32> to vector<1x15xf32>
    %22 = vector.broadcast %21 : vector<1x15xf32> to vector<15x15xf32>
    %23 = arith.addf %19, %22 : vector<15x15xf32>
    %cst_11 = arith.constant dense<0xFF800000> : vector<15xf32>
    %24 = vector.multi_reduction <maximumf>, %23, %cst_11 [1] : vector<15x15xf32> to vector<15xf32>
    %25 = vector.shape_cast %24 : vector<15xf32> to vector<15x1xf32>
    %26 = vector.broadcast %25 : vector<15x1xf32> to vector<15x15xf32>
    %27 = arith.subf %23, %26 : vector<15x15xf32>
    %28 = math.exp %27 : vector<15x15xf32>
    %cst_12 = arith.constant dense<0.000000e+00> : vector<15xf32>
    %29 = vector.multi_reduction <add>, %28, %cst_12 [1] : vector<15x15xf32> to vector<15xf32>
    %30 = vector.shape_cast %29 : vector<15xf32> to vector<15x1xf32>
    %31 = tpu.reciprocal %30 {approx = true} : vector<15x1xf32> -> vector<15x1xf32>
    %32 = vector.broadcast %31 : vector<15x1xf32> to vector<15x15xf32>
    %33 = arith.mulf %28, %32 : vector<15x15xf32>
    %34 = arith.truncf %33 : vector<15x15xf32> to vector<15x15xbf16>
    %cst_13 = arith.constant dense<0.000000e+00> : vector<15x8xf32>
    %35 = tpu.matmul %34, %16, %cst_13 {dimension_numbers = #tpu.dot_dimension_numbers<[1], [0], [0], [1], [0, 0, 1, 1], [], []>} : vector<15x15xbf16>, vector<15x8xbf16>, vector<15x8xf32> -> vector<15x8xf32>
    %36 = vector.extract_strided_slice %8 {offsets = [0, 8], sizes = [15, 8], strides = [1, 1]} : vector<15x32xf32> to vector<15x8xf32>
    %37 = arith.truncf %36 : vector<15x8xf32> to vector<15x8xbf16>
    %38 = vector.extract_strided_slice %9 {offsets = [0, 8], sizes = [15, 8], strides = [1, 1]} : vector<15x32xf32> to vector<15x8xf32>
    %39 = arith.truncf %38 : vector<15x8xf32> to vector<15x8xbf16>
    %40 = vector.extract_strided_slice %10 {offsets = [0, 8], sizes = [15, 8], strides = [1, 1]} : vector<15x32xf32> to vector<15x8xf32>
    %41 = arith.truncf %40 : vector<15x8xf32> to vector<15x8xbf16>
    %cst_14 = arith.constant dense<0.000000e+00> : vector<15x15xf32>
    %42 = tpu.matmul %37, %39, %cst_14 {dimension_numbers = #tpu.dot_dimension_numbers<[1], [1], [0], [0], [0, 0, 1, 0], [], []>} : vector<15x8xbf16>, vector<15x8xbf16>, vector<15x15xf32> -> vector<15x15xf32>
    %cst_15 = arith.constant 0.353553385 : f32
    %43 = vector.broadcast %cst_15 : f32 to vector<15x15xf32>
    %44 = arith.mulf %42, %43 : vector<15x15xf32>
    %c0_16 = arith.constant 0 : index
    %c0_17 = arith.constant 0 : index
    %c0_18 = arith.constant 0 : index
    %45 = vector.load %arg8[%c0_16, %c0_17, %c0_18] : memref<1x1x15xf32, #tpu.memory_space<vmem>>, vector<1x1x15xf32>
    %46 = vector.shape_cast %45 : vector<1x1x15xf32> to vector<1x15xf32>
    %47 = vector.broadcast %46 : vector<1x15xf32> to vector<15x15xf32>
    %48 = arith.addf %44, %47 : vector<15x15xf32>
    %cst_19 = arith.constant dense<0xFF800000> : vector<15xf32>
    %49 = vector.multi_reduction <maximumf>, %48, %cst_19 [1] : vector<15x15xf32> to vector<15xf32>
    %50 = vector.shape_cast %49 : vector<15xf32> to vector<15x1xf32>
    %51 = vector.broadcast %50 : vector<15x1xf32> to vector<15x15xf32>
    %52 = arith.subf %48, %51 : vector<15x15xf32>
    %53 = math.exp %52 : vector<15x15xf32>
    %cst_20 = arith.constant dense<0.000000e+00> : vector<15xf32>
    %54 = vector.multi_reduction <add>, %53, %cst_20 [1] : vector<15x15xf32> to vector<15xf32>
    %55 = vector.shape_cast %54 : vector<15xf32> to vector<15x1xf32>
    %56 = tpu.reciprocal %55 {approx = true} : vector<15x1xf32> -> vector<15x1xf32>
    %57 = vector.broadcast %56 : vector<15x1xf32> to vector<15x15xf32>
    %58 = arith.mulf %53, %57 : vector<15x15xf32>
    %59 = arith.truncf %58 : vector<15x15xf32> to vector<15x15xbf16>
    %cst_21 = arith.constant dense<0.000000e+00> : vector<15x8xf32>
    %60 = tpu.matmul %59, %41, %cst_21 {dimension_numbers = #tpu.dot_dimension_numbers<[1], [0], [0], [1], [0, 0, 1, 1], [], []>} : vector<15x15xbf16>, vector<15x8xbf16>, vector<15x8xf32> -> vector<15x8xf32>
    %61 = vector.extract_strided_slice %8 {offsets = [0, 16], sizes = [15, 8], strides = [1, 1]} : vector<15x32xf32> to vector<15x8xf32>
    %62 = arith.truncf %61 : vector<15x8xf32> to vector<15x8xbf16>
    %63 = vector.extract_strided_slice %9 {offsets = [0, 16], sizes = [15, 8], strides = [1, 1]} : vector<15x32xf32> to vector<15x8xf32>
    %64 = arith.truncf %63 : vector<15x8xf32> to vector<15x8xbf16>
    %65 = vector.extract_strided_slice %10 {offsets = [0, 16], sizes = [15, 8], strides = [1, 1]} : vector<15x32xf32> to vector<15x8xf32>
    %66 = arith.truncf %65 : vector<15x8xf32> to vector<15x8xbf16>
    %cst_22 = arith.constant dense<0.000000e+00> : vector<15x15xf32>
    %67 = tpu.matmul %62, %64, %cst_22 {dimension_numbers = #tpu.dot_dimension_numbers<[1], [1], [0], [0], [0, 0, 1, 0], [], []>} : vector<15x8xbf16>, vector<15x8xbf16>, vector<15x15xf32> -> vector<15x15xf32>
    %cst_23 = arith.constant 0.353553385 : f32
    %68 = vector.broadcast %cst_23 : f32 to vector<15x15xf32>
    %69 = arith.mulf %67, %68 : vector<15x15xf32>
    %c0_24 = arith.constant 0 : index
    %c0_25 = arith.constant 0 : index
    %c0_26 = arith.constant 0 : index
    %70 = vector.load %arg8[%c0_24, %c0_25, %c0_26] : memref<1x1x15xf32, #tpu.memory_space<vmem>>, vector<1x1x15xf32>
    %71 = vector.shape_cast %70 : vector<1x1x15xf32> to vector<1x15xf32>
    %72 = vector.broadcast %71 : vector<1x15xf32> to vector<15x15xf32>
    %73 = arith.addf %69, %72 : vector<15x15xf32>
    %cst_27 = arith.constant dense<0xFF800000> : vector<15xf32>
    %74 = vector.multi_reduction <maximumf>, %73, %cst_27 [1] : vector<15x15xf32> to vector<15xf32>
    %75 = vector.shape_cast %74 : vector<15xf32> to vector<15x1xf32>
    %76 = vector.broadcast %75 : vector<15x1xf32> to vector<15x15xf32>
    %77 = arith.subf %73, %76 : vector<15x15xf32>
    %78 = math.exp %77 : vector<15x15xf32>
    %cst_28 = arith.constant dense<0.000000e+00> : vector<15xf32>
    %79 = vector.multi_reduction <add>, %78, %cst_28 [1] : vector<15x15xf32> to vector<15xf32>
    %80 = vector.shape_cast %79 : vector<15xf32> to vector<15x1xf32>
    %81 = tpu.reciprocal %80 {approx = true} : vector<15x1xf32> -> vector<15x1xf32>
    %82 = vector.broadcast %81 : vector<15x1xf32> to vector<15x15xf32>
    %83 = arith.mulf %78, %82 : vector<15x15xf32>
    %84 = arith.truncf %83 : vector<15x15xf32> to vector<15x15xbf16>
    %cst_29 = arith.constant dense<0.000000e+00> : vector<15x8xf32>
    %85 = tpu.matmul %84, %66, %cst_29 {dimension_numbers = #tpu.dot_dimension_numbers<[1], [0], [0], [1], [0, 0, 1, 1], [], []>} : vector<15x15xbf16>, vector<15x8xbf16>, vector<15x8xf32> -> vector<15x8xf32>
    %86 = vector.extract_strided_slice %8 {offsets = [0, 24], sizes = [15, 8], strides = [1, 1]} : vector<15x32xf32> to vector<15x8xf32>
    %87 = arith.truncf %86 : vector<15x8xf32> to vector<15x8xbf16>
    %88 = vector.extract_strided_slice %9 {offsets = [0, 24], sizes = [15, 8], strides = [1, 1]} : vector<15x32xf32> to vector<15x8xf32>
    %89 = arith.truncf %88 : vector<15x8xf32> to vector<15x8xbf16>
    %90 = vector.extract_strided_slice %10 {offsets = [0, 24], sizes = [15, 8], strides = [1, 1]} : vector<15x32xf32> to vector<15x8xf32>
    %91 = arith.truncf %90 : vector<15x8xf32> to vector<15x8xbf16>
    %cst_30 = arith.constant dense<0.000000e+00> : vector<15x15xf32>
    %92 = tpu.matmul %87, %89, %cst_30 {dimension_numbers = #tpu.dot_dimension_numbers<[1], [1], [0], [0], [0, 0, 1, 0], [], []>} : vector<15x8xbf16>, vector<15x8xbf16>, vector<15x15xf32> -> vector<15x15xf32>
    %cst_31 = arith.constant 0.353553385 : f32
    %93 = vector.broadcast %cst_31 : f32 to vector<15x15xf32>
    %94 = arith.mulf %92, %93 : vector<15x15xf32>
    %c0_32 = arith.constant 0 : index
    %c0_33 = arith.constant 0 : index
    %c0_34 = arith.constant 0 : index
    %95 = vector.load %arg8[%c0_32, %c0_33, %c0_34] : memref<1x1x15xf32, #tpu.memory_space<vmem>>, vector<1x1x15xf32>
    %96 = vector.shape_cast %95 : vector<1x1x15xf32> to vector<1x15xf32>
    %97 = vector.broadcast %96 : vector<1x15xf32> to vector<15x15xf32>
    %98 = arith.addf %94, %97 : vector<15x15xf32>
    %cst_35 = arith.constant dense<0xFF800000> : vector<15xf32>
    %99 = vector.multi_reduction <maximumf>, %98, %cst_35 [1] : vector<15x15xf32> to vector<15xf32>
    %100 = vector.shape_cast %99 : vector<15xf32> to vector<15x1xf32>
    %101 = vector.broadcast %100 : vector<15x1xf32> to vector<15x15xf32>
    %102 = arith.subf %98, %101 : vector<15x15xf32>
    %103 = math.exp %102 : vector<15x15xf32>
    %cst_36 = arith.constant dense<0.000000e+00> : vector<15xf32>
    %104 = vector.multi_reduction <add>, %103, %cst_36 [1] : vector<15x15xf32> to vector<15xf32>
    %105 = vector.shape_cast %104 : vector<15xf32> to vector<15x1xf32>
    %106 = tpu.reciprocal %105 {approx = true} : vector<15x1xf32> -> vector<15x1xf32>
    %107 = vector.broadcast %106 : vector<15x1xf32> to vector<15x15xf32>
    %108 = arith.mulf %103, %107 : vector<15x15xf32>
    %109 = arith.truncf %108 : vector<15x15xf32> to vector<15x15xbf16>
    %cst_37 = arith.constant dense<0.000000e+00> : vector<15x8xf32>
    %110 = tpu.matmul %109, %91, %cst_37 {dimension_numbers = #tpu.dot_dimension_numbers<[1], [0], [0], [1], [0, 0, 1, 1], [], []>} : vector<15x15xbf16>, vector<15x8xbf16>, vector<15x8xf32> -> vector<15x8xf32>
    %111 = tpu.concatenate %35, %60, %85, %110 in 1 : vector<15x8xf32>, vector<15x8xf32>, vector<15x8xf32>, vector<15x8xf32> -> vector<15x32xf32>
    %112 = arith.truncf %111 : vector<15x32xf32> to vector<15x32xbf16>
    %c0_38 = arith.constant 0 : index
    %c0_39 = arith.constant 0 : index
    %113 = vector.load %arg4[%c0_38, %c0_39] : memref<32x32xbf16, #tpu.memory_space<vmem>>, vector<32x32xbf16>
    %cst_40 = arith.constant dense<0.000000e+00> : vector<15x32xf32>
    %114 = tpu.matmul %112, %113, %cst_40 {dimension_numbers = #tpu.dot_dimension_numbers<[1], [0], [0], [1], [0, 0, 1, 1], [], []>} : vector<15x32xbf16>, vector<32x32xbf16>, vector<15x32xf32> -> vector<15x32xf32>
    %c0_41 = arith.constant 0 : index
    %c0_42 = arith.constant 0 : index
    %115 = vector.load %arg5[%c0_41, %c0_42] : memref<1x32xf32, #tpu.memory_space<vmem>>, vector<1x32xf32>
    %116 = vector.broadcast %115 : vector<1x32xf32> to vector<15x32xf32>
    %117 = arith.addf %114, %116 : vector<15x32xf32>
    %118 = arith.addf %1, %117 : vector<15x32xf32>
    %cst_43 = arith.constant dense<0.000000e+00> : vector<15xf32>
    %119 = vector.multi_reduction <add>, %118, %cst_43 [1] : vector<15x32xf32> to vector<15xf32>
    %120 = vector.shape_cast %119 : vector<15xf32> to vector<15x1xf32>
    %cst_44 = arith.constant 3.200000e+01 : f32
    %121 = vector.broadcast %cst_44 : f32 to vector<15x1xf32>
    %122 = arith.divf %120, %121 : vector<15x1xf32>
    %123 = vector.broadcast %122 : vector<15x1xf32> to vector<15x32xf32>
    %124 = arith.subf %118, %123 : vector<15x32xf32>
    %125 = arith.mulf %124, %124 : vector<15x32xf32>
    %cst_45 = arith.constant dense<0.000000e+00> : vector<15xf32>
    %126 = vector.multi_reduction <add>, %125, %cst_45 [1] : vector<15x32xf32> to vector<15xf32>
    %127 = vector.shape_cast %126 : vector<15xf32> to vector<15x1xf32>
    %cst_46 = arith.constant 3.200000e+01 : f32
    %128 = vector.broadcast %cst_46 : f32 to vector<15x1xf32>
    %129 = arith.divf %127, %128 : vector<15x1xf32>
    %cst_47 = arith.constant 9.99999974E-6 : f32
    %130 = vector.broadcast %cst_47 : f32 to vector<15x1xf32>
    %131 = arith.addf %129, %130 : vector<15x1xf32>
    %132 = math.rsqrt %131 : vector<15x1xf32>
    %133 = vector.broadcast %132 : vector<15x1xf32> to vector<15x32xf32>
    %134 = arith.mulf %124, %133 : vector<15x32xf32>
    %c0_48 = arith.constant 0 : index
    %c0_49 = arith.constant 0 : index
    %135 = vector.load %arg6[%c0_48, %c0_49] : memref<1x32xf32, #tpu.memory_space<vmem>>, vector<1x32xf32>
    %136 = vector.broadcast %135 : vector<1x32xf32> to vector<15x32xf32>
    %137 = arith.mulf %134, %136 : vector<15x32xf32>
    %c0_50 = arith.constant 0 : index
    %c0_51 = arith.constant 0 : index
    %138 = vector.load %arg7[%c0_50, %c0_51] : memref<1x32xf32, #tpu.memory_space<vmem>>, vector<1x32xf32>
    %139 = vector.broadcast %138 : vector<1x32xf32> to vector<15x32xf32>
    %140 = arith.addf %137, %139 : vector<15x32xf32>
    %c0_52 = arith.constant 0 : index
    %c0_53 = arith.constant 0 : index
    %c0_54 = arith.constant 0 : index
    %141 = vector.load %arg9[%c0_52, %c0_53, %c0_54] : memref<1x15x32xf32, #tpu.memory_space<vmem>>, vector<1x15x32xf32>
    %142 = vector.shape_cast %141 : vector<1x15x32xf32> to vector<15x32xf32>
    %143 = vector.shape_cast %140 : vector<15x32xf32> to vector<1x15x32xf32>
    tpu.vector_store %arg9[%c0_52, %c0_53, %c0_54], %143 {strides = array<i32>} : memref<1x15x32xf32, #tpu.memory_space<vmem>>, vector<1x15x32xf32>,
    return
  }
  func.func @transform_0(%arg0: i32) -> (i32, i32, i32) {
    %c0_i32 = arith.constant 0 : i32
    %c0_i32_0 = arith.constant 0 : i32
    %c0_i32_1 = arith.constant 0 : i32
    return %arg0, %c0_i32, %c0_i32_0 : i32, i32, i32
  }
  func.func @transform_1(%arg0: i32) -> (i32, i32) {
    %c0_i32 = arith.constant 0 : i32
    %c0_i32_0 = arith.constant 0 : i32
    %c0_i32_1 = arith.constant 0 : i32
    return %c0_i32, %c0_i32_0 : i32, i32
  }
  func.func @transform_2(%arg0: i32) -> (i32, i32) {
    %c0_i32 = arith.constant 0 : i32
    %c0_i32_0 = arith.constant 0 : i32
    %c0_i32_1 = arith.constant 0 : i32
    return %c0_i32, %c0_i32_0 : i32, i32
  }
  func.func @transform_3(%arg0: i32) -> (i32, i32) {
    %c0_i32 = arith.constant 0 : i32
    %c0_i32_0 = arith.constant 0 : i32
    %c0_i32_1 = arith.constant 0 : i32
    return %c0_i32, %c0_i32_0 : i32, i32
  }
  func.func @transform_4(%arg0: i32) -> (i32, i32) {
    %c0_i32 = arith.constant 0 : i32
    %c0_i32_0 = arith.constant 0 : i32
    %c0_i32_1 = arith.constant 0 : i32
    return %c0_i32, %c0_i32_0 : i32, i32
  }
  func.func @transform_5(%arg0: i32) -> (i32, i32) {
    %c0_i32 = arith.constant 0 : i32
    %c0_i32_0 = arith.constant 0 : i32
    %c0_i32_1 = arith.constant 0 : i32
    return %c0_i32, %c0_i32_0 : i32, i32
  }
  func.func @transform_6(%arg0: i32) -> (i32, i32) {
    %c0_i32 = arith.constant 0 : i32
    %c0_i32_0 = arith.constant 0 : i32
    %c0_i32_1 = arith.constant 0 : i32
    return %c0_i32, %c0_i32_0 : i32, i32
  }
  func.func @transform_7(%arg0: i32) -> (i32, i32, i32) {
    %c0_i32 = arith.constant 0 : i32
    %c0_i32_0 = arith.constant 0 : i32
    %c0_i32_1 = arith.constant 0 : i32
    return %arg0, %c0_i32, %c0_i32_0 : i32, i32, i32
  }
  func.func @transform_8(%arg0: i32) -> (i32, i32, i32) {
    %c0_i32 = arith.constant 0 : i32
    %c0_i32_0 = arith.constant 0 : i32
    %c0_i32_1 = arith.constant 0 : i32
    return %arg0, %c0_i32, %c0_i32_0 : i32, i32, i32
  }
}

module attributes {stable_mosaic.version = 11 : i64} {
  func.func @_fe_conv_kernel(%arg0: i32, %arg1: memref<1x2x32x8xf32, #tpu.memory_space<vmem>>, %arg2: memref<3x8x16xbf16, #tpu.memory_space<vmem>>, %arg3: memref<1x16xf32, #tpu.memory_space<vmem>>, %arg4: memref<1x31x16xf32, #tpu.memory_space<vmem>>) attributes {dimension_semantics = [#tpu.dimension_semantics<parallel>], iteration_bounds = array<i64: 2>, scalar_prefetch = 0 : i64, scratch_operands = 0 : i64, tpu.core_type = #tpu.core_type<tc>, window_params = [{transform_indices = @transform_0, window_bounds = array<i64: 1, 2, 32, 8>}, {pipeline_mode = #tpu.pipeline_mode<synchronous>, transform_indices = @transform_1, window_bounds = array<i64: 3, 8, 16>}, {pipeline_mode = #tpu.pipeline_mode<synchronous>, transform_indices = @transform_2, window_bounds = array<i64: 1, 16>}, {transform_indices = @transform_3, window_bounds = array<i64: 1, 31, 16>}]} {
    %cst = arith.constant 0.000000e+00 : f32
    %0 = vector.broadcast %cst : f32 to vector<31x16xf32>
    %c0 = arith.constant 0 : index
    %c0_0 = arith.constant 0 : index
    %c0_1 = arith.constant 0 : index
    %c0_2 = arith.constant 0 : index
    %1 = vector.load %arg1[%c0, %c0_0, %c0_1, %c0_2] : memref<1x2x32x8xf32, #tpu.memory_space<vmem>>, vector<1x1x31x8xf32>
    %2 = vector.shape_cast %1 : vector<1x1x31x8xf32> to vector<31x8xf32>
    %3 = arith.truncf %2 : vector<31x8xf32> to vector<31x8xbf16>
    %c0_3 = arith.constant 0 : index
    %c0_4 = arith.constant 0 : index
    %c0_5 = arith.constant 0 : index
    %4 = vector.load %arg2[%c0_3, %c0_4, %c0_5] : memref<3x8x16xbf16, #tpu.memory_space<vmem>>, vector<1x8x16xbf16>
    %5 = vector.shape_cast %4 : vector<1x8x16xbf16> to vector<8x16xbf16>
    %cst_6 = arith.constant dense<0.000000e+00> : vector<31x16xf32>
    %6 = tpu.matmul %3, %5, %cst_6 {dimension_numbers = #tpu.dot_dimension_numbers<[1], [0], [0], [1], [0, 0, 1, 1], [], []>} : vector<31x8xbf16>, vector<8x16xbf16>, vector<31x16xf32> -> vector<31x16xf32>
    %7 = arith.addf %0, %6 : vector<31x16xf32>
    %c0_7 = arith.constant 0 : index
    %c1 = arith.constant 1 : index
    %c0_8 = arith.constant 0 : index
    %c0_9 = arith.constant 0 : index
    %8 = vector.load %arg1[%c0_7, %c1, %c0_8, %c0_9] : memref<1x2x32x8xf32, #tpu.memory_space<vmem>>, vector<1x1x31x8xf32>
    %9 = vector.shape_cast %8 : vector<1x1x31x8xf32> to vector<31x8xf32>
    %10 = arith.truncf %9 : vector<31x8xf32> to vector<31x8xbf16>
    %c1_10 = arith.constant 1 : index
    %c0_11 = arith.constant 0 : index
    %c0_12 = arith.constant 0 : index
    %11 = vector.load %arg2[%c1_10, %c0_11, %c0_12] : memref<3x8x16xbf16, #tpu.memory_space<vmem>>, vector<1x8x16xbf16>
    %12 = vector.shape_cast %11 : vector<1x8x16xbf16> to vector<8x16xbf16>
    %cst_13 = arith.constant dense<0.000000e+00> : vector<31x16xf32>
    %13 = tpu.matmul %10, %12, %cst_13 {dimension_numbers = #tpu.dot_dimension_numbers<[1], [0], [0], [1], [0, 0, 1, 1], [], []>} : vector<31x8xbf16>, vector<8x16xbf16>, vector<31x16xf32> -> vector<31x16xf32>
    %14 = arith.addf %7, %13 : vector<31x16xf32>
    %c0_14 = arith.constant 0 : index
    %c0_15 = arith.constant 0 : index
    %c1_16 = arith.constant 1 : index
    %c0_17 = arith.constant 0 : index
    %15 = vector.load %arg1[%c0_14, %c0_15, %c1_16, %c0_17] : memref<1x2x32x8xf32, #tpu.memory_space<vmem>>, vector<1x1x31x8xf32>
    %16 = vector.shape_cast %15 : vector<1x1x31x8xf32> to vector<31x8xf32>
    %17 = arith.truncf %16 : vector<31x8xf32> to vector<31x8xbf16>
    %c2 = arith.constant 2 : index
    %c0_18 = arith.constant 0 : index
    %c0_19 = arith.constant 0 : index
    %18 = vector.load %arg2[%c2, %c0_18, %c0_19] : memref<3x8x16xbf16, #tpu.memory_space<vmem>>, vector<1x8x16xbf16>
    %19 = vector.shape_cast %18 : vector<1x8x16xbf16> to vector<8x16xbf16>
    %cst_20 = arith.constant dense<0.000000e+00> : vector<31x16xf32>
    %20 = tpu.matmul %17, %19, %cst_20 {dimension_numbers = #tpu.dot_dimension_numbers<[1], [0], [0], [1], [0, 0, 1, 1], [], []>} : vector<31x8xbf16>, vector<8x16xbf16>, vector<31x16xf32> -> vector<31x16xf32>
    %21 = arith.addf %14, %20 : vector<31x16xf32>
    %c0_21 = arith.constant 0 : index
    %c0_22 = arith.constant 0 : index
    %22 = vector.load %arg3[%c0_21, %c0_22] : memref<1x16xf32, #tpu.memory_space<vmem>>, vector<1x16xf32>
    %23 = vector.broadcast %22 : vector<1x16xf32> to vector<31x16xf32>
    %24 = arith.addf %21, %23 : vector<31x16xf32>
    %cst_23 = arith.constant 5.000000e-01 : f32
    %25 = vector.broadcast %cst_23 : f32 to vector<31x16xf32>
    %26 = arith.mulf %25, %24 : vector<31x16xf32>
    %cst_24 = arith.constant 4.471500e-02 : f32
    %27 = vector.broadcast %cst_24 : f32 to vector<31x16xf32>
    %28 = arith.mulf %27, %24 : vector<31x16xf32>
    %29 = arith.mulf %28, %24 : vector<31x16xf32>
    %30 = arith.mulf %29, %24 : vector<31x16xf32>
    %31 = arith.addf %24, %30 : vector<31x16xf32>
    %cst_25 = arith.constant 0.797884583 : f32
    %32 = vector.broadcast %cst_25 : f32 to vector<31x16xf32>
    %33 = arith.mulf %32, %31 : vector<31x16xf32>
    %34 = math.tanh %33 : vector<31x16xf32>
    %cst_26 = arith.constant 1.000000e+00 : f32
    %35 = vector.broadcast %cst_26 : f32 to vector<31x16xf32>
    %36 = arith.addf %35, %34 : vector<31x16xf32>
    %37 = arith.mulf %26, %36 : vector<31x16xf32>
    %c0_27 = arith.constant 0 : index
    %c0_28 = arith.constant 0 : index
    %c0_29 = arith.constant 0 : index
    %38 = vector.load %arg4[%c0_27, %c0_28, %c0_29] : memref<1x31x16xf32, #tpu.memory_space<vmem>>, vector<1x31x16xf32>
    %39 = vector.shape_cast %38 : vector<1x31x16xf32> to vector<31x16xf32>
    %40 = vector.shape_cast %37 : vector<31x16xf32> to vector<1x31x16xf32>
    tpu.vector_store %arg4[%c0_27, %c0_28, %c0_29], %40 {strides = array<i32>} : memref<1x31x16xf32, #tpu.memory_space<vmem>>, vector<1x31x16xf32>,
    return
  }
  func.func @transform_0(%arg0: i32) -> (i32, i32, i32, i32) {
    %c0_i32 = arith.constant 0 : i32
    %c0_i32_0 = arith.constant 0 : i32
    %c0_i32_1 = arith.constant 0 : i32
    %c0_i32_2 = arith.constant 0 : i32
    return %arg0, %c0_i32, %c0_i32_0, %c0_i32_1 : i32, i32, i32, i32
  }
  func.func @transform_1(%arg0: i32) -> (i32, i32, i32) {
    %c0_i32 = arith.constant 0 : i32
    %c0_i32_0 = arith.constant 0 : i32
    %c0_i32_1 = arith.constant 0 : i32
    %c0_i32_2 = arith.constant 0 : i32
    return %c0_i32, %c0_i32_0, %c0_i32_1 : i32, i32, i32
  }
  func.func @transform_2(%arg0: i32) -> (i32, i32) {
    %c0_i32 = arith.constant 0 : i32
    %c0_i32_0 = arith.constant 0 : i32
    %c0_i32_1 = arith.constant 0 : i32
    return %c0_i32, %c0_i32_0 : i32, i32
  }
  func.func @transform_3(%arg0: i32) -> (i32, i32, i32) {
    %c0_i32 = arith.constant 0 : i32
    %c0_i32_0 = arith.constant 0 : i32
    %c0_i32_1 = arith.constant 0 : i32
    return %arg0, %c0_i32, %c0_i32_0 : i32, i32, i32
  }
}

module attributes {stable_mosaic.version = 11 : i64} {
  func.func @_ffn_block_kernel(%arg0: i32, %arg1: memref<1x15x32xf32, #tpu.memory_space<vmem>>, %arg2: memref<3x32x64xbf16, #tpu.memory_space<vmem>>, %arg3: memref<1x64xf32, #tpu.memory_space<vmem>>, %arg4: memref<3x64x32xbf16, #tpu.memory_space<vmem>>, %arg5: memref<1x32xf32, #tpu.memory_space<vmem>>, %arg6: memref<1x32xf32, #tpu.memory_space<vmem>>, %arg7: memref<1x32xf32, #tpu.memory_space<vmem>>, %arg8: memref<1x15x32xf32, #tpu.memory_space<vmem>>, %arg9: memref<17x32xf32, #tpu.memory_space<vmem>>, %arg10: memref<17x64xf32, #tpu.memory_space<vmem>>) attributes {dimension_semantics = [#tpu.dimension_semantics<parallel>], iteration_bounds = array<i64: 2>, scalar_prefetch = 0 : i64, scratch_operands = 2 : i64, tpu.core_type = #tpu.core_type<tc>, window_params = [{transform_indices = @transform_0, window_bounds = array<i64: 1, 15, 32>}, {pipeline_mode = #tpu.pipeline_mode<synchronous>, transform_indices = @transform_1, window_bounds = array<i64: 3, 32, 64>}, {pipeline_mode = #tpu.pipeline_mode<synchronous>, transform_indices = @transform_2, window_bounds = array<i64: 1, 64>}, {pipeline_mode = #tpu.pipeline_mode<synchronous>, transform_indices = @transform_3, window_bounds = array<i64: 3, 64, 32>}, {pipeline_mode = #tpu.pipeline_mode<synchronous>, transform_indices = @transform_4, window_bounds = array<i64: 1, 32>}, {pipeline_mode = #tpu.pipeline_mode<synchronous>, transform_indices = @transform_5, window_bounds = array<i64: 1, 32>}, {pipeline_mode = #tpu.pipeline_mode<synchronous>, transform_indices = @transform_6, window_bounds = array<i64: 1, 32>}, {transform_indices = @transform_7, window_bounds = array<i64: 1, 15, 32>}]} {
    %c0 = arith.constant 0 : index
    %c0_0 = arith.constant 0 : index
    %c0_1 = arith.constant 0 : index
    %0 = vector.load %arg1[%c0, %c0_0, %c0_1] : memref<1x15x32xf32, #tpu.memory_space<vmem>>, vector<1x15x32xf32>
    %1 = vector.shape_cast %0 : vector<1x15x32xf32> to vector<15x32xf32>
    %cst = arith.constant 0.000000e+00 : f32
    %2 = vector.broadcast %cst : f32 to vector<17x32xf32>
    %c0_2 = arith.constant 0 : index
    %c0_3 = arith.constant 0 : index
    %3 = vector.load %arg9[%c0_2, %c0_3] : memref<17x32xf32, #tpu.memory_space<vmem>>, vector<17x32xf32>
    tpu.vector_store %arg9[%c0_2, %c0_3], %2 {strides = array<i32>} : memref<17x32xf32, #tpu.memory_space<vmem>>, vector<17x32xf32>,
    %c1 = arith.constant 1 : index
    %c0_4 = arith.constant 0 : index
    %4 = vector.load %arg9[%c1, %c0_4] : memref<17x32xf32, #tpu.memory_space<vmem>>, vector<15x32xf32>
    tpu.vector_store %arg9[%c1, %c0_4], %1 {strides = array<i32>} : memref<17x32xf32, #tpu.memory_space<vmem>>, vector<15x32xf32>,
    %cst_5 = arith.constant 0.000000e+00 : f32
    %5 = vector.broadcast %cst_5 : f32 to vector<15x64xf32>
    %c0_6 = arith.constant 0 : index
    %c0_7 = arith.constant 0 : index
    %6 = vector.load %arg9[%c0_6, %c0_7] : memref<17x32xf32, #tpu.memory_space<vmem>>, vector<15x32xf32>
    %7 = arith.truncf %6 : vector<15x32xf32> to vector<15x32xbf16>
    %c0_8 = arith.constant 0 : index
    %c0_9 = arith.constant 0 : index
    %c0_10 = arith.constant 0 : index
    %8 = vector.load %arg2[%c0_8, %c0_9, %c0_10] : memref<3x32x64xbf16, #tpu.memory_space<vmem>>, vector<1x32x64xbf16>
    %9 = vector.shape_cast %8 : vector<1x32x64xbf16> to vector<32x64xbf16>
    %cst_11 = arith.constant dense<0.000000e+00> : vector<15x64xf32>
    %10 = tpu.matmul %7, %9, %cst_11 {dimension_numbers = #tpu.dot_dimension_numbers<[1], [0], [0], [1], [0, 0, 1, 1], [], []>} : vector<15x32xbf16>, vector<32x64xbf16>, vector<15x64xf32> -> vector<15x64xf32>
    %11 = arith.addf %5, %10 : vector<15x64xf32>
    %c1_12 = arith.constant 1 : index
    %c0_13 = arith.constant 0 : index
    %12 = vector.load %arg9[%c1_12, %c0_13] : memref<17x32xf32, #tpu.memory_space<vmem>>, vector<15x32xf32>
    %13 = arith.truncf %12 : vector<15x32xf32> to vector<15x32xbf16>
    %c1_14 = arith.constant 1 : index
    %c0_15 = arith.constant 0 : index
    %c0_16 = arith.constant 0 : index
    %14 = vector.load %arg2[%c1_14, %c0_15, %c0_16] : memref<3x32x64xbf16, #tpu.memory_space<vmem>>, vector<1x32x64xbf16>
    %15 = vector.shape_cast %14 : vector<1x32x64xbf16> to vector<32x64xbf16>
    %cst_17 = arith.constant dense<0.000000e+00> : vector<15x64xf32>
    %16 = tpu.matmul %13, %15, %cst_17 {dimension_numbers = #tpu.dot_dimension_numbers<[1], [0], [0], [1], [0, 0, 1, 1], [], []>} : vector<15x32xbf16>, vector<32x64xbf16>, vector<15x64xf32> -> vector<15x64xf32>
    %17 = arith.addf %11, %16 : vector<15x64xf32>
    %c2 = arith.constant 2 : index
    %c0_18 = arith.constant 0 : index
    %18 = vector.load %arg9[%c2, %c0_18] : memref<17x32xf32, #tpu.memory_space<vmem>>, vector<15x32xf32>
    %19 = arith.truncf %18 : vector<15x32xf32> to vector<15x32xbf16>
    %c2_19 = arith.constant 2 : index
    %c0_20 = arith.constant 0 : index
    %c0_21 = arith.constant 0 : index
    %20 = vector.load %arg2[%c2_19, %c0_20, %c0_21] : memref<3x32x64xbf16, #tpu.memory_space<vmem>>, vector<1x32x64xbf16>
    %21 = vector.shape_cast %20 : vector<1x32x64xbf16> to vector<32x64xbf16>
    %cst_22 = arith.constant dense<0.000000e+00> : vector<15x64xf32>
    %22 = tpu.matmul %19, %21, %cst_22 {dimension_numbers = #tpu.dot_dimension_numbers<[1], [0], [0], [1], [0, 0, 1, 1], [], []>} : vector<15x32xbf16>, vector<32x64xbf16>, vector<15x64xf32> -> vector<15x64xf32>
    %23 = arith.addf %17, %22 : vector<15x64xf32>
    %c0_23 = arith.constant 0 : index
    %c0_24 = arith.constant 0 : index
    %24 = vector.load %arg3[%c0_23, %c0_24] : memref<1x64xf32, #tpu.memory_space<vmem>>, vector<1x64xf32>
    %25 = vector.broadcast %24 : vector<1x64xf32> to vector<15x64xf32>
    %26 = arith.addf %23, %25 : vector<15x64xf32>
    %cst_25 = arith.constant 0.000000e+00 : f32
    %27 = vector.broadcast %cst_25 : f32 to vector<15x64xf32>
    %28 = arith.maximumf %26, %27 : vector<15x64xf32>
    %cst_26 = arith.constant 0.000000e+00 : f32
    %29 = vector.broadcast %cst_26 : f32 to vector<17x64xf32>
    %c0_27 = arith.constant 0 : index
    %c0_28 = arith.constant 0 : index
    %30 = vector.load %arg10[%c0_27, %c0_28] : memref<17x64xf32, #tpu.memory_space<vmem>>, vector<17x64xf32>
    tpu.vector_store %arg10[%c0_27, %c0_28], %29 {strides = array<i32>} : memref<17x64xf32, #tpu.memory_space<vmem>>, vector<17x64xf32>,
    %c1_29 = arith.constant 1 : index
    %c0_30 = arith.constant 0 : index
    %31 = vector.load %arg10[%c1_29, %c0_30] : memref<17x64xf32, #tpu.memory_space<vmem>>, vector<15x64xf32>
    tpu.vector_store %arg10[%c1_29, %c0_30], %28 {strides = array<i32>} : memref<17x64xf32, #tpu.memory_space<vmem>>, vector<15x64xf32>,
    %cst_31 = arith.constant 0.000000e+00 : f32
    %32 = vector.broadcast %cst_31 : f32 to vector<15x32xf32>
    %c0_32 = arith.constant 0 : index
    %c0_33 = arith.constant 0 : index
    %33 = vector.load %arg10[%c0_32, %c0_33] : memref<17x64xf32, #tpu.memory_space<vmem>>, vector<15x64xf32>
    %34 = arith.truncf %33 : vector<15x64xf32> to vector<15x64xbf16>
    %c0_34 = arith.constant 0 : index
    %c0_35 = arith.constant 0 : index
    %c0_36 = arith.constant 0 : index
    %35 = vector.load %arg4[%c0_34, %c0_35, %c0_36] : memref<3x64x32xbf16, #tpu.memory_space<vmem>>, vector<1x64x32xbf16>
    %36 = vector.shape_cast %35 : vector<1x64x32xbf16> to vector<64x32xbf16>
    %cst_37 = arith.constant dense<0.000000e+00> : vector<15x32xf32>
    %37 = tpu.matmul %34, %36, %cst_37 {dimension_numbers = #tpu.dot_dimension_numbers<[1], [0], [0], [1], [0, 0, 1, 1], [], []>} : vector<15x64xbf16>, vector<64x32xbf16>, vector<15x32xf32> -> vector<15x32xf32>
    %38 = arith.addf %32, %37 : vector<15x32xf32>
    %c1_38 = arith.constant 1 : index
    %c0_39 = arith.constant 0 : index
    %39 = vector.load %arg10[%c1_38, %c0_39] : memref<17x64xf32, #tpu.memory_space<vmem>>, vector<15x64xf32>
    %40 = arith.truncf %39 : vector<15x64xf32> to vector<15x64xbf16>
    %c1_40 = arith.constant 1 : index
    %c0_41 = arith.constant 0 : index
    %c0_42 = arith.constant 0 : index
    %41 = vector.load %arg4[%c1_40, %c0_41, %c0_42] : memref<3x64x32xbf16, #tpu.memory_space<vmem>>, vector<1x64x32xbf16>
    %42 = vector.shape_cast %41 : vector<1x64x32xbf16> to vector<64x32xbf16>
    %cst_43 = arith.constant dense<0.000000e+00> : vector<15x32xf32>
    %43 = tpu.matmul %40, %42, %cst_43 {dimension_numbers = #tpu.dot_dimension_numbers<[1], [0], [0], [1], [0, 0, 1, 1], [], []>} : vector<15x64xbf16>, vector<64x32xbf16>, vector<15x32xf32> -> vector<15x32xf32>
    %44 = arith.addf %38, %43 : vector<15x32xf32>
    %c2_44 = arith.constant 2 : index
    %c0_45 = arith.constant 0 : index
    %45 = vector.load %arg10[%c2_44, %c0_45] : memref<17x64xf32, #tpu.memory_space<vmem>>, vector<15x64xf32>
    %46 = arith.truncf %45 : vector<15x64xf32> to vector<15x64xbf16>
    %c2_46 = arith.constant 2 : index
    %c0_47 = arith.constant 0 : index
    %c0_48 = arith.constant 0 : index
    %47 = vector.load %arg4[%c2_46, %c0_47, %c0_48] : memref<3x64x32xbf16, #tpu.memory_space<vmem>>, vector<1x64x32xbf16>
    %48 = vector.shape_cast %47 : vector<1x64x32xbf16> to vector<64x32xbf16>
    %cst_49 = arith.constant dense<0.000000e+00> : vector<15x32xf32>
    %49 = tpu.matmul %46, %48, %cst_49 {dimension_numbers = #tpu.dot_dimension_numbers<[1], [0], [0], [1], [0, 0, 1, 1], [], []>} : vector<15x64xbf16>, vector<64x32xbf16>, vector<15x32xf32> -> vector<15x32xf32>
    %50 = arith.addf %44, %49 : vector<15x32xf32>
    %51 = arith.addf %1, %50 : vector<15x32xf32>
    %c0_50 = arith.constant 0 : index
    %c0_51 = arith.constant 0 : index
    %52 = vector.load %arg5[%c0_50, %c0_51] : memref<1x32xf32, #tpu.memory_space<vmem>>, vector<1x32xf32>
    %53 = vector.broadcast %52 : vector<1x32xf32> to vector<15x32xf32>
    %54 = arith.addf %51, %53 : vector<15x32xf32>
    %cst_52 = arith.constant dense<0.000000e+00> : vector<15xf32>
    %55 = vector.multi_reduction <add>, %54, %cst_52 [1] : vector<15x32xf32> to vector<15xf32>
    %56 = vector.shape_cast %55 : vector<15xf32> to vector<15x1xf32>
    %cst_53 = arith.constant 3.200000e+01 : f32
    %57 = vector.broadcast %cst_53 : f32 to vector<15x1xf32>
    %58 = arith.divf %56, %57 : vector<15x1xf32>
    %59 = vector.broadcast %58 : vector<15x1xf32> to vector<15x32xf32>
    %60 = arith.subf %54, %59 : vector<15x32xf32>
    %61 = arith.mulf %60, %60 : vector<15x32xf32>
    %cst_54 = arith.constant dense<0.000000e+00> : vector<15xf32>
    %62 = vector.multi_reduction <add>, %61, %cst_54 [1] : vector<15x32xf32> to vector<15xf32>
    %63 = vector.shape_cast %62 : vector<15xf32> to vector<15x1xf32>
    %cst_55 = arith.constant 3.200000e+01 : f32
    %64 = vector.broadcast %cst_55 : f32 to vector<15x1xf32>
    %65 = arith.divf %63, %64 : vector<15x1xf32>
    %cst_56 = arith.constant 9.99999974E-6 : f32
    %66 = vector.broadcast %cst_56 : f32 to vector<15x1xf32>
    %67 = arith.addf %65, %66 : vector<15x1xf32>
    %68 = math.rsqrt %67 : vector<15x1xf32>
    %69 = vector.broadcast %68 : vector<15x1xf32> to vector<15x32xf32>
    %70 = arith.mulf %60, %69 : vector<15x32xf32>
    %c0_57 = arith.constant 0 : index
    %c0_58 = arith.constant 0 : index
    %71 = vector.load %arg6[%c0_57, %c0_58] : memref<1x32xf32, #tpu.memory_space<vmem>>, vector<1x32xf32>
    %72 = vector.broadcast %71 : vector<1x32xf32> to vector<15x32xf32>
    %73 = arith.mulf %70, %72 : vector<15x32xf32>
    %c0_59 = arith.constant 0 : index
    %c0_60 = arith.constant 0 : index
    %74 = vector.load %arg7[%c0_59, %c0_60] : memref<1x32xf32, #tpu.memory_space<vmem>>, vector<1x32xf32>
    %75 = vector.broadcast %74 : vector<1x32xf32> to vector<15x32xf32>
    %76 = arith.addf %73, %75 : vector<15x32xf32>
    %c0_61 = arith.constant 0 : index
    %c0_62 = arith.constant 0 : index
    %c0_63 = arith.constant 0 : index
    %77 = vector.load %arg8[%c0_61, %c0_62, %c0_63] : memref<1x15x32xf32, #tpu.memory_space<vmem>>, vector<1x15x32xf32>
    %78 = vector.shape_cast %77 : vector<1x15x32xf32> to vector<15x32xf32>
    %79 = vector.shape_cast %76 : vector<15x32xf32> to vector<1x15x32xf32>
    tpu.vector_store %arg8[%c0_61, %c0_62, %c0_63], %79 {strides = array<i32>} : memref<1x15x32xf32, #tpu.memory_space<vmem>>, vector<1x15x32xf32>,
    return
  }
  func.func @transform_0(%arg0: i32) -> (i32, i32, i32) {
    %c0_i32 = arith.constant 0 : i32
    %c0_i32_0 = arith.constant 0 : i32
    %c0_i32_1 = arith.constant 0 : i32
    return %arg0, %c0_i32, %c0_i32_0 : i32, i32, i32
  }
  func.func @transform_1(%arg0: i32) -> (i32, i32, i32) {
    %c0_i32 = arith.constant 0 : i32
    %c0_i32_0 = arith.constant 0 : i32
    %c0_i32_1 = arith.constant 0 : i32
    %c0_i32_2 = arith.constant 0 : i32
    return %c0_i32, %c0_i32_0, %c0_i32_1 : i32, i32, i32
  }
  func.func @transform_2(%arg0: i32) -> (i32, i32) {
    %c0_i32 = arith.constant 0 : i32
    %c0_i32_0 = arith.constant 0 : i32
    %c0_i32_1 = arith.constant 0 : i32
    return %c0_i32, %c0_i32_0 : i32, i32
  }
  func.func @transform_3(%arg0: i32) -> (i32, i32, i32) {
    %c0_i32 = arith.constant 0 : i32
    %c0_i32_0 = arith.constant 0 : i32
    %c0_i32_1 = arith.constant 0 : i32
    %c0_i32_2 = arith.constant 0 : i32
    return %c0_i32, %c0_i32_0, %c0_i32_1 : i32, i32, i32
  }
  func.func @transform_4(%arg0: i32) -> (i32, i32) {
    %c0_i32 = arith.constant 0 : i32
    %c0_i32_0 = arith.constant 0 : i32
    %c0_i32_1 = arith.constant 0 : i32
    return %c0_i32, %c0_i32_0 : i32, i32
  }
  func.func @transform_5(%arg0: i32) -> (i32, i32) {
    %c0_i32 = arith.constant 0 : i32
    %c0_i32_0 = arith.constant 0 : i32
    %c0_i32_1 = arith.constant 0 : i32
    return %c0_i32, %c0_i32_0 : i32, i32
  }
  func.func @transform_6(%arg0: i32) -> (i32, i32) {
    %c0_i32 = arith.constant 0 : i32
    %c0_i32_0 = arith.constant 0 : i32
    %c0_i32_1 = arith.constant 0 : i32
    return %c0_i32, %c0_i32_0 : i32, i32
  }
  func.func @transform_7(%arg0: i32) -> (i32, i32, i32) {
    %c0_i32 = arith.constant 0 : i32
    %c0_i32_0 = arith.constant 0 : i32
    %c0_i32_1 = arith.constant 0 : i32
    return %arg0, %c0_i32, %c0_i32_0 : i32, i32, i32
  }
}

module attributes {stable_mosaic.version = 11 : i64} {
  func.func @_attn_block_kernel(%arg0: i32, %arg1: memref<1x6x32xf32, #tpu.memory_space<vmem>>, %arg2: memref<32x96xbf16, #tpu.memory_space<vmem>>, %arg3: memref<1x96xf32, #tpu.memory_space<vmem>>, %arg4: memref<32x32xbf16, #tpu.memory_space<vmem>>, %arg5: memref<1x32xf32, #tpu.memory_space<vmem>>, %arg6: memref<1x32xf32, #tpu.memory_space<vmem>>, %arg7: memref<1x32xf32, #tpu.memory_space<vmem>>, %arg8: memref<1x6x32xf32, #tpu.memory_space<vmem>>) attributes {dimension_semantics = [#tpu.dimension_semantics<parallel>], iteration_bounds = array<i64: 2>, scalar_prefetch = 0 : i64, scratch_operands = 0 : i64, tpu.core_type = #tpu.core_type<tc>, window_params = [{transform_indices = @transform_0, window_bounds = array<i64: 1, 6, 32>}, {pipeline_mode = #tpu.pipeline_mode<synchronous>, transform_indices = @transform_1, window_bounds = array<i64: 32, 96>}, {pipeline_mode = #tpu.pipeline_mode<synchronous>, transform_indices = @transform_2, window_bounds = array<i64: 1, 96>}, {pipeline_mode = #tpu.pipeline_mode<synchronous>, transform_indices = @transform_3, window_bounds = array<i64: 32, 32>}, {pipeline_mode = #tpu.pipeline_mode<synchronous>, transform_indices = @transform_4, window_bounds = array<i64: 1, 32>}, {pipeline_mode = #tpu.pipeline_mode<synchronous>, transform_indices = @transform_5, window_bounds = array<i64: 1, 32>}, {pipeline_mode = #tpu.pipeline_mode<synchronous>, transform_indices = @transform_6, window_bounds = array<i64: 1, 32>}, {transform_indices = @transform_7, window_bounds = array<i64: 1, 6, 32>}]} {
    %c0 = arith.constant 0 : index
    %c0_0 = arith.constant 0 : index
    %c0_1 = arith.constant 0 : index
    %0 = vector.load %arg1[%c0, %c0_0, %c0_1] : memref<1x6x32xf32, #tpu.memory_space<vmem>>, vector<1x6x32xf32>
    %1 = vector.shape_cast %0 : vector<1x6x32xf32> to vector<6x32xf32>
    %2 = arith.truncf %1 : vector<6x32xf32> to vector<6x32xbf16>
    %c0_2 = arith.constant 0 : index
    %c0_3 = arith.constant 0 : index
    %3 = vector.load %arg2[%c0_2, %c0_3] : memref<32x96xbf16, #tpu.memory_space<vmem>>, vector<32x96xbf16>
    %cst = arith.constant dense<0.000000e+00> : vector<6x96xf32>
    %4 = tpu.matmul %2, %3, %cst {dimension_numbers = #tpu.dot_dimension_numbers<[1], [0], [0], [1], [0, 0, 1, 1], [], []>} : vector<6x32xbf16>, vector<32x96xbf16>, vector<6x96xf32> -> vector<6x96xf32>
    %c0_4 = arith.constant 0 : index
    %c0_5 = arith.constant 0 : index
    %5 = vector.load %arg3[%c0_4, %c0_5] : memref<1x96xf32, #tpu.memory_space<vmem>>, vector<1x96xf32>
    %6 = vector.broadcast %5 : vector<1x96xf32> to vector<6x96xf32>
    %7 = arith.addf %4, %6 : vector<6x96xf32>
    %8 = vector.extract_strided_slice %7 {offsets = [0, 0], sizes = [6, 32], strides = [1, 1]} : vector<6x96xf32> to vector<6x32xf32>
    %9 = vector.extract_strided_slice %7 {offsets = [0, 32], sizes = [6, 32], strides = [1, 1]} : vector<6x96xf32> to vector<6x32xf32>
    %10 = vector.extract_strided_slice %7 {offsets = [0, 64], sizes = [6, 32], strides = [1, 1]} : vector<6x96xf32> to vector<6x32xf32>
    %11 = vector.extract_strided_slice %8 {offsets = [0, 0], sizes = [6, 8], strides = [1, 1]} : vector<6x32xf32> to vector<6x8xf32>
    %12 = arith.truncf %11 : vector<6x8xf32> to vector<6x8xbf16>
    %13 = vector.extract_strided_slice %9 {offsets = [0, 0], sizes = [6, 8], strides = [1, 1]} : vector<6x32xf32> to vector<6x8xf32>
    %14 = arith.truncf %13 : vector<6x8xf32> to vector<6x8xbf16>
    %15 = vector.extract_strided_slice %10 {offsets = [0, 0], sizes = [6, 8], strides = [1, 1]} : vector<6x32xf32> to vector<6x8xf32>
    %16 = arith.truncf %15 : vector<6x8xf32> to vector<6x8xbf16>
    %cst_6 = arith.constant dense<0.000000e+00> : vector<6x6xf32>
    %17 = tpu.matmul %12, %14, %cst_6 {dimension_numbers = #tpu.dot_dimension_numbers<[1], [1], [0], [0], [0, 0, 1, 0], [], []>} : vector<6x8xbf16>, vector<6x8xbf16>, vector<6x6xf32> -> vector<6x6xf32>
    %cst_7 = arith.constant 0.353553385 : f32
    %18 = vector.broadcast %cst_7 : f32 to vector<6x6xf32>
    %19 = arith.mulf %17, %18 : vector<6x6xf32>
    %cst_8 = arith.constant dense<0xFF800000> : vector<6xf32>
    %20 = vector.multi_reduction <maximumf>, %19, %cst_8 [1] : vector<6x6xf32> to vector<6xf32>
    %21 = vector.shape_cast %20 : vector<6xf32> to vector<6x1xf32>
    %22 = vector.broadcast %21 : vector<6x1xf32> to vector<6x6xf32>
    %23 = arith.subf %19, %22 : vector<6x6xf32>
    %24 = math.exp %23 : vector<6x6xf32>
    %cst_9 = arith.constant dense<0.000000e+00> : vector<6xf32>
    %25 = vector.multi_reduction <add>, %24, %cst_9 [1] : vector<6x6xf32> to vector<6xf32>
    %26 = vector.shape_cast %25 : vector<6xf32> to vector<6x1xf32>
    %27 = tpu.reciprocal %26 {approx = true} : vector<6x1xf32> -> vector<6x1xf32>
    %28 = vector.broadcast %27 : vector<6x1xf32> to vector<6x6xf32>
    %29 = arith.mulf %24, %28 : vector<6x6xf32>
    %30 = arith.truncf %29 : vector<6x6xf32> to vector<6x6xbf16>
    %cst_10 = arith.constant dense<0.000000e+00> : vector<6x8xf32>
    %31 = tpu.matmul %30, %16, %cst_10 {dimension_numbers = #tpu.dot_dimension_numbers<[1], [0], [0], [1], [0, 0, 1, 1], [], []>} : vector<6x6xbf16>, vector<6x8xbf16>, vector<6x8xf32> -> vector<6x8xf32>
    %32 = vector.extract_strided_slice %8 {offsets = [0, 8], sizes = [6, 8], strides = [1, 1]} : vector<6x32xf32> to vector<6x8xf32>
    %33 = arith.truncf %32 : vector<6x8xf32> to vector<6x8xbf16>
    %34 = vector.extract_strided_slice %9 {offsets = [0, 8], sizes = [6, 8], strides = [1, 1]} : vector<6x32xf32> to vector<6x8xf32>
    %35 = arith.truncf %34 : vector<6x8xf32> to vector<6x8xbf16>
    %36 = vector.extract_strided_slice %10 {offsets = [0, 8], sizes = [6, 8], strides = [1, 1]} : vector<6x32xf32> to vector<6x8xf32>
    %37 = arith.truncf %36 : vector<6x8xf32> to vector<6x8xbf16>
    %cst_11 = arith.constant dense<0.000000e+00> : vector<6x6xf32>
    %38 = tpu.matmul %33, %35, %cst_11 {dimension_numbers = #tpu.dot_dimension_numbers<[1], [1], [0], [0], [0, 0, 1, 0], [], []>} : vector<6x8xbf16>, vector<6x8xbf16>, vector<6x6xf32> -> vector<6x6xf32>
    %cst_12 = arith.constant 0.353553385 : f32
    %39 = vector.broadcast %cst_12 : f32 to vector<6x6xf32>
    %40 = arith.mulf %38, %39 : vector<6x6xf32>
    %cst_13 = arith.constant dense<0xFF800000> : vector<6xf32>
    %41 = vector.multi_reduction <maximumf>, %40, %cst_13 [1] : vector<6x6xf32> to vector<6xf32>
    %42 = vector.shape_cast %41 : vector<6xf32> to vector<6x1xf32>
    %43 = vector.broadcast %42 : vector<6x1xf32> to vector<6x6xf32>
    %44 = arith.subf %40, %43 : vector<6x6xf32>
    %45 = math.exp %44 : vector<6x6xf32>
    %cst_14 = arith.constant dense<0.000000e+00> : vector<6xf32>
    %46 = vector.multi_reduction <add>, %45, %cst_14 [1] : vector<6x6xf32> to vector<6xf32>
    %47 = vector.shape_cast %46 : vector<6xf32> to vector<6x1xf32>
    %48 = tpu.reciprocal %47 {approx = true} : vector<6x1xf32> -> vector<6x1xf32>
    %49 = vector.broadcast %48 : vector<6x1xf32> to vector<6x6xf32>
    %50 = arith.mulf %45, %49 : vector<6x6xf32>
    %51 = arith.truncf %50 : vector<6x6xf32> to vector<6x6xbf16>
    %cst_15 = arith.constant dense<0.000000e+00> : vector<6x8xf32>
    %52 = tpu.matmul %51, %37, %cst_15 {dimension_numbers = #tpu.dot_dimension_numbers<[1], [0], [0], [1], [0, 0, 1, 1], [], []>} : vector<6x6xbf16>, vector<6x8xbf16>, vector<6x8xf32> -> vector<6x8xf32>
    %53 = vector.extract_strided_slice %8 {offsets = [0, 16], sizes = [6, 8], strides = [1, 1]} : vector<6x32xf32> to vector<6x8xf32>
    %54 = arith.truncf %53 : vector<6x8xf32> to vector<6x8xbf16>
    %55 = vector.extract_strided_slice %9 {offsets = [0, 16], sizes = [6, 8], strides = [1, 1]} : vector<6x32xf32> to vector<6x8xf32>
    %56 = arith.truncf %55 : vector<6x8xf32> to vector<6x8xbf16>
    %57 = vector.extract_strided_slice %10 {offsets = [0, 16], sizes = [6, 8], strides = [1, 1]} : vector<6x32xf32> to vector<6x8xf32>
    %58 = arith.truncf %57 : vector<6x8xf32> to vector<6x8xbf16>
    %cst_16 = arith.constant dense<0.000000e+00> : vector<6x6xf32>
    %59 = tpu.matmul %54, %56, %cst_16 {dimension_numbers = #tpu.dot_dimension_numbers<[1], [1], [0], [0], [0, 0, 1, 0], [], []>} : vector<6x8xbf16>, vector<6x8xbf16>, vector<6x6xf32> -> vector<6x6xf32>
    %cst_17 = arith.constant 0.353553385 : f32
    %60 = vector.broadcast %cst_17 : f32 to vector<6x6xf32>
    %61 = arith.mulf %59, %60 : vector<6x6xf32>
    %cst_18 = arith.constant dense<0xFF800000> : vector<6xf32>
    %62 = vector.multi_reduction <maximumf>, %61, %cst_18 [1] : vector<6x6xf32> to vector<6xf32>
    %63 = vector.shape_cast %62 : vector<6xf32> to vector<6x1xf32>
    %64 = vector.broadcast %63 : vector<6x1xf32> to vector<6x6xf32>
    %65 = arith.subf %61, %64 : vector<6x6xf32>
    %66 = math.exp %65 : vector<6x6xf32>
    %cst_19 = arith.constant dense<0.000000e+00> : vector<6xf32>
    %67 = vector.multi_reduction <add>, %66, %cst_19 [1] : vector<6x6xf32> to vector<6xf32>
    %68 = vector.shape_cast %67 : vector<6xf32> to vector<6x1xf32>
    %69 = tpu.reciprocal %68 {approx = true} : vector<6x1xf32> -> vector<6x1xf32>
    %70 = vector.broadcast %69 : vector<6x1xf32> to vector<6x6xf32>
    %71 = arith.mulf %66, %70 : vector<6x6xf32>
    %72 = arith.truncf %71 : vector<6x6xf32> to vector<6x6xbf16>
    %cst_20 = arith.constant dense<0.000000e+00> : vector<6x8xf32>
    %73 = tpu.matmul %72, %58, %cst_20 {dimension_numbers = #tpu.dot_dimension_numbers<[1], [0], [0], [1], [0, 0, 1, 1], [], []>} : vector<6x6xbf16>, vector<6x8xbf16>, vector<6x8xf32> -> vector<6x8xf32>
    %74 = vector.extract_strided_slice %8 {offsets = [0, 24], sizes = [6, 8], strides = [1, 1]} : vector<6x32xf32> to vector<6x8xf32>
    %75 = arith.truncf %74 : vector<6x8xf32> to vector<6x8xbf16>
    %76 = vector.extract_strided_slice %9 {offsets = [0, 24], sizes = [6, 8], strides = [1, 1]} : vector<6x32xf32> to vector<6x8xf32>
    %77 = arith.truncf %76 : vector<6x8xf32> to vector<6x8xbf16>
    %78 = vector.extract_strided_slice %10 {offsets = [0, 24], sizes = [6, 8], strides = [1, 1]} : vector<6x32xf32> to vector<6x8xf32>
    %79 = arith.truncf %78 : vector<6x8xf32> to vector<6x8xbf16>
    %cst_21 = arith.constant dense<0.000000e+00> : vector<6x6xf32>
    %80 = tpu.matmul %75, %77, %cst_21 {dimension_numbers = #tpu.dot_dimension_numbers<[1], [1], [0], [0], [0, 0, 1, 0], [], []>} : vector<6x8xbf16>, vector<6x8xbf16>, vector<6x6xf32> -> vector<6x6xf32>
    %cst_22 = arith.constant 0.353553385 : f32
    %81 = vector.broadcast %cst_22 : f32 to vector<6x6xf32>
    %82 = arith.mulf %80, %81 : vector<6x6xf32>
    %cst_23 = arith.constant dense<0xFF800000> : vector<6xf32>
    %83 = vector.multi_reduction <maximumf>, %82, %cst_23 [1] : vector<6x6xf32> to vector<6xf32>
    %84 = vector.shape_cast %83 : vector<6xf32> to vector<6x1xf32>
    %85 = vector.broadcast %84 : vector<6x1xf32> to vector<6x6xf32>
    %86 = arith.subf %82, %85 : vector<6x6xf32>
    %87 = math.exp %86 : vector<6x6xf32>
    %cst_24 = arith.constant dense<0.000000e+00> : vector<6xf32>
    %88 = vector.multi_reduction <add>, %87, %cst_24 [1] : vector<6x6xf32> to vector<6xf32>
    %89 = vector.shape_cast %88 : vector<6xf32> to vector<6x1xf32>
    %90 = tpu.reciprocal %89 {approx = true} : vector<6x1xf32> -> vector<6x1xf32>
    %91 = vector.broadcast %90 : vector<6x1xf32> to vector<6x6xf32>
    %92 = arith.mulf %87, %91 : vector<6x6xf32>
    %93 = arith.truncf %92 : vector<6x6xf32> to vector<6x6xbf16>
    %cst_25 = arith.constant dense<0.000000e+00> : vector<6x8xf32>
    %94 = tpu.matmul %93, %79, %cst_25 {dimension_numbers = #tpu.dot_dimension_numbers<[1], [0], [0], [1], [0, 0, 1, 1], [], []>} : vector<6x6xbf16>, vector<6x8xbf16>, vector<6x8xf32> -> vector<6x8xf32>
    %95 = tpu.concatenate %31, %52, %73, %94 in 1 : vector<6x8xf32>, vector<6x8xf32>, vector<6x8xf32>, vector<6x8xf32> -> vector<6x32xf32>
    %96 = arith.truncf %95 : vector<6x32xf32> to vector<6x32xbf16>
    %c0_26 = arith.constant 0 : index
    %c0_27 = arith.constant 0 : index
    %97 = vector.load %arg4[%c0_26, %c0_27] : memref<32x32xbf16, #tpu.memory_space<vmem>>, vector<32x32xbf16>
    %cst_28 = arith.constant dense<0.000000e+00> : vector<6x32xf32>
    %98 = tpu.matmul %96, %97, %cst_28 {dimension_numbers = #tpu.dot_dimension_numbers<[1], [0], [0], [1], [0, 0, 1, 1], [], []>} : vector<6x32xbf16>, vector<32x32xbf16>, vector<6x32xf32> -> vector<6x32xf32>
    %c0_29 = arith.constant 0 : index
    %c0_30 = arith.constant 0 : index
    %99 = vector.load %arg5[%c0_29, %c0_30] : memref<1x32xf32, #tpu.memory_space<vmem>>, vector<1x32xf32>
    %100 = vector.broadcast %99 : vector<1x32xf32> to vector<6x32xf32>
    %101 = arith.addf %98, %100 : vector<6x32xf32>
    %102 = arith.addf %1, %101 : vector<6x32xf32>
    %cst_31 = arith.constant dense<0.000000e+00> : vector<6xf32>
    %103 = vector.multi_reduction <add>, %102, %cst_31 [1] : vector<6x32xf32> to vector<6xf32>
    %104 = vector.shape_cast %103 : vector<6xf32> to vector<6x1xf32>
    %cst_32 = arith.constant 3.200000e+01 : f32
    %105 = vector.broadcast %cst_32 : f32 to vector<6x1xf32>
    %106 = arith.divf %104, %105 : vector<6x1xf32>
    %107 = vector.broadcast %106 : vector<6x1xf32> to vector<6x32xf32>
    %108 = arith.subf %102, %107 : vector<6x32xf32>
    %109 = arith.mulf %108, %108 : vector<6x32xf32>
    %cst_33 = arith.constant dense<0.000000e+00> : vector<6xf32>
    %110 = vector.multi_reduction <add>, %109, %cst_33 [1] : vector<6x32xf32> to vector<6xf32>
    %111 = vector.shape_cast %110 : vector<6xf32> to vector<6x1xf32>
    %cst_34 = arith.constant 3.200000e+01 : f32
    %112 = vector.broadcast %cst_34 : f32 to vector<6x1xf32>
    %113 = arith.divf %111, %112 : vector<6x1xf32>
    %cst_35 = arith.constant 9.99999974E-6 : f32
    %114 = vector.broadcast %cst_35 : f32 to vector<6x1xf32>
    %115 = arith.addf %113, %114 : vector<6x1xf32>
    %116 = math.rsqrt %115 : vector<6x1xf32>
    %117 = vector.broadcast %116 : vector<6x1xf32> to vector<6x32xf32>
    %118 = arith.mulf %108, %117 : vector<6x32xf32>
    %c0_36 = arith.constant 0 : index
    %c0_37 = arith.constant 0 : index
    %119 = vector.load %arg6[%c0_36, %c0_37] : memref<1x32xf32, #tpu.memory_space<vmem>>, vector<1x32xf32>
    %120 = vector.broadcast %119 : vector<1x32xf32> to vector<6x32xf32>
    %121 = arith.mulf %118, %120 : vector<6x32xf32>
    %c0_38 = arith.constant 0 : index
    %c0_39 = arith.constant 0 : index
    %122 = vector.load %arg7[%c0_38, %c0_39] : memref<1x32xf32, #tpu.memory_space<vmem>>, vector<1x32xf32>
    %123 = vector.broadcast %122 : vector<1x32xf32> to vector<6x32xf32>
    %124 = arith.addf %121, %123 : vector<6x32xf32>
    %c0_40 = arith.constant 0 : index
    %c0_41 = arith.constant 0 : index
    %c0_42 = arith.constant 0 : index
    %125 = vector.load %arg8[%c0_40, %c0_41, %c0_42] : memref<1x6x32xf32, #tpu.memory_space<vmem>>, vector<1x6x32xf32>
    %126 = vector.shape_cast %125 : vector<1x6x32xf32> to vector<6x32xf32>
    %127 = vector.shape_cast %124 : vector<6x32xf32> to vector<1x6x32xf32>
    tpu.vector_store %arg8[%c0_40, %c0_41, %c0_42], %127 {strides = array<i32>} : memref<1x6x32xf32, #tpu.memory_space<vmem>>, vector<1x6x32xf32>,
    return
  }
  func.func @transform_0(%arg0: i32) -> (i32, i32, i32) {
    %c0_i32 = arith.constant 0 : i32
    %c0_i32_0 = arith.constant 0 : i32
    %c0_i32_1 = arith.constant 0 : i32
    return %arg0, %c0_i32, %c0_i32_0 : i32, i32, i32
  }
  func.func @transform_1(%arg0: i32) -> (i32, i32) {
    %c0_i32 = arith.constant 0 : i32
    %c0_i32_0 = arith.constant 0 : i32
    %c0_i32_1 = arith.constant 0 : i32
    return %c0_i32, %c0_i32_0 : i32, i32
  }
  func.func @transform_2(%arg0: i32) -> (i32, i32) {
    %c0_i32 = arith.constant 0 : i32
    %c0_i32_0 = arith.constant 0 : i32
    %c0_i32_1 = arith.constant 0 : i32
    return %c0_i32, %c0_i32_0 : i32, i32
  }
  func.func @transform_3(%arg0: i32) -> (i32, i32) {
    %c0_i32 = arith.constant 0 : i32
    %c0_i32_0 = arith.constant 0 : i32
    %c0_i32_1 = arith.constant 0 : i32
    return %c0_i32, %c0_i32_0 : i32, i32
  }
  func.func @transform_4(%arg0: i32) -> (i32, i32) {
    %c0_i32 = arith.constant 0 : i32
    %c0_i32_0 = arith.constant 0 : i32
    %c0_i32_1 = arith.constant 0 : i32
    return %c0_i32, %c0_i32_0 : i32, i32
  }
  func.func @transform_5(%arg0: i32) -> (i32, i32) {
    %c0_i32 = arith.constant 0 : i32
    %c0_i32_0 = arith.constant 0 : i32
    %c0_i32_1 = arith.constant 0 : i32
    return %c0_i32, %c0_i32_0 : i32, i32
  }
  func.func @transform_6(%arg0: i32) -> (i32, i32) {
    %c0_i32 = arith.constant 0 : i32
    %c0_i32_0 = arith.constant 0 : i32
    %c0_i32_1 = arith.constant 0 : i32
    return %c0_i32, %c0_i32_0 : i32, i32
  }
  func.func @transform_7(%arg0: i32) -> (i32, i32, i32) {
    %c0_i32 = arith.constant 0 : i32
    %c0_i32_0 = arith.constant 0 : i32
    %c0_i32_1 = arith.constant 0 : i32
    return %arg0, %c0_i32, %c0_i32_0 : i32, i32, i32
  }
}

module attributes {stable_mosaic.version = 11 : i64} {
  func.func @_attn_block_kernel(%arg0: i32, %arg1: memref<1x6x32xf32, #tpu.memory_space<vmem>>, %arg2: memref<1x15x32xf32, #tpu.memory_space<vmem>>, %arg3: memref<32x32xbf16, #tpu.memory_space<vmem>>, %arg4: memref<1x32xf32, #tpu.memory_space<vmem>>, %arg5: memref<32x64xbf16, #tpu.memory_space<vmem>>, %arg6: memref<1x64xf32, #tpu.memory_space<vmem>>, %arg7: memref<32x32xbf16, #tpu.memory_space<vmem>>, %arg8: memref<1x32xf32, #tpu.memory_space<vmem>>, %arg9: memref<1x32xf32, #tpu.memory_space<vmem>>, %arg10: memref<1x32xf32, #tpu.memory_space<vmem>>, %arg11: memref<1x6x32xf32, #tpu.memory_space<vmem>>) attributes {dimension_semantics = [#tpu.dimension_semantics<parallel>], iteration_bounds = array<i64: 2>, scalar_prefetch = 0 : i64, scratch_operands = 0 : i64, tpu.core_type = #tpu.core_type<tc>, window_params = [{transform_indices = @transform_0, window_bounds = array<i64: 1, 6, 32>}, {transform_indices = @transform_1, window_bounds = array<i64: 1, 15, 32>}, {pipeline_mode = #tpu.pipeline_mode<synchronous>, transform_indices = @transform_2, window_bounds = array<i64: 32, 32>}, {pipeline_mode = #tpu.pipeline_mode<synchronous>, transform_indices = @transform_3, window_bounds = array<i64: 1, 32>}, {pipeline_mode = #tpu.pipeline_mode<synchronous>, transform_indices = @transform_4, window_bounds = array<i64: 32, 64>}, {pipeline_mode = #tpu.pipeline_mode<synchronous>, transform_indices = @transform_5, window_bounds = array<i64: 1, 64>}, {pipeline_mode = #tpu.pipeline_mode<synchronous>, transform_indices = @transform_6, window_bounds = array<i64: 32, 32>}, {pipeline_mode = #tpu.pipeline_mode<synchronous>, transform_indices = @transform_7, window_bounds = array<i64: 1, 32>}, {pipeline_mode = #tpu.pipeline_mode<synchronous>, transform_indices = @transform_8, window_bounds = array<i64: 1, 32>}, {pipeline_mode = #tpu.pipeline_mode<synchronous>, transform_indices = @transform_9, window_bounds = array<i64: 1, 32>}, {transform_indices = @transform_10, window_bounds = array<i64: 1, 6, 32>}]} {
    %c0 = arith.constant 0 : index
    %c0_0 = arith.constant 0 : index
    %c0_1 = arith.constant 0 : index
    %0 = vector.load %arg1[%c0, %c0_0, %c0_1] : memref<1x6x32xf32, #tpu.memory_space<vmem>>, vector<1x6x32xf32>
    %1 = vector.shape_cast %0 : vector<1x6x32xf32> to vector<6x32xf32>
    %c0_2 = arith.constant 0 : index
    %c0_3 = arith.constant 0 : index
    %c0_4 = arith.constant 0 : index
    %2 = vector.load %arg2[%c0_2, %c0_3, %c0_4] : memref<1x15x32xf32, #tpu.memory_space<vmem>>, vector<1x15x32xf32>
    %3 = vector.shape_cast %2 : vector<1x15x32xf32> to vector<15x32xf32>
    %4 = arith.truncf %1 : vector<6x32xf32> to vector<6x32xbf16>
    %c0_5 = arith.constant 0 : index
    %c0_6 = arith.constant 0 : index
    %5 = vector.load %arg3[%c0_5, %c0_6] : memref<32x32xbf16, #tpu.memory_space<vmem>>, vector<32x32xbf16>
    %cst = arith.constant dense<0.000000e+00> : vector<6x32xf32>
    %6 = tpu.matmul %4, %5, %cst {dimension_numbers = #tpu.dot_dimension_numbers<[1], [0], [0], [1], [0, 0, 1, 1], [], []>} : vector<6x32xbf16>, vector<32x32xbf16>, vector<6x32xf32> -> vector<6x32xf32>
    %c0_7 = arith.constant 0 : index
    %c0_8 = arith.constant 0 : index
    %7 = vector.load %arg4[%c0_7, %c0_8] : memref<1x32xf32, #tpu.memory_space<vmem>>, vector<1x32xf32>
    %8 = vector.broadcast %7 : vector<1x32xf32> to vector<6x32xf32>
    %9 = arith.addf %6, %8 : vector<6x32xf32>
    %10 = arith.truncf %3 : vector<15x32xf32> to vector<15x32xbf16>
    %c0_9 = arith.constant 0 : index
    %c0_10 = arith.constant 0 : index
    %11 = vector.load %arg5[%c0_9, %c0_10] : memref<32x64xbf16, #tpu.memory_space<vmem>>, vector<32x64xbf16>
    %cst_11 = arith.constant dense<0.000000e+00> : vector<15x64xf32>
    %12 = tpu.matmul %10, %11, %cst_11 {dimension_numbers = #tpu.dot_dimension_numbers<[1], [0], [0], [1], [0, 0, 1, 1], [], []>} : vector<15x32xbf16>, vector<32x64xbf16>, vector<15x64xf32> -> vector<15x64xf32>
    %c0_12 = arith.constant 0 : index
    %c0_13 = arith.constant 0 : index
    %13 = vector.load %arg6[%c0_12, %c0_13] : memref<1x64xf32, #tpu.memory_space<vmem>>, vector<1x64xf32>
    %14 = vector.broadcast %13 : vector<1x64xf32> to vector<15x64xf32>
    %15 = arith.addf %12, %14 : vector<15x64xf32>
    %16 = vector.extract_strided_slice %15 {offsets = [0, 0], sizes = [15, 32], strides = [1, 1]} : vector<15x64xf32> to vector<15x32xf32>
    %17 = vector.extract_strided_slice %15 {offsets = [0, 32], sizes = [15, 32], strides = [1, 1]} : vector<15x64xf32> to vector<15x32xf32>
    %18 = vector.extract_strided_slice %9 {offsets = [0, 0], sizes = [6, 8], strides = [1, 1]} : vector<6x32xf32> to vector<6x8xf32>
    %19 = arith.truncf %18 : vector<6x8xf32> to vector<6x8xbf16>
    %20 = vector.extract_strided_slice %16 {offsets = [0, 0], sizes = [15, 8], strides = [1, 1]} : vector<15x32xf32> to vector<15x8xf32>
    %21 = arith.truncf %20 : vector<15x8xf32> to vector<15x8xbf16>
    %22 = vector.extract_strided_slice %17 {offsets = [0, 0], sizes = [15, 8], strides = [1, 1]} : vector<15x32xf32> to vector<15x8xf32>
    %23 = arith.truncf %22 : vector<15x8xf32> to vector<15x8xbf16>
    %cst_14 = arith.constant dense<0.000000e+00> : vector<6x15xf32>
    %24 = tpu.matmul %19, %21, %cst_14 {dimension_numbers = #tpu.dot_dimension_numbers<[1], [1], [0], [0], [0, 0, 1, 0], [], []>} : vector<6x8xbf16>, vector<15x8xbf16>, vector<6x15xf32> -> vector<6x15xf32>
    %cst_15 = arith.constant 0.353553385 : f32
    %25 = vector.broadcast %cst_15 : f32 to vector<6x15xf32>
    %26 = arith.mulf %24, %25 : vector<6x15xf32>
    %cst_16 = arith.constant dense<0xFF800000> : vector<6xf32>
    %27 = vector.multi_reduction <maximumf>, %26, %cst_16 [1] : vector<6x15xf32> to vector<6xf32>
    %28 = vector.shape_cast %27 : vector<6xf32> to vector<6x1xf32>
    %29 = vector.broadcast %28 : vector<6x1xf32> to vector<6x15xf32>
    %30 = arith.subf %26, %29 : vector<6x15xf32>
    %31 = math.exp %30 : vector<6x15xf32>
    %cst_17 = arith.constant dense<0.000000e+00> : vector<6xf32>
    %32 = vector.multi_reduction <add>, %31, %cst_17 [1] : vector<6x15xf32> to vector<6xf32>
    %33 = vector.shape_cast %32 : vector<6xf32> to vector<6x1xf32>
    %34 = tpu.reciprocal %33 {approx = true} : vector<6x1xf32> -> vector<6x1xf32>
    %35 = vector.broadcast %34 : vector<6x1xf32> to vector<6x15xf32>
    %36 = arith.mulf %31, %35 : vector<6x15xf32>
    %37 = arith.truncf %36 : vector<6x15xf32> to vector<6x15xbf16>
    %cst_18 = arith.constant dense<0.000000e+00> : vector<6x8xf32>
    %38 = tpu.matmul %37, %23, %cst_18 {dimension_numbers = #tpu.dot_dimension_numbers<[1], [0], [0], [1], [0, 0, 1, 1], [], []>} : vector<6x15xbf16>, vector<15x8xbf16>, vector<6x8xf32> -> vector<6x8xf32>
    %39 = vector.extract_strided_slice %9 {offsets = [0, 8], sizes = [6, 8], strides = [1, 1]} : vector<6x32xf32> to vector<6x8xf32>
    %40 = arith.truncf %39 : vector<6x8xf32> to vector<6x8xbf16>
    %41 = vector.extract_strided_slice %16 {offsets = [0, 8], sizes = [15, 8], strides = [1, 1]} : vector<15x32xf32> to vector<15x8xf32>
    %42 = arith.truncf %41 : vector<15x8xf32> to vector<15x8xbf16>
    %43 = vector.extract_strided_slice %17 {offsets = [0, 8], sizes = [15, 8], strides = [1, 1]} : vector<15x32xf32> to vector<15x8xf32>
    %44 = arith.truncf %43 : vector<15x8xf32> to vector<15x8xbf16>
    %cst_19 = arith.constant dense<0.000000e+00> : vector<6x15xf32>
    %45 = tpu.matmul %40, %42, %cst_19 {dimension_numbers = #tpu.dot_dimension_numbers<[1], [1], [0], [0], [0, 0, 1, 0], [], []>} : vector<6x8xbf16>, vector<15x8xbf16>, vector<6x15xf32> -> vector<6x15xf32>
    %cst_20 = arith.constant 0.353553385 : f32
    %46 = vector.broadcast %cst_20 : f32 to vector<6x15xf32>
    %47 = arith.mulf %45, %46 : vector<6x15xf32>
    %cst_21 = arith.constant dense<0xFF800000> : vector<6xf32>
    %48 = vector.multi_reduction <maximumf>, %47, %cst_21 [1] : vector<6x15xf32> to vector<6xf32>
    %49 = vector.shape_cast %48 : vector<6xf32> to vector<6x1xf32>
    %50 = vector.broadcast %49 : vector<6x1xf32> to vector<6x15xf32>
    %51 = arith.subf %47, %50 : vector<6x15xf32>
    %52 = math.exp %51 : vector<6x15xf32>
    %cst_22 = arith.constant dense<0.000000e+00> : vector<6xf32>
    %53 = vector.multi_reduction <add>, %52, %cst_22 [1] : vector<6x15xf32> to vector<6xf32>
    %54 = vector.shape_cast %53 : vector<6xf32> to vector<6x1xf32>
    %55 = tpu.reciprocal %54 {approx = true} : vector<6x1xf32> -> vector<6x1xf32>
    %56 = vector.broadcast %55 : vector<6x1xf32> to vector<6x15xf32>
    %57 = arith.mulf %52, %56 : vector<6x15xf32>
    %58 = arith.truncf %57 : vector<6x15xf32> to vector<6x15xbf16>
    %cst_23 = arith.constant dense<0.000000e+00> : vector<6x8xf32>
    %59 = tpu.matmul %58, %44, %cst_23 {dimension_numbers = #tpu.dot_dimension_numbers<[1], [0], [0], [1], [0, 0, 1, 1], [], []>} : vector<6x15xbf16>, vector<15x8xbf16>, vector<6x8xf32> -> vector<6x8xf32>
    %60 = vector.extract_strided_slice %9 {offsets = [0, 16], sizes = [6, 8], strides = [1, 1]} : vector<6x32xf32> to vector<6x8xf32>
    %61 = arith.truncf %60 : vector<6x8xf32> to vector<6x8xbf16>
    %62 = vector.extract_strided_slice %16 {offsets = [0, 16], sizes = [15, 8], strides = [1, 1]} : vector<15x32xf32> to vector<15x8xf32>
    %63 = arith.truncf %62 : vector<15x8xf32> to vector<15x8xbf16>
    %64 = vector.extract_strided_slice %17 {offsets = [0, 16], sizes = [15, 8], strides = [1, 1]} : vector<15x32xf32> to vector<15x8xf32>
    %65 = arith.truncf %64 : vector<15x8xf32> to vector<15x8xbf16>
    %cst_24 = arith.constant dense<0.000000e+00> : vector<6x15xf32>
    %66 = tpu.matmul %61, %63, %cst_24 {dimension_numbers = #tpu.dot_dimension_numbers<[1], [1], [0], [0], [0, 0, 1, 0], [], []>} : vector<6x8xbf16>, vector<15x8xbf16>, vector<6x15xf32> -> vector<6x15xf32>
    %cst_25 = arith.constant 0.353553385 : f32
    %67 = vector.broadcast %cst_25 : f32 to vector<6x15xf32>
    %68 = arith.mulf %66, %67 : vector<6x15xf32>
    %cst_26 = arith.constant dense<0xFF800000> : vector<6xf32>
    %69 = vector.multi_reduction <maximumf>, %68, %cst_26 [1] : vector<6x15xf32> to vector<6xf32>
    %70 = vector.shape_cast %69 : vector<6xf32> to vector<6x1xf32>
    %71 = vector.broadcast %70 : vector<6x1xf32> to vector<6x15xf32>
    %72 = arith.subf %68, %71 : vector<6x15xf32>
    %73 = math.exp %72 : vector<6x15xf32>
    %cst_27 = arith.constant dense<0.000000e+00> : vector<6xf32>
    %74 = vector.multi_reduction <add>, %73, %cst_27 [1] : vector<6x15xf32> to vector<6xf32>
    %75 = vector.shape_cast %74 : vector<6xf32> to vector<6x1xf32>
    %76 = tpu.reciprocal %75 {approx = true} : vector<6x1xf32> -> vector<6x1xf32>
    %77 = vector.broadcast %76 : vector<6x1xf32> to vector<6x15xf32>
    %78 = arith.mulf %73, %77 : vector<6x15xf32>
    %79 = arith.truncf %78 : vector<6x15xf32> to vector<6x15xbf16>
    %cst_28 = arith.constant dense<0.000000e+00> : vector<6x8xf32>
    %80 = tpu.matmul %79, %65, %cst_28 {dimension_numbers = #tpu.dot_dimension_numbers<[1], [0], [0], [1], [0, 0, 1, 1], [], []>} : vector<6x15xbf16>, vector<15x8xbf16>, vector<6x8xf32> -> vector<6x8xf32>
    %81 = vector.extract_strided_slice %9 {offsets = [0, 24], sizes = [6, 8], strides = [1, 1]} : vector<6x32xf32> to vector<6x8xf32>
    %82 = arith.truncf %81 : vector<6x8xf32> to vector<6x8xbf16>
    %83 = vector.extract_strided_slice %16 {offsets = [0, 24], sizes = [15, 8], strides = [1, 1]} : vector<15x32xf32> to vector<15x8xf32>
    %84 = arith.truncf %83 : vector<15x8xf32> to vector<15x8xbf16>
    %85 = vector.extract_strided_slice %17 {offsets = [0, 24], sizes = [15, 8], strides = [1, 1]} : vector<15x32xf32> to vector<15x8xf32>
    %86 = arith.truncf %85 : vector<15x8xf32> to vector<15x8xbf16>
    %cst_29 = arith.constant dense<0.000000e+00> : vector<6x15xf32>
    %87 = tpu.matmul %82, %84, %cst_29 {dimension_numbers = #tpu.dot_dimension_numbers<[1], [1], [0], [0], [0, 0, 1, 0], [], []>} : vector<6x8xbf16>, vector<15x8xbf16>, vector<6x15xf32> -> vector<6x15xf32>
    %cst_30 = arith.constant 0.353553385 : f32
    %88 = vector.broadcast %cst_30 : f32 to vector<6x15xf32>
    %89 = arith.mulf %87, %88 : vector<6x15xf32>
    %cst_31 = arith.constant dense<0xFF800000> : vector<6xf32>
    %90 = vector.multi_reduction <maximumf>, %89, %cst_31 [1] : vector<6x15xf32> to vector<6xf32>
    %91 = vector.shape_cast %90 : vector<6xf32> to vector<6x1xf32>
    %92 = vector.broadcast %91 : vector<6x1xf32> to vector<6x15xf32>
    %93 = arith.subf %89, %92 : vector<6x15xf32>
    %94 = math.exp %93 : vector<6x15xf32>
    %cst_32 = arith.constant dense<0.000000e+00> : vector<6xf32>
    %95 = vector.multi_reduction <add>, %94, %cst_32 [1] : vector<6x15xf32> to vector<6xf32>
    %96 = vector.shape_cast %95 : vector<6xf32> to vector<6x1xf32>
    %97 = tpu.reciprocal %96 {approx = true} : vector<6x1xf32> -> vector<6x1xf32>
    %98 = vector.broadcast %97 : vector<6x1xf32> to vector<6x15xf32>
    %99 = arith.mulf %94, %98 : vector<6x15xf32>
    %100 = arith.truncf %99 : vector<6x15xf32> to vector<6x15xbf16>
    %cst_33 = arith.constant dense<0.000000e+00> : vector<6x8xf32>
    %101 = tpu.matmul %100, %86, %cst_33 {dimension_numbers = #tpu.dot_dimension_numbers<[1], [0], [0], [1], [0, 0, 1, 1], [], []>} : vector<6x15xbf16>, vector<15x8xbf16>, vector<6x8xf32> -> vector<6x8xf32>
    %102 = tpu.concatenate %38, %59, %80, %101 in 1 : vector<6x8xf32>, vector<6x8xf32>, vector<6x8xf32>, vector<6x8xf32> -> vector<6x32xf32>
    %103 = arith.truncf %102 : vector<6x32xf32> to vector<6x32xbf16>
    %c0_34 = arith.constant 0 : index
    %c0_35 = arith.constant 0 : index
    %104 = vector.load %arg7[%c0_34, %c0_35] : memref<32x32xbf16, #tpu.memory_space<vmem>>, vector<32x32xbf16>
    %cst_36 = arith.constant dense<0.000000e+00> : vector<6x32xf32>
    %105 = tpu.matmul %103, %104, %cst_36 {dimension_numbers = #tpu.dot_dimension_numbers<[1], [0], [0], [1], [0, 0, 1, 1], [], []>} : vector<6x32xbf16>, vector<32x32xbf16>, vector<6x32xf32> -> vector<6x32xf32>
    %c0_37 = arith.constant 0 : index
    %c0_38 = arith.constant 0 : index
    %106 = vector.load %arg8[%c0_37, %c0_38] : memref<1x32xf32, #tpu.memory_space<vmem>>, vector<1x32xf32>
    %107 = vector.broadcast %106 : vector<1x32xf32> to vector<6x32xf32>
    %108 = arith.addf %105, %107 : vector<6x32xf32>
    %109 = arith.addf %1, %108 : vector<6x32xf32>
    %cst_39 = arith.constant dense<0.000000e+00> : vector<6xf32>
    %110 = vector.multi_reduction <add>, %109, %cst_39 [1] : vector<6x32xf32> to vector<6xf32>
    %111 = vector.shape_cast %110 : vector<6xf32> to vector<6x1xf32>
    %cst_40 = arith.constant 3.200000e+01 : f32
    %112 = vector.broadcast %cst_40 : f32 to vector<6x1xf32>
    %113 = arith.divf %111, %112 : vector<6x1xf32>
    %114 = vector.broadcast %113 : vector<6x1xf32> to vector<6x32xf32>
    %115 = arith.subf %109, %114 : vector<6x32xf32>
    %116 = arith.mulf %115, %115 : vector<6x32xf32>
    %cst_41 = arith.constant dense<0.000000e+00> : vector<6xf32>
    %117 = vector.multi_reduction <add>, %116, %cst_41 [1] : vector<6x32xf32> to vector<6xf32>
    %118 = vector.shape_cast %117 : vector<6xf32> to vector<6x1xf32>
    %cst_42 = arith.constant 3.200000e+01 : f32
    %119 = vector.broadcast %cst_42 : f32 to vector<6x1xf32>
    %120 = arith.divf %118, %119 : vector<6x1xf32>
    %cst_43 = arith.constant 9.99999974E-6 : f32
    %121 = vector.broadcast %cst_43 : f32 to vector<6x1xf32>
    %122 = arith.addf %120, %121 : vector<6x1xf32>
    %123 = math.rsqrt %122 : vector<6x1xf32>
    %124 = vector.broadcast %123 : vector<6x1xf32> to vector<6x32xf32>
    %125 = arith.mulf %115, %124 : vector<6x32xf32>
    %c0_44 = arith.constant 0 : index
    %c0_45 = arith.constant 0 : index
    %126 = vector.load %arg9[%c0_44, %c0_45] : memref<1x32xf32, #tpu.memory_space<vmem>>, vector<1x32xf32>
    %127 = vector.broadcast %126 : vector<1x32xf32> to vector<6x32xf32>
    %128 = arith.mulf %125, %127 : vector<6x32xf32>
    %c0_46 = arith.constant 0 : index
    %c0_47 = arith.constant 0 : index
    %129 = vector.load %arg10[%c0_46, %c0_47] : memref<1x32xf32, #tpu.memory_space<vmem>>, vector<1x32xf32>
    %130 = vector.broadcast %129 : vector<1x32xf32> to vector<6x32xf32>
    %131 = arith.addf %128, %130 : vector<6x32xf32>
    %c0_48 = arith.constant 0 : index
    %c0_49 = arith.constant 0 : index
    %c0_50 = arith.constant 0 : index
    %132 = vector.load %arg11[%c0_48, %c0_49, %c0_50] : memref<1x6x32xf32, #tpu.memory_space<vmem>>, vector<1x6x32xf32>
    %133 = vector.shape_cast %132 : vector<1x6x32xf32> to vector<6x32xf32>
    %134 = vector.shape_cast %131 : vector<6x32xf32> to vector<1x6x32xf32>
    tpu.vector_store %arg11[%c0_48, %c0_49, %c0_50], %134 {strides = array<i32>} : memref<1x6x32xf32, #tpu.memory_space<vmem>>, vector<1x6x32xf32>,
    return
  }
  func.func @transform_0(%arg0: i32) -> (i32, i32, i32) {
    %c0_i32 = arith.constant 0 : i32
    %c0_i32_0 = arith.constant 0 : i32
    %c0_i32_1 = arith.constant 0 : i32
    return %arg0, %c0_i32, %c0_i32_0 : i32, i32, i32
  }
  func.func @transform_1(%arg0: i32) -> (i32, i32, i32) {
    %c0_i32 = arith.constant 0 : i32
    %c0_i32_0 = arith.constant 0 : i32
    %c0_i32_1 = arith.constant 0 : i32
    return %arg0, %c0_i32, %c0_i32_0 : i32, i32, i32
  }
  func.func @transform_2(%arg0: i32) -> (i32, i32) {
    %c0_i32 = arith.constant 0 : i32
    %c0_i32_0 = arith.constant 0 : i32
    %c0_i32_1 = arith.constant 0 : i32
    return %c0_i32, %c0_i32_0 : i32, i32
  }
  func.func @transform_3(%arg0: i32) -> (i32, i32) {
    %c0_i32 = arith.constant 0 : i32
    %c0_i32_0 = arith.constant 0 : i32
    %c0_i32_1 = arith.constant 0 : i32
    return %c0_i32, %c0_i32_0 : i32, i32
  }
  func.func @transform_4(%arg0: i32) -> (i32, i32) {
    %c0_i32 = arith.constant 0 : i32
    %c0_i32_0 = arith.constant 0 : i32
    %c0_i32_1 = arith.constant 0 : i32
    return %c0_i32, %c0_i32_0 : i32, i32
  }
  func.func @transform_5(%arg0: i32) -> (i32, i32) {
    %c0_i32 = arith.constant 0 : i32
    %c0_i32_0 = arith.constant 0 : i32
    %c0_i32_1 = arith.constant 0 : i32
    return %c0_i32, %c0_i32_0 : i32, i32
  }
  func.func @transform_6(%arg0: i32) -> (i32, i32) {
    %c0_i32 = arith.constant 0 : i32
    %c0_i32_0 = arith.constant 0 : i32
    %c0_i32_1 = arith.constant 0 : i32
    return %c0_i32, %c0_i32_0 : i32, i32
  }
  func.func @transform_7(%arg0: i32) -> (i32, i32) {
    %c0_i32 = arith.constant 0 : i32
    %c0_i32_0 = arith.constant 0 : i32
    %c0_i32_1 = arith.constant 0 : i32
    return %c0_i32, %c0_i32_0 : i32, i32
  }
  func.func @transform_8(%arg0: i32) -> (i32, i32) {
    %c0_i32 = arith.constant 0 : i32
    %c0_i32_0 = arith.constant 0 : i32
    %c0_i32_1 = arith.constant 0 : i32
    return %c0_i32, %c0_i32_0 : i32, i32
  }
  func.func @transform_9(%arg0: i32) -> (i32, i32) {
    %c0_i32 = arith.constant 0 : i32
    %c0_i32_0 = arith.constant 0 : i32
    %c0_i32_1 = arith.constant 0 : i32
    return %c0_i32, %c0_i32_0 : i32, i32
  }
  func.func @transform_10(%arg0: i32) -> (i32, i32, i32) {
    %c0_i32 = arith.constant 0 : i32
    %c0_i32_0 = arith.constant 0 : i32
    %c0_i32_1 = arith.constant 0 : i32
    return %arg0, %c0_i32, %c0_i32_0 : i32, i32, i32
  }
}

module attributes {stable_mosaic.version = 11 : i64} {
  func.func @_ffn_block_kernel(%arg0: i32, %arg1: memref<1x6x32xf32, #tpu.memory_space<vmem>>, %arg2: memref<3x32x64xbf16, #tpu.memory_space<vmem>>, %arg3: memref<1x64xf32, #tpu.memory_space<vmem>>, %arg4: memref<3x64x32xbf16, #tpu.memory_space<vmem>>, %arg5: memref<1x32xf32, #tpu.memory_space<vmem>>, %arg6: memref<1x32xf32, #tpu.memory_space<vmem>>, %arg7: memref<1x32xf32, #tpu.memory_space<vmem>>, %arg8: memref<1x6x32xf32, #tpu.memory_space<vmem>>, %arg9: memref<8x32xf32, #tpu.memory_space<vmem>>, %arg10: memref<8x64xf32, #tpu.memory_space<vmem>>) attributes {dimension_semantics = [#tpu.dimension_semantics<parallel>], iteration_bounds = array<i64: 2>, scalar_prefetch = 0 : i64, scratch_operands = 2 : i64, tpu.core_type = #tpu.core_type<tc>, window_params = [{transform_indices = @transform_0, window_bounds = array<i64: 1, 6, 32>}, {pipeline_mode = #tpu.pipeline_mode<synchronous>, transform_indices = @transform_1, window_bounds = array<i64: 3, 32, 64>}, {pipeline_mode = #tpu.pipeline_mode<synchronous>, transform_indices = @transform_2, window_bounds = array<i64: 1, 64>}, {pipeline_mode = #tpu.pipeline_mode<synchronous>, transform_indices = @transform_3, window_bounds = array<i64: 3, 64, 32>}, {pipeline_mode = #tpu.pipeline_mode<synchronous>, transform_indices = @transform_4, window_bounds = array<i64: 1, 32>}, {pipeline_mode = #tpu.pipeline_mode<synchronous>, transform_indices = @transform_5, window_bounds = array<i64: 1, 32>}, {pipeline_mode = #tpu.pipeline_mode<synchronous>, transform_indices = @transform_6, window_bounds = array<i64: 1, 32>}, {transform_indices = @transform_7, window_bounds = array<i64: 1, 6, 32>}]} {
    %c0 = arith.constant 0 : index
    %c0_0 = arith.constant 0 : index
    %c0_1 = arith.constant 0 : index
    %0 = vector.load %arg1[%c0, %c0_0, %c0_1] : memref<1x6x32xf32, #tpu.memory_space<vmem>>, vector<1x6x32xf32>
    %1 = vector.shape_cast %0 : vector<1x6x32xf32> to vector<6x32xf32>
    %cst = arith.constant 0.000000e+00 : f32
    %2 = vector.broadcast %cst : f32 to vector<8x32xf32>
    %c0_2 = arith.constant 0 : index
    %c0_3 = arith.constant 0 : index
    %3 = vector.load %arg9[%c0_2, %c0_3] : memref<8x32xf32, #tpu.memory_space<vmem>>, vector<8x32xf32>
    tpu.vector_store %arg9[%c0_2, %c0_3], %2 {strides = array<i32>} : memref<8x32xf32, #tpu.memory_space<vmem>>, vector<8x32xf32>,
    %c1 = arith.constant 1 : index
    %c0_4 = arith.constant 0 : index
    %4 = vector.load %arg9[%c1, %c0_4] : memref<8x32xf32, #tpu.memory_space<vmem>>, vector<6x32xf32>
    tpu.vector_store %arg9[%c1, %c0_4], %1 {strides = array<i32>} : memref<8x32xf32, #tpu.memory_space<vmem>>, vector<6x32xf32>,
    %cst_5 = arith.constant 0.000000e+00 : f32
    %5 = vector.broadcast %cst_5 : f32 to vector<6x64xf32>
    %c0_6 = arith.constant 0 : index
    %c0_7 = arith.constant 0 : index
    %6 = vector.load %arg9[%c0_6, %c0_7] : memref<8x32xf32, #tpu.memory_space<vmem>>, vector<6x32xf32>
    %7 = arith.truncf %6 : vector<6x32xf32> to vector<6x32xbf16>
    %c0_8 = arith.constant 0 : index
    %c0_9 = arith.constant 0 : index
    %c0_10 = arith.constant 0 : index
    %8 = vector.load %arg2[%c0_8, %c0_9, %c0_10] : memref<3x32x64xbf16, #tpu.memory_space<vmem>>, vector<1x32x64xbf16>
    %9 = vector.shape_cast %8 : vector<1x32x64xbf16> to vector<32x64xbf16>
    %cst_11 = arith.constant dense<0.000000e+00> : vector<6x64xf32>
    %10 = tpu.matmul %7, %9, %cst_11 {dimension_numbers = #tpu.dot_dimension_numbers<[1], [0], [0], [1], [0, 0, 1, 1], [], []>} : vector<6x32xbf16>, vector<32x64xbf16>, vector<6x64xf32> -> vector<6x64xf32>
    %11 = arith.addf %5, %10 : vector<6x64xf32>
    %c1_12 = arith.constant 1 : index
    %c0_13 = arith.constant 0 : index
    %12 = vector.load %arg9[%c1_12, %c0_13] : memref<8x32xf32, #tpu.memory_space<vmem>>, vector<6x32xf32>
    %13 = arith.truncf %12 : vector<6x32xf32> to vector<6x32xbf16>
    %c1_14 = arith.constant 1 : index
    %c0_15 = arith.constant 0 : index
    %c0_16 = arith.constant 0 : index
    %14 = vector.load %arg2[%c1_14, %c0_15, %c0_16] : memref<3x32x64xbf16, #tpu.memory_space<vmem>>, vector<1x32x64xbf16>
    %15 = vector.shape_cast %14 : vector<1x32x64xbf16> to vector<32x64xbf16>
    %cst_17 = arith.constant dense<0.000000e+00> : vector<6x64xf32>
    %16 = tpu.matmul %13, %15, %cst_17 {dimension_numbers = #tpu.dot_dimension_numbers<[1], [0], [0], [1], [0, 0, 1, 1], [], []>} : vector<6x32xbf16>, vector<32x64xbf16>, vector<6x64xf32> -> vector<6x64xf32>
    %17 = arith.addf %11, %16 : vector<6x64xf32>
    %c2 = arith.constant 2 : index
    %c0_18 = arith.constant 0 : index
    %18 = vector.load %arg9[%c2, %c0_18] : memref<8x32xf32, #tpu.memory_space<vmem>>, vector<6x32xf32>
    %19 = arith.truncf %18 : vector<6x32xf32> to vector<6x32xbf16>
    %c2_19 = arith.constant 2 : index
    %c0_20 = arith.constant 0 : index
    %c0_21 = arith.constant 0 : index
    %20 = vector.load %arg2[%c2_19, %c0_20, %c0_21] : memref<3x32x64xbf16, #tpu.memory_space<vmem>>, vector<1x32x64xbf16>
    %21 = vector.shape_cast %20 : vector<1x32x64xbf16> to vector<32x64xbf16>
    %cst_22 = arith.constant dense<0.000000e+00> : vector<6x64xf32>
    %22 = tpu.matmul %19, %21, %cst_22 {dimension_numbers = #tpu.dot_dimension_numbers<[1], [0], [0], [1], [0, 0, 1, 1], [], []>} : vector<6x32xbf16>, vector<32x64xbf16>, vector<6x64xf32> -> vector<6x64xf32>
    %23 = arith.addf %17, %22 : vector<6x64xf32>
    %c0_23 = arith.constant 0 : index
    %c0_24 = arith.constant 0 : index
    %24 = vector.load %arg3[%c0_23, %c0_24] : memref<1x64xf32, #tpu.memory_space<vmem>>, vector<1x64xf32>
    %25 = vector.broadcast %24 : vector<1x64xf32> to vector<6x64xf32>
    %26 = arith.addf %23, %25 : vector<6x64xf32>
    %cst_25 = arith.constant 0.000000e+00 : f32
    %27 = vector.broadcast %cst_25 : f32 to vector<6x64xf32>
    %28 = arith.maximumf %26, %27 : vector<6x64xf32>
    %cst_26 = arith.constant 0.000000e+00 : f32
    %29 = vector.broadcast %cst_26 : f32 to vector<8x64xf32>
    %c0_27 = arith.constant 0 : index
    %c0_28 = arith.constant 0 : index
    %30 = vector.load %arg10[%c0_27, %c0_28] : memref<8x64xf32, #tpu.memory_space<vmem>>, vector<8x64xf32>
    tpu.vector_store %arg10[%c0_27, %c0_28], %29 {strides = array<i32>} : memref<8x64xf32, #tpu.memory_space<vmem>>, vector<8x64xf32>,
    %c1_29 = arith.constant 1 : index
    %c0_30 = arith.constant 0 : index
    %31 = vector.load %arg10[%c1_29, %c0_30] : memref<8x64xf32, #tpu.memory_space<vmem>>, vector<6x64xf32>
    tpu.vector_store %arg10[%c1_29, %c0_30], %28 {strides = array<i32>} : memref<8x64xf32, #tpu.memory_space<vmem>>, vector<6x64xf32>,
    %cst_31 = arith.constant 0.000000e+00 : f32
    %32 = vector.broadcast %cst_31 : f32 to vector<6x32xf32>
    %c0_32 = arith.constant 0 : index
    %c0_33 = arith.constant 0 : index
    %33 = vector.load %arg10[%c0_32, %c0_33] : memref<8x64xf32, #tpu.memory_space<vmem>>, vector<6x64xf32>
    %34 = arith.truncf %33 : vector<6x64xf32> to vector<6x64xbf16>
    %c0_34 = arith.constant 0 : index
    %c0_35 = arith.constant 0 : index
    %c0_36 = arith.constant 0 : index
    %35 = vector.load %arg4[%c0_34, %c0_35, %c0_36] : memref<3x64x32xbf16, #tpu.memory_space<vmem>>, vector<1x64x32xbf16>
    %36 = vector.shape_cast %35 : vector<1x64x32xbf16> to vector<64x32xbf16>
    %cst_37 = arith.constant dense<0.000000e+00> : vector<6x32xf32>
    %37 = tpu.matmul %34, %36, %cst_37 {dimension_numbers = #tpu.dot_dimension_numbers<[1], [0], [0], [1], [0, 0, 1, 1], [], []>} : vector<6x64xbf16>, vector<64x32xbf16>, vector<6x32xf32> -> vector<6x32xf32>
    %38 = arith.addf %32, %37 : vector<6x32xf32>
    %c1_38 = arith.constant 1 : index
    %c0_39 = arith.constant 0 : index
    %39 = vector.load %arg10[%c1_38, %c0_39] : memref<8x64xf32, #tpu.memory_space<vmem>>, vector<6x64xf32>
    %40 = arith.truncf %39 : vector<6x64xf32> to vector<6x64xbf16>
    %c1_40 = arith.constant 1 : index
    %c0_41 = arith.constant 0 : index
    %c0_42 = arith.constant 0 : index
    %41 = vector.load %arg4[%c1_40, %c0_41, %c0_42] : memref<3x64x32xbf16, #tpu.memory_space<vmem>>, vector<1x64x32xbf16>
    %42 = vector.shape_cast %41 : vector<1x64x32xbf16> to vector<64x32xbf16>
    %cst_43 = arith.constant dense<0.000000e+00> : vector<6x32xf32>
    %43 = tpu.matmul %40, %42, %cst_43 {dimension_numbers = #tpu.dot_dimension_numbers<[1], [0], [0], [1], [0, 0, 1, 1], [], []>} : vector<6x64xbf16>, vector<64x32xbf16>, vector<6x32xf32> -> vector<6x32xf32>
    %44 = arith.addf %38, %43 : vector<6x32xf32>
    %c2_44 = arith.constant 2 : index
    %c0_45 = arith.constant 0 : index
    %45 = vector.load %arg10[%c2_44, %c0_45] : memref<8x64xf32, #tpu.memory_space<vmem>>, vector<6x64xf32>
    %46 = arith.truncf %45 : vector<6x64xf32> to vector<6x64xbf16>
    %c2_46 = arith.constant 2 : index
    %c0_47 = arith.constant 0 : index
    %c0_48 = arith.constant 0 : index
    %47 = vector.load %arg4[%c2_46, %c0_47, %c0_48] : memref<3x64x32xbf16, #tpu.memory_space<vmem>>, vector<1x64x32xbf16>
    %48 = vector.shape_cast %47 : vector<1x64x32xbf16> to vector<64x32xbf16>
    %cst_49 = arith.constant dense<0.000000e+00> : vector<6x32xf32>
    %49 = tpu.matmul %46, %48, %cst_49 {dimension_numbers = #tpu.dot_dimension_numbers<[1], [0], [0], [1], [0, 0, 1, 1], [], []>} : vector<6x64xbf16>, vector<64x32xbf16>, vector<6x32xf32> -> vector<6x32xf32>
    %50 = arith.addf %44, %49 : vector<6x32xf32>
    %51 = arith.addf %1, %50 : vector<6x32xf32>
    %c0_50 = arith.constant 0 : index
    %c0_51 = arith.constant 0 : index
    %52 = vector.load %arg5[%c0_50, %c0_51] : memref<1x32xf32, #tpu.memory_space<vmem>>, vector<1x32xf32>
    %53 = vector.broadcast %52 : vector<1x32xf32> to vector<6x32xf32>
    %54 = arith.addf %51, %53 : vector<6x32xf32>
    %cst_52 = arith.constant dense<0.000000e+00> : vector<6xf32>
    %55 = vector.multi_reduction <add>, %54, %cst_52 [1] : vector<6x32xf32> to vector<6xf32>
    %56 = vector.shape_cast %55 : vector<6xf32> to vector<6x1xf32>
    %cst_53 = arith.constant 3.200000e+01 : f32
    %57 = vector.broadcast %cst_53 : f32 to vector<6x1xf32>
    %58 = arith.divf %56, %57 : vector<6x1xf32>
    %59 = vector.broadcast %58 : vector<6x1xf32> to vector<6x32xf32>
    %60 = arith.subf %54, %59 : vector<6x32xf32>
    %61 = arith.mulf %60, %60 : vector<6x32xf32>
    %cst_54 = arith.constant dense<0.000000e+00> : vector<6xf32>
    %62 = vector.multi_reduction <add>, %61, %cst_54 [1] : vector<6x32xf32> to vector<6xf32>
    %63 = vector.shape_cast %62 : vector<6xf32> to vector<6x1xf32>
    %cst_55 = arith.constant 3.200000e+01 : f32
    %64 = vector.broadcast %cst_55 : f32 to vector<6x1xf32>
    %65 = arith.divf %63, %64 : vector<6x1xf32>
    %cst_56 = arith.constant 9.99999974E-6 : f32
    %66 = vector.broadcast %cst_56 : f32 to vector<6x1xf32>
    %67 = arith.addf %65, %66 : vector<6x1xf32>
    %68 = math.rsqrt %67 : vector<6x1xf32>
    %69 = vector.broadcast %68 : vector<6x1xf32> to vector<6x32xf32>
    %70 = arith.mulf %60, %69 : vector<6x32xf32>
    %c0_57 = arith.constant 0 : index
    %c0_58 = arith.constant 0 : index
    %71 = vector.load %arg6[%c0_57, %c0_58] : memref<1x32xf32, #tpu.memory_space<vmem>>, vector<1x32xf32>
    %72 = vector.broadcast %71 : vector<1x32xf32> to vector<6x32xf32>
    %73 = arith.mulf %70, %72 : vector<6x32xf32>
    %c0_59 = arith.constant 0 : index
    %c0_60 = arith.constant 0 : index
    %74 = vector.load %arg7[%c0_59, %c0_60] : memref<1x32xf32, #tpu.memory_space<vmem>>, vector<1x32xf32>
    %75 = vector.broadcast %74 : vector<1x32xf32> to vector<6x32xf32>
    %76 = arith.addf %73, %75 : vector<6x32xf32>
    %c0_61 = arith.constant 0 : index
    %c0_62 = arith.constant 0 : index
    %c0_63 = arith.constant 0 : index
    %77 = vector.load %arg8[%c0_61, %c0_62, %c0_63] : memref<1x6x32xf32, #tpu.memory_space<vmem>>, vector<1x6x32xf32>
    %78 = vector.shape_cast %77 : vector<1x6x32xf32> to vector<6x32xf32>
    %79 = vector.shape_cast %76 : vector<6x32xf32> to vector<1x6x32xf32>
    tpu.vector_store %arg8[%c0_61, %c0_62, %c0_63], %79 {strides = array<i32>} : memref<1x6x32xf32, #tpu.memory_space<vmem>>, vector<1x6x32xf32>,
    return
  }
  func.func @transform_0(%arg0: i32) -> (i32, i32, i32) {
    %c0_i32 = arith.constant 0 : i32
    %c0_i32_0 = arith.constant 0 : i32
    %c0_i32_1 = arith.constant 0 : i32
    return %arg0, %c0_i32, %c0_i32_0 : i32, i32, i32
  }
  func.func @transform_1(%arg0: i32) -> (i32, i32, i32) {
    %c0_i32 = arith.constant 0 : i32
    %c0_i32_0 = arith.constant 0 : i32
    %c0_i32_1 = arith.constant 0 : i32
    %c0_i32_2 = arith.constant 0 : i32
    return %c0_i32, %c0_i32_0, %c0_i32_1 : i32, i32, i32
  }
  func.func @transform_2(%arg0: i32) -> (i32, i32) {
    %c0_i32 = arith.constant 0 : i32
    %c0_i32_0 = arith.constant 0 : i32
    %c0_i32_1 = arith.constant 0 : i32
    return %c0_i32, %c0_i32_0 : i32, i32
  }
  func.func @transform_3(%arg0: i32) -> (i32, i32, i32) {
    %c0_i32 = arith.constant 0 : i32
    %c0_i32_0 = arith.constant 0 : i32
    %c0_i32_1 = arith.constant 0 : i32
    %c0_i32_2 = arith.constant 0 : i32
    return %c0_i32, %c0_i32_0, %c0_i32_1 : i32, i32, i32
  }
  func.func @transform_4(%arg0: i32) -> (i32, i32) {
    %c0_i32 = arith.constant 0 : i32
    %c0_i32_0 = arith.constant 0 : i32
    %c0_i32_1 = arith.constant 0 : i32
    return %c0_i32, %c0_i32_0 : i32, i32
  }
  func.func @transform_5(%arg0: i32) -> (i32, i32) {
    %c0_i32 = arith.constant 0 : i32
    %c0_i32_0 = arith.constant 0 : i32
    %c0_i32_1 = arith.constant 0 : i32
    return %c0_i32, %c0_i32_0 : i32, i32
  }
  func.func @transform_6(%arg0: i32) -> (i32, i32) {
    %c0_i32 = arith.constant 0 : i32
    %c0_i32_0 = arith.constant 0 : i32
    %c0_i32_1 = arith.constant 0 : i32
    return %c0_i32, %c0_i32_0 : i32, i32
  }
  func.func @transform_7(%arg0: i32) -> (i32, i32, i32) {
    %c0_i32 = arith.constant 0 : i32
    %c0_i32_0 = arith.constant 0 : i32
    %c0_i32_1 = arith.constant 0 : i32
    return %arg0, %c0_i32, %c0_i32_0 : i32, i32, i32
  }
}

module attributes {stable_mosaic.version = 11 : i64} {
  func.func @_head_kernel(%arg0: i32, %arg1: memref<1x6x32xf32, #tpu.memory_space<vmem>>, %arg2: memref<1x32xf32, #tpu.memory_space<vmem>>, %arg3: memref<1x32xf32, #tpu.memory_space<vmem>>, %arg4: memref<32x32xbf16, #tpu.memory_space<vmem>>, %arg5: memref<1x32xf32, #tpu.memory_space<vmem>>, %arg6: memref<1x6x32xf32, #tpu.memory_space<vmem>>) attributes {dimension_semantics = [#tpu.dimension_semantics<parallel>], iteration_bounds = array<i64: 2>, scalar_prefetch = 0 : i64, scratch_operands = 0 : i64, tpu.core_type = #tpu.core_type<tc>, window_params = [{transform_indices = @transform_0, window_bounds = array<i64: 1, 6, 32>}, {pipeline_mode = #tpu.pipeline_mode<synchronous>, transform_indices = @transform_1, window_bounds = array<i64: 1, 32>}, {pipeline_mode = #tpu.pipeline_mode<synchronous>, transform_indices = @transform_2, window_bounds = array<i64: 1, 32>}, {pipeline_mode = #tpu.pipeline_mode<synchronous>, transform_indices = @transform_3, window_bounds = array<i64: 32, 32>}, {pipeline_mode = #tpu.pipeline_mode<synchronous>, transform_indices = @transform_4, window_bounds = array<i64: 1, 32>}, {transform_indices = @transform_5, window_bounds = array<i64: 1, 6, 32>}]} {
    %c0 = arith.constant 0 : index
    %c0_0 = arith.constant 0 : index
    %c0_1 = arith.constant 0 : index
    %0 = vector.load %arg1[%c0, %c0_0, %c0_1] : memref<1x6x32xf32, #tpu.memory_space<vmem>>, vector<1x6x32xf32>
    %1 = vector.shape_cast %0 : vector<1x6x32xf32> to vector<6x32xf32>
    %cst = arith.constant 5.000000e-01 : f32
    %2 = vector.broadcast %cst : f32 to vector<6x32xf32>
    %3 = arith.mulf %2, %1 : vector<6x32xf32>
    %cst_2 = arith.constant 4.471500e-02 : f32
    %4 = vector.broadcast %cst_2 : f32 to vector<6x32xf32>
    %5 = arith.mulf %4, %1 : vector<6x32xf32>
    %6 = arith.mulf %5, %1 : vector<6x32xf32>
    %7 = arith.mulf %6, %1 : vector<6x32xf32>
    %8 = arith.addf %1, %7 : vector<6x32xf32>
    %cst_3 = arith.constant 0.797884583 : f32
    %9 = vector.broadcast %cst_3 : f32 to vector<6x32xf32>
    %10 = arith.mulf %9, %8 : vector<6x32xf32>
    %11 = math.tanh %10 : vector<6x32xf32>
    %cst_4 = arith.constant 1.000000e+00 : f32
    %12 = vector.broadcast %cst_4 : f32 to vector<6x32xf32>
    %13 = arith.addf %12, %11 : vector<6x32xf32>
    %14 = arith.mulf %3, %13 : vector<6x32xf32>
    %cst_5 = arith.constant dense<0.000000e+00> : vector<6xf32>
    %15 = vector.multi_reduction <add>, %14, %cst_5 [1] : vector<6x32xf32> to vector<6xf32>
    %16 = vector.shape_cast %15 : vector<6xf32> to vector<6x1xf32>
    %cst_6 = arith.constant 3.200000e+01 : f32
    %17 = vector.broadcast %cst_6 : f32 to vector<6x1xf32>
    %18 = arith.divf %16, %17 : vector<6x1xf32>
    %19 = vector.broadcast %18 : vector<6x1xf32> to vector<6x32xf32>
    %20 = arith.subf %14, %19 : vector<6x32xf32>
    %21 = arith.mulf %20, %20 : vector<6x32xf32>
    %cst_7 = arith.constant dense<0.000000e+00> : vector<6xf32>
    %22 = vector.multi_reduction <add>, %21, %cst_7 [1] : vector<6x32xf32> to vector<6xf32>
    %23 = vector.shape_cast %22 : vector<6xf32> to vector<6x1xf32>
    %cst_8 = arith.constant 3.200000e+01 : f32
    %24 = vector.broadcast %cst_8 : f32 to vector<6x1xf32>
    %25 = arith.divf %23, %24 : vector<6x1xf32>
    %cst_9 = arith.constant 9.99999974E-6 : f32
    %26 = vector.broadcast %cst_9 : f32 to vector<6x1xf32>
    %27 = arith.addf %25, %26 : vector<6x1xf32>
    %28 = math.rsqrt %27 : vector<6x1xf32>
    %29 = vector.broadcast %28 : vector<6x1xf32> to vector<6x32xf32>
    %30 = arith.mulf %20, %29 : vector<6x32xf32>
    %c0_10 = arith.constant 0 : index
    %c0_11 = arith.constant 0 : index
    %31 = vector.load %arg2[%c0_10, %c0_11] : memref<1x32xf32, #tpu.memory_space<vmem>>, vector<1x32xf32>
    %32 = vector.broadcast %31 : vector<1x32xf32> to vector<6x32xf32>
    %33 = arith.mulf %30, %32 : vector<6x32xf32>
    %c0_12 = arith.constant 0 : index
    %c0_13 = arith.constant 0 : index
    %34 = vector.load %arg3[%c0_12, %c0_13] : memref<1x32xf32, #tpu.memory_space<vmem>>, vector<1x32xf32>
    %35 = vector.broadcast %34 : vector<1x32xf32> to vector<6x32xf32>
    %36 = arith.addf %33, %35 : vector<6x32xf32>
    %37 = arith.truncf %36 : vector<6x32xf32> to vector<6x32xbf16>
    %c0_14 = arith.constant 0 : index
    %c0_15 = arith.constant 0 : index
    %38 = vector.load %arg4[%c0_14, %c0_15] : memref<32x32xbf16, #tpu.memory_space<vmem>>, vector<32x32xbf16>
    %cst_16 = arith.constant dense<0.000000e+00> : vector<6x32xf32>
    %39 = tpu.matmul %37, %38, %cst_16 {dimension_numbers = #tpu.dot_dimension_numbers<[1], [0], [0], [1], [0, 0, 1, 1], [], []>} : vector<6x32xbf16>, vector<32x32xbf16>, vector<6x32xf32> -> vector<6x32xf32>
    %c0_17 = arith.constant 0 : index
    %c0_18 = arith.constant 0 : index
    %40 = vector.load %arg5[%c0_17, %c0_18] : memref<1x32xf32, #tpu.memory_space<vmem>>, vector<1x32xf32>
    %41 = vector.broadcast %40 : vector<1x32xf32> to vector<6x32xf32>
    %42 = arith.addf %39, %41 : vector<6x32xf32>
    %c0_19 = arith.constant 0 : index
    %c0_20 = arith.constant 0 : index
    %c0_21 = arith.constant 0 : index
    %43 = vector.load %arg6[%c0_19, %c0_20, %c0_21] : memref<1x6x32xf32, #tpu.memory_space<vmem>>, vector<1x6x32xf32>
    %44 = vector.shape_cast %43 : vector<1x6x32xf32> to vector<6x32xf32>
    %45 = vector.shape_cast %42 : vector<6x32xf32> to vector<1x6x32xf32>
    tpu.vector_store %arg6[%c0_19, %c0_20, %c0_21], %45 {strides = array<i32>} : memref<1x6x32xf32, #tpu.memory_space<vmem>>, vector<1x6x32xf32>,
    return
  }
  func.func @transform_0(%arg0: i32) -> (i32, i32, i32) {
    %c0_i32 = arith.constant 0 : i32
    %c0_i32_0 = arith.constant 0 : i32
    %c0_i32_1 = arith.constant 0 : i32
    return %arg0, %c0_i32, %c0_i32_0 : i32, i32, i32
  }
  func.func @transform_1(%arg0: i32) -> (i32, i32) {
    %c0_i32 = arith.constant 0 : i32
    %c0_i32_0 = arith.constant 0 : i32
    %c0_i32_1 = arith.constant 0 : i32
    return %c0_i32, %c0_i32_0 : i32, i32
  }
  func.func @transform_2(%arg0: i32) -> (i32, i32) {
    %c0_i32 = arith.constant 0 : i32
    %c0_i32_0 = arith.constant 0 : i32
    %c0_i32_1 = arith.constant 0 : i32
    return %c0_i32, %c0_i32_0 : i32, i32
  }
  func.func @transform_3(%arg0: i32) -> (i32, i32) {
    %c0_i32 = arith.constant 0 : i32
    %c0_i32_0 = arith.constant 0 : i32
    %c0_i32_1 = arith.constant 0 : i32
    return %c0_i32, %c0_i32_0 : i32, i32
  }
  func.func @transform_4(%arg0: i32) -> (i32, i32) {
    %c0_i32 = arith.constant 0 : i32
    %c0_i32_0 = arith.constant 0 : i32
    %c0_i32_1 = arith.constant 0 : i32
    return %c0_i32, %c0_i32_0 : i32, i32
  }
  func.func @transform_5(%arg0: i32) -> (i32, i32, i32) {
    %c0_i32 = arith.constant 0 : i32
    %c0_i32_0 = arith.constant 0 : i32
    %c0_i32_1 = arith.constant 0 : i32
    return %arg0, %c0_i32, %c0_i32_0 : i32, i32, i32
  }
}

</mosaic_0001>

<bundles_post_ra>
// kernel: _lambda_.14
= control target key start
LH: loop header
LB: loop body
LE: loop exit
PB: predicated region body
PF: predicated region fallthrough
CT: control target
= control target key end

     0   :  { %s592_s12 = smov 0   ;;  %s640_s0 = inlined_call_operand.vmem [shape: f32[2,2,32,8], index: 0, kind: input, shape index: {}]   ;;  %s641_s1 = inlined_call_operand.vmem [shape: bf16[3,8,16], index: 1, kind: input, shape index: {}]   ;;  %s642_s2 = inlined_call_operand.vmem [shape: f32[1,16], index: 2, kind: input, shape index: {}]   ;;  %s643_s3 = inlined_call_operand.vmem [shape: f32[2,31,16], index: 3, kind: output, shape index: {}]  }
   0x1 LB: > { %s484_s13 = sadd.s32 4294967295, %s570_s12   ;;  %p488_p0 = scmp.ge.s32.totalorder %s570_s12, 1  ;;  %s570_s12 = sphi %s592_s12, %s13_s12  }
   0x2   : > { %p137_p1 = scmp.lt.s32.totalorder %s570_s12, 3 }
   0x4   : > { %p138_p2 = pnand %p488_p0, %p137_p1 }
   0x5   : > { %v178_v0 = vld [vmem:[%s641_s1] sm:$0xf] (!%p138_p2)  ;;  %vm195_vm0 = vcmask (!%p138_p2), 1043456   ;;  %p161_p3 = scmp.lt.s32.totalorder (!%p138_p2), %s484_s13, 1  ;;  %v502_v2 = vld [vmem:[%s641_s1 + $0x8] sm:$0xf] (!%p138_p2) }
   0x6   : > { %141 = sbr.rel (%p138_p2) target bundleno = 277 (0x115), region = 32  ;;  %546 = vmatprep.subr.msk.bf16.mxu0 (!%p138_p2), %vm195_vm0, %v178_v0  ;;  %v255_v1 = vsel (!%p138_p2), %vm195_vm0, %v178_v0, 0  ;;  %v497_v3 = vld [vmem:[%s641_s1 + $0x4] sm:$0xf] (!%p138_p2)  ;;  %vm188_vm1 = vcmask (!%p138_p2), 64512   ;;  %v321_v13 = vsel (!%p138_p2), %vm195_vm0, %v502_v2, 0 }
   0x7   : > { %526 = vmatpush3.bf16.msra.mxu0 (!%p138_p2), %v255_v1  ;;  %545 = vmatprep.subr.msk.bf16.mxu1 (!%p138_p2), %vm195_vm0, %v497_v3  ;;  %v197_v4 = vsel (!%p138_p2), %vm195_vm0, %v497_v3, 0  ;;  %v505_v29 = vld [vmem:[%s642_s2] ss:$0 sm:$0xff] (!%p138_p2)  ;;  %vm423_vm2 = vcmask (!%p138_p2), 130048   ;;  %vm427_vm3 = vcmask (!%p138_p2), 129024  }
   0x8   : > { %547 = vmatprep.subr.msk.bf16.mxu0 (!%p138_p2), %vm195_vm0, %v502_v2  ;;  %520 = vmatpush3.bf16.msra.mxu1 (!%p138_p2), %v197_v4 }
   0xd   : > { %s645_s13 = smov (!%p161_p3, %s484_s13), 1 }
   0xe   : > { %s508_s20 = sshll.u32 %s645_s13, 6  ;;  %s509_s26 = sshll.u32 %s645_s13, 5 }
   0xf   : > { %s165_s23 = scalar_lea.vmem %s640_s0, %s508_s20  ;;  %s170_s29 = scalar_lea.vmem %s643_s3, %s509_s26 }
  0x10   : > { %v172_v5 = vld [vmem:[%s165_s23] sm:$0xff]  ;;  %v173_v6 = vld [vmem:[%s165_s23 + $0x8] sm:$0xff]  ;;  %v174_v7 = vld [vmem:[%s165_s23 + $0x10] sm:$0xff] }
  0x11   : > { %v176_v8 = vpack.c.bf16 %v173_v6, %v172_v5  ;;  %v175_v9 = vld [vmem:[%s165_s23 + $0x18] sm:$0x7f]  ;;  %v493_v10 = vld [vmem:[%s165_s23 + $0x20] sm:$0xff]  ;;  %v494_v11 = vld [vmem:[%s165_s23 + $0x28] sm:$0xff] }
  0x12   : > { %v177_v12 = vpack.c.bf16 %v175_v9, %v174_v7  ;;  %v184_v14 = vpack.c.bf16 %v494_v11, %v493_v10  ;;  %v495_v15 = vld [vmem:[%s165_s23 + $0x30] sm:$0xff]  ;;  %v496_v16 = vld [vmem:[%s165_s23 + $0x38] sm:$0x7f]  ;;  %v306_v17 = vld [vmem:[%s165_s23 + $0x1] sm:$0xff] }
  0x13   : > { %527 = vmatprep.mubr.msk.bf16.mxu0 %vm188_vm1, %v176_v8  ;;  %v185_v18 = vpack.c.bf16 %v496_v16, %v495_v15  ;;  %v307_v19 = vld [vmem:[%s165_s23 + $0x9] sm:$0xff]  ;;  %v308_v21 = vld [vmem:[%s165_s23 + $0x11] sm:$0xff]  ;;  %v309_v22 = vld [vmem:[%s165_s23 + $0x19] sm:$0x7f] }
  0x14   : > { %528 = vmatmul.mubr.msk.bf16.vlgmr.msra.gmra.mrb[0].mxu0 %vm188_vm1, %v177_v12  ;;  %521 = vmatprep.mubr.msk.bf16.mxu1 %vm188_vm1, %v184_v14  ;;  %v310_v20 = vpack.c.bf16 %v307_v19, %v306_v17  ;;  %v311_v23 = vpack.c.bf16 %v309_v22, %v308_v21 }
  0x15   : > { %532 = vmatpush3.bf16.msra.mxu0 %v321_v13  ;;  %522 = vmatmul.mubr.msk.bf16.vlgmr.msra.gmra.mrb[0].mxu1 %vm188_vm1, %v185_v18 }
  0x16   : > { %533 = vmatprep.mubr.msk.bf16.mxu0 %vm188_vm1, %v310_v20 }
  0x20   : > { %534 = vmatmul.mubr.msk.bf16.vlgmr.msra.gmra.mrb[0].mxu0 %vm188_vm1, %v311_v23 }
  0xe8   : > { %v523_v24 = vpop.f32.mrb[0].mxu1 }
  0xe9   : > { %v233_v25 = vpop.f32.mrb[1].mxu1 }
  0xea   : > { %v524_v26 = vpop.f32.mrb[2].mxu1 }
  0xeb   : > { %v236_v27 = vpop.f32.mrb[3].mxu1 }
  0xf3   : > { %v535_v28 = vpop.f32.mrb[0].mxu0 }
  0xf4   : > { %v537_v30 = vadd.f32 %v535_v28, %v523_v24  ;;  %v357_v31 = vpop.f32.mrb[1].mxu0 }
  0xf5   : > { %v538_v32 = vadd.f32 %v357_v31, %v233_v25  ;;  %v536_v33 = vpop.f32.mrb[2].mxu0 }
  0xf6   : > { %v385_v34 = vadd.f32 %v537_v30, %v505_v29  ;;  %v539_v35 = vadd.f32 %v536_v33, %v524_v26  ;;  %v360_v36 = vpop.f32.mrb[3].mxu0 }
  0xf7   : > { %v383_v37 = vadd.f32 %v538_v32, %v505_v29  ;;  %v540_v38 = vadd.f32 %v360_v36, %v236_v27 }
  0xf8   : > { %v393_v39 = vmul.f32 0.044715, %v385_v34  ;;  %v386_v40 = vadd.f32 %v539_v35, %v505_v29  ;;  %v389_v63 = vmul.f32 0.5, %v385_v34 }
  0xf9   : > { %v391_v41 = vmul.f32 0.044715, %v383_v37  ;;  %v384_v42 = vadd.f32 %v540_v38, %v505_v29  ;;  %v387_v2 = vmul.f32 0.5, %v383_v37 }
  0xfa   : > { %v397_v43 = vmul.f32 %v393_v39, %v385_v34  ;;  %v394_v44 = vmul.f32 0.044715, %v386_v40  ;;  %v390_v6 = vmul.f32 0.5, %v386_v40 }
  0xfb   : > { %v395_v45 = vmul.f32 %v391_v41, %v383_v37  ;;  %v392_v46 = vmul.f32 0.044715, %v384_v42  ;;  %v388_v9 = vmul.f32 0.5, %v384_v42 }
  0xfc   : > { %v401_v47 = vmul.f32 %v397_v43, %v385_v34  ;;  %v398_v48 = vmul.f32 %v394_v44, %v386_v40 }
  0xfd   : > { %v399_v49 = vmul.f32 %v395_v45, %v383_v37  ;;  %v396_v50 = vmul.f32 %v392_v46, %v384_v42 }
  0xfe   : > { %v405_v51 = vadd.f32 %v401_v47, %v385_v34  ;;  %v402_v52 = vmul.f32 %v398_v48, %v386_v40 }
  0xff   : > { %v403_v53 = vadd.f32 %v399_v49, %v383_v37  ;;  %v400_v54 = vmul.f32 %v396_v50, %v384_v42 }
 0x100   : > { %v409_v55 = vmul.f32 0.7978846, %v405_v51  ;;  %v406_v56 = vadd.f32 %v402_v52, %v386_v40 }
 0x101   : > { %v407_v57 = vmul.f32 0.7978846, %v403_v53  ;;  %v404_v58 = vadd.f32 %v400_v54, %v384_v42 }
 0x102   : > { %556 = vtanh.f32 %v409_v55  ;;  %v410_v59 = vmul.f32 0.7978846, %v406_v56 }
 0x103   : > { %558 = vtanh.f32 %v407_v57  ;;  %v408_v60 = vmul.f32 0.7978846, %v404_v58 }
 0x104   : > { %560 = vtanh.f32 %v410_v59 }
 0x105   : > { %562 = vtanh.f32 %v408_v60 }
 0x10c   : > { %v557_v61 = vpop.eup %556 }
 0x10d   : > { %v559_v62 = vpop.eup %558  ;;  %v417_v0 = vadd.f32 1.0, %v557_v61 }
 0x10e   : > { %v561_v1 = vpop.eup %560  ;;  %v415_v3 = vadd.f32 1.0, %v559_v62 }
 0x10f   : > { %v563_v4 = vpop.eup %562  ;;  %v421_v5 = vmul.f32 %v417_v0, %v389_v63  ;;  %v418_v7 = vadd.f32 1.0, %v561_v1 }
 0x110   : > { %v419_v8 = vmul.f32 %v415_v3, %v387_v2  ;;  %v416_v10 = vadd.f32 1.0, %v563_v4 }
 0x111   : > { %426 = vst.msk [vmem:[%s170_s29 + $0x10] sm:$0xff] %vm423_vm2, %v421_v5  ;;  %v422_v11 = vmul.f32 %v418_v7, %v390_v6 }
 0x112   : > { %424 = vst.msk [vmem:[%s170_s29] sm:$0xff] %vm423_vm2, %v419_v8  ;;  %v420_v12 = vmul.f32 %v416_v10, %v388_v9 }
 0x113   : > { %428 = vst.msk [vmem:[%s170_s29 + $0x18] sm:$0x7f] %vm427_vm3, %v422_v11 }
 0x114   : > { %425 = vst.msk [vmem:[%s170_s29 + $0x8] sm:$0xff] %vm423_vm2, %v420_v12 }
 0x115 PF: > { %s13_s12 = sadd.s32 1, %s570_s12  }
 0x116   : > { %p10_p4 = scmp.ge.s32.totalorder %s13_s12, 4  }
 0x118   :  { %12 = sbr.rel (!%p10_p4) target bundleno = 1 (0x1), region = 65 }

// kernel: _lambda_.15
= control target key start
LH: loop header
LB: loop body
LE: loop exit
PB: predicated region body
PF: predicated region fallthrough
CT: control target
= control target key end

     0   :  { %s662_s18 = smov 0   ;;  %s709_s0 = inlined_call_operand.vmem [shape: f32[2,2,16,16], index: 0, kind: input, shape index: {}]   ;;  %s710_s1 = inlined_call_operand.vmem [shape: bf16[3,16,16], index: 1, kind: input, shape index: {}]   ;;  %s711_s2 = inlined_call_operand.vmem [shape: f32[1,16], index: 2, kind: input, shape index: {}]   ;;  %s712_s3 = inlined_call_operand.vmem [shape: bf16[16,32], index: 3, kind: input, shape index: {}]   ;;  %s713_s4 = inlined_call_operand.vmem [shape: f32[1,32], index: 4, kind: input, shape index: {}]   ;;  %s714_s5 = inlined_call_operand.vmem [shape: f32[2,15,32], index: 5, kind: output, shape index: {}]  }
   0x1 LB: > { %s543_s19 = sadd.s32 4294967295, %s628_s18   ;;  %p547_p0 = scmp.ge.s32.totalorder %s628_s18, 1  ;;  %s628_s18 = sphi %s662_s18, %s15_s18  }
   0x2   : > { %p187_p1 = scmp.lt.s32.totalorder %s628_s18, 3 }
   0x4   : > { %p188_p2 = pnand %p547_p0, %p187_p1 }
   0x5   : > { %v614_v0 = vld [vmem:[%s710_s1 + $0x8] sm:$0xff] (!%p188_p2)   ;;  %v630_v1 = vmov (!%p188_p2), 0.0   ;;  %v615_v2 = vld [vmem:[%s710_s1] sm:$0xff] (!%p188_p2)   ;;  %vm631_vm0 = vmmov (!%p188_p2), 0   ;;  %p215_p3 = scmp.lt.s32.totalorder (!%p188_p2), %s543_s19, 1  ;;  %v616_v3 = vld [vmem:[%s710_s1 + $0x10] sm:$0xff] (!%p188_p2)  }
   0x6   : > { %191 = sbr.rel (%p188_p2) target bundleno = 489 (0x1e9), region = 40  ;;  %580 = vmatprep.subr.bf16.mxu0 (!%p188_p2), %v630_v1  ;;  %586 = vmatprep.subr.bf16.mxu1 (!%p188_p2), %v630_v1  ;;  %vm244_vm1 = vcmask (!%p188_p2), 130048   ;;  %v617_v13 = vld [vmem:[%s712_s3] sm:$0xff] (!%p188_p2)   ;;  %vm484_vm2 = vcmask (!%p188_p2), 261120   ;;  %vm486_vm3 = vcmask (!%p188_p2), 260096  }
   0x7   : > { %581 = vmatpush3.bf16.msra.mxu0 (!%p188_p2), %v614_v0  ;;  %582 = vmatprep.mubr.msk.bf16.mxu0 (!%p188_p2), %vm631_vm0, %v630_v1  ;;  %v564_v25 = vld [vmem:[%s711_s2] ss:$0 sm:$0xff] (!%p188_p2) }
   0x8   : > { %587 = vmatpush3.bf16.msra.mxu1 (!%p188_p2), %v615_v2  ;;  %588 = vmatprep.mubr.msk.bf16.mxu1 (!%p188_p2), %vm631_vm0, %v630_v1  ;;  %v565_v52 = vld [vmem:[%s713_s4] ss:$0 sm:$0xff] (!%p188_p2) }
   0x9   : > { %592 = vmatprep.subr.bf16.mxu0 (!%p188_p2), %v630_v1  ;;  %598 = vmatprep.subr.bf16.mxu1 (!%p188_p2), %v630_v1 }
   0xd   : > { %s716_s19 = smov (!%p215_p3, %s543_s19), 1 }
   0xe   : > { %s570_s24 = sshll.u32 %s716_s19, 5  ;;  %s571_s9 = sshll.u32 %s716_s19, 4 }
   0xf   : > { %s219_s27 = scalar_lea.vmem %s709_s0, %s570_s24  ;;  %s224_s14 = scalar_lea.vmem %s714_s5, %s571_s9 }
  0x10   : > { %v552_v4 = vld [vmem:[%s219_s27 + $0x10] sm:$0xff]  ;;  %v553_v5 = vld [vmem:[%s219_s27 + $0x18] sm:$0x7f]  ;;  %v226_v6 = vld [vmem:[%s219_s27] sm:$0xff] }
  0x11   : > { %v234_v7 = vpack.c.bf16 %v553_v5, %v552_v4  ;;  %v227_v8 = vld [vmem:[%s219_s27 + $0x8] sm:$0x7f] }
  0x12   : > { %v228_v9 = vpack.c.bf16 %v227_v8, %v226_v6  ;;  %v339_v10 = vld [vmem:[%s219_s27 + $0x1] sm:$0xff]  ;;  %v340_v11 = vld [vmem:[%s219_s27 + $0x9] sm:$0x7f] }
  0x13   : > { %583 = vmatmul.mubr.msk.bf16.vlgmr.msra.gmra.mrb[0].mxu0 %vm244_vm1, %v234_v7  ;;  %v341_v12 = vpack.c.bf16 %v340_v11, %v339_v10 }
  0x14   : > { %589 = vmatmul.mubr.msk.bf16.vlgmr.msra.gmra.mrb[0].mxu1 %vm244_vm1, %v228_v9  ;;  %593 = vmatpush3.bf16.msra.mxu0 %v616_v3 }
  0x15   : > { %594 = vmatprep.mubr.msk.bf16.mxu0 %vm631_vm0, %v630_v1  ;;  %600 = vmatprep.mubr.msk.bf16.mxu1 %vm631_vm0, %v630_v1 }
  0x16   : > { %599 = vmatpush3.bf16.msra.mxu1 %v617_v13 }
  0x1b   : > { %595 = vmatmul.mubr.msk.bf16.vlgmr.msra.gmra.mrb[4].mxu0 %vm244_vm1, %v341_v12 }
  0xe6   : > { %v282_v14 = vpop.f32.mrb[0].mxu0 }
  0xe7   : > { %v332_v15 = vpop.f32.mrb[0].mxu1  ;;  %v584_v16 = vpop.f32.mrb[1].mxu0 }
  0xe8   : > { %v333_v17 = vadd.f32 %v332_v15, %v282_v14  ;;  %v590_v18 = vpop.f32.mrb[1].mxu1  ;;  %v285_v19 = vpop.f32.mrb[2].mxu0 }
  0xe9   : > { %v335_v20 = vpop.f32.mrb[2].mxu1  ;;  %v585_v21 = vpop.f32.mrb[3].mxu0 }
  0xea   : > { %v336_v22 = vadd.f32 %v335_v20, %v285_v19  ;;  %v591_v23 = vpop.f32.mrb[3].mxu1 }
  0xee   : > { %v388_v24 = vpop.f32.mrb[4].mxu0 }
  0xef   : > { %v395_v26 = vadd.f32 %v388_v24, %v333_v17  ;;  %v596_v27 = vpop.f32.mrb[5].mxu0 }
  0xf0   : > { %v391_v28 = vpop.f32.mrb[6].mxu0 }
  0xf1   : > { %v404_v29 = vadd.f32 %v564_v25, %v395_v26  ;;  %v396_v30 = vadd.f32 %v391_v28, %v336_v22  ;;  %v597_v31 = vpop.f32.mrb[7].mxu0 }
  0xf3   : > { %v408_v32 = vmul.f32 0.044715, %v404_v29  ;;  %v405_v33 = vadd.f32 %v564_v25, %v396_v30  ;;  %v406_v46 = vmul.f32 0.5, %v404_v29 }
  0xf5   : > { %v410_v34 = vmul.f32 %v408_v32, %v404_v29  ;;  %v409_v35 = vmul.f32 0.044715, %v405_v33  ;;  %v407_v47 = vmul.f32 0.5, %v405_v33 }
  0xf7   : > { %v412_v36 = vmul.f32 %v410_v34, %v404_v29  ;;  %v411_v37 = vmul.f32 %v409_v35, %v405_v33 }
  0xf9   : > { %v414_v38 = vadd.f32 %v412_v36, %v404_v29  ;;  %v413_v39 = vmul.f32 %v411_v37, %v405_v33 }
  0xfb   : > { %v416_v40 = vmul.f32 0.7978846, %v414_v38  ;;  %v415_v41 = vadd.f32 %v413_v39, %v405_v33 }
  0xfd   : > { %618 = vtanh.f32 %v416_v40  ;;  %v417_v42 = vmul.f32 0.7978846, %v415_v41 }
  0xff   : > { %620 = vtanh.f32 %v417_v42 }
 0x107   : > { %v619_v43 = vpop.eup %618 }
 0x108   : > { %v420_v44 = vadd.f32 1.0, %v619_v43 }
 0x109   : > { %v621_v45 = vpop.eup %620 }
 0x10a   : > { %v421_v48 = vadd.f32 1.0, %v621_v45  ;;  %v422_v49 = vmul.f32 %v420_v44, %v406_v46 }
 0x10c   : > { %v423_v50 = vmul.f32 %v421_v48, %v407_v47 }
 0x10e   : > { %v424_v51 = vpack.c.bf16 %v423_v50, %v422_v49 }
 0x110   : > { %601 = vmatmul.mubr.msk.bf16.vlgmr.msra.gmra.mrb[4].mxu1 %vm244_vm1, %v424_v51 }
 0x1e3   : > { %v477_v53 = vpop.f32.mrb[4].mxu1 }
 0x1e4   : > { %v478_v54 = vadd.f32 %v565_v52, %v477_v53  ;;  %v602_v55 = vpop.f32.mrb[5].mxu1 }
 0x1e5   : > { %v480_v56 = vpop.f32.mrb[6].mxu1 }
 0x1e6   : > { %485 = vst.msk [vmem:[%s224_s14] sm:$0xff] %vm484_vm2, %v478_v54  ;;  %v481_v57 = vadd.f32 %v565_v52, %v480_v56  ;;  %v603_v58 = vpop.f32.mrb[7].mxu1 }
 0x1e8   : > { %487 = vst.msk [vmem:[%s224_s14 + $0x8] sm:$0x7f] %vm486_vm3, %v481_v57 }
 0x1e9 PF: > { %s15_s18 = sadd.s32 1, %s628_s18  }
 0x1ea   : > { %p12_p4 = scmp.ge.s32.totalorder %s15_s18, 4  }
 0x1ec   :  { %14 = sbr.rel (!%p12_p4) target bundleno = 1 (0x1), region = 73 }

// kernel: _lambda_.17
= control target key start
LH: loop header
LB: loop body
LE: loop exit
PB: predicated region body
PF: predicated region fallthrough
CT: control target
= control target key end

     0   :  { %s1396_s27 = smov 0   ;;  %s1572_s0 = inlined_call_operand.vmem [shape: f32[2,15,32], index: 0, kind: input, shape index: {}]   ;;  %s1573_s1 = inlined_call_operand.vmem [shape: bf16[32,96], index: 1, kind: input, shape index: {}]   ;;  %s1574_s2 = inlined_call_operand.vmem [shape: f32[1,96], index: 2, kind: input, shape index: {}]   ;;  %s1575_s3 = inlined_call_operand.vmem [shape: bf16[32,32], index: 3, kind: input, shape index: {}]   ;;  %s1576_s4 = inlined_call_operand.vmem [shape: f32[1,32], index: 4, kind: input, shape index: {}]   ;;  %s1577_s5 = inlined_call_operand.vmem [shape: f32[1,32], index: 5, kind: input, shape index: {}]   ;;  %s1578_s6 = inlined_call_operand.vmem [shape: f32[1,32], index: 6, kind: input, shape index: {}]   ;;  %s1579_s7 = inlined_call_operand.vmem [shape: f32[2,1,15], index: 7, kind: input, shape index: {}]   ;;  %s1580_s8 = inlined_call_operand.vmem [shape: f32[2,15,32], index: 8, kind: output, shape index: {}]  }
   0x1 LB: > { %s1128_s28 = sadd.s32 4294967295, %s1332_s27   ;;  %p1132_p0 = scmp.ge.s32.totalorder %s1332_s27, 1  ;;  %s1332_s27 = sphi %s1396_s27, %s18_s27  }
   0x2   : > { %p270_p1 = scmp.lt.s32.totalorder %s1332_s27, 3 }
   0x4   : > { %p271_p2 = pnand %p1132_p0, %p270_p1 }
   0x5   : > { %v1286_v0 = vld [vmem:[%s1573_s1] sm:$0xff] (!%p271_p2)   ;;  %v1334_v1 = vmov (!%p271_p2), 0.0   ;;  %v1287_v2 = vld [vmem:[%s1573_s1 + $0x8] sm:$0xff] (!%p271_p2)   ;;  %vm1335_vm0 = vmmov (!%p271_p2), 0   ;;  %p307_p3 = scmp.lt.s32.totalorder (!%p271_p2), %s1128_s28, 1  ;;  %vm347_vm1 = vcmask (!%p271_p2), 261120  }
   0x6   : > { %274 = sbr.rel (%p271_p2) target bundleno = 1831 (0x727), region = 52  ;;  %1182 = vmatprep.subr.bf16.mxu0 (!%p271_p2), %v1334_v1  ;;  %1190 = vmatprep.subr.bf16.mxu1 (!%p271_p2), %v1334_v1  ;;  %v1137_v6 = vld [vmem:[%s1574_s2] ss:$0 sm:$0xff] (!%p271_p2)  ;;  %s1336_s17 = smov (!%p271_p2), 120   ;;  %vm396_vm2 = vcmask (!%p271_p2), 64512   ;;  %vm455_vm3 = vcmask (!%p271_p2), 121856  }
   0x7   : > { %1183 = vmatpush3.bf16.msra.mxu0 (!%p271_p2), %v1286_v0  ;;  %1186 = vmatprep.mubr.msk.bf16.mxu0 (!%p271_p2), %vm1335_vm0, %v1334_v1  ;;  %s1337_s18 = smov (!%p271_p2), 96   ;;  %s1338_s19 = smov (!%p271_p2), 80   ;;  %vm459_vm4 = vcmask (!%p271_p2), 120832   ;;  %vm485_vm5 = vcmask (!%p271_p2), 1046528   ;;  %vm486_vm6 = vcmask (!%p271_p2), 1047552   ;;  %vm940_vm7 = vcmask (!%p271_p2), 130048  }
   0x8   : > { %1184 = vmatprep.subr.bf16.mxu0 (!%p271_p2), %v1334_v1  ;;  %1192 = vmatprep.mubr.msk.bf16.mxu1 (!%p271_p2), %vm1335_vm0, %v1334_v1  ;;  %s1339_s20 = smov (!%p271_p2), 88   ;;  %s1340_s21 = smov (!%p271_p2), 72   ;;  %vm943_vm8 = vcmask (!%p271_p2), 195584   ;;  %vm1019_vm9 = vcmask (!%p271_p2), 260096  }
   0x9   : > { %s1341_s22 = smov (!%p271_p2), 112   ;;  %s1342_s23 = smov (!%p271_p2), 104  }
   0xa   : > { %s1343_s29 = smov (!%p271_p2), 64   ;;  %s1344_s30 = smov (!%p271_p2), 56  }
   0xb   : > { %1185 = vmatpush3.bf16.msra.mxu0 (!%p271_p2), %v1287_v2  ;;  %s1345_s9 = smov (!%p271_p2), 48   ;;  %s1346_s10 = smov (!%p271_p2), 40  }
   0xc   : > { %1196 = vmatprep.subr.bf16.mxu0 (!%p271_p2), %v1334_v1 }
   0xd   : > { %s1582_s28 = smov (!%p307_p3, %s1128_s28), 1 }
   0xe   : > { %s1158_s11 = sshll.u32 %s1582_s28, 4  ;;  %s314_s26 = scalar_lea.vmem %s1579_s7, %s1582_s28 }
   0xf   : > { %s311_s14 = scalar_lea.vmem %s1572_s0, %s1158_s11  ;;  %v1142_v25 = vld [vmem:[%s314_s26] ss:$0 sm:$0xff] }
  0x10   : > { %v1426_v3 = vld [vmem:[%s311_s14] sm:$0xff]  ;;  %v1428_v4 = vld [vmem:[%s311_s14 + $0x8] sm:$0x7f]  ;;  %s1348_s14 = smov 8  }
  0x11   : > { %v323_v5 = vpack.c.bf16 %v1428_v4, %v1426_v3 }
  0x13   : > { %1187 = vmatmul.mubr.msk.bf16.vlgmr.msra.gmra.mrb[0].mxu0 %vm347_vm1, %v323_v5 }
  0x14   : > { %1198 = vmatprep.mubr.msk.bf16.mxu0 %vm1335_vm0, %v1334_v1 }
  0xe6   : > { %v385_v7 = vpop.f32.mrb[0].mxu0 }
  0xe7   : > { %v1188_v8 = vpop.f32.mrb[1].mxu0  ;;  %v386_v10 = vadd.f32 %v1137_v6, %v385_v7 }
  0xe8   : > { %v388_v9 = vpop.f32.mrb[2].mxu0 }
  0xe9   : > { %v389_v11 = vadd.f32 %v1137_v6, %v388_v9  ;;  %v1189_v12 = vpop.f32.mrb[3].mxu0 }
  0xeb   : > { %v1438_v13 = vpack.c.bf16 %v389_v11, %v386_v10 }
  0xed   : > { %533 = vrot.lane.b32.xlu1 %v1438_v13, %s1336_s17  ;;  %394 = vrot.lane.b32.xlu0 %v1438_v13, %s1337_s18  ;;  %s1349_s17 = smov 16   ;;  %s1350_s18 = smov 24  }
  0xf1   : > { %662 = vrot.lane.b32.xlu1 %v1438_v13, %s1338_s19  ;;  %535 = vrot.lane.b32.xlu0 %v1438_v13, %s1339_s20 }
  0xf5   : > { %789 = vrot.lane.b32.xlu1 %v1438_v13, %s1340_s21  ;;  %660 = vrot.lane.b32.xlu0 %v1438_v13, %s1341_s22 }
  0xf9   : > { %787 = vrot.lane.b32.xlu0 %v1438_v13, %s1342_s23 }
 0x15f   : > { %v395_v14 = vpop.permute.xlu0 %394  ;;  %v534_v17 = vpop.permute.xlu1 %533 }
 0x160   : > { %v401_v15 = vsel %vm396_vm2, %v395_v14, 0 }
 0x161   : > { %1191 = vmatpush3.bf16.xpose.msra.mxu1 %v401_v15 }
 0x162   : > { %1202 = vmatprep.subr.bf16.mxu1 %v1334_v1 }
 0x163   : > { %v536_v16 = vpop.permute.xlu0 %535  ;;  %v663_v19 = vpop.permute.xlu1 %662 }
 0x164   : > { %v541_v18 = vsel %vm396_vm2, %v536_v16, 0  ;;  %v668_v20 = vsel %vm396_vm2, %v663_v19, 0 }
 0x167   : > { %v790_v21 = vpop.permute.xlu1 %789  ;;  %v661_v22 = vpop.permute.xlu0 %660 }
 0x168   : > { %1193 = vmatmul.mubr.msk.bf16.vlgmr.msra.gmra.mrb[0].mxu1 %vm396_vm2, %v1438_v13  ;;  %v795_v23 = vsel %vm396_vm2, %v790_v21, 0 }
 0x169   : > { %1203 = vmatpush3.bf16.xpose.msra.mxu1 %v541_v18  ;;  %1204 = vmatprep.mubr.msk.bf16.mxu1 %vm1335_vm0, %v1334_v1 }
 0x16a   : > { %1214 = vmatprep.subr.bf16.mxu1 %v1334_v1 }
 0x16b   : > { %v788_v24 = vpop.permute.xlu0 %787 }
 0x170   : > { %1205 = vmatmul.mubr.msk.bf16.vlgmr.msra.gmra.mrb[4].mxu1 %vm396_vm2, %v534_v17 }
 0x171   : > { %1215 = vmatpush3.bf16.xpose.msra.mxu1 %v668_v20  ;;  %1216 = vmatprep.mubr.msk.bf16.mxu1 %vm1335_vm0, %v1334_v1 }
 0x172   : > { %1226 = vmatprep.subr.bf16.mxu1 %v1334_v1 }
 0x178   : > { %1217 = vmatmul.mubr.msk.bf16.vlgmr.msra.gmra.mrb[8].mxu1 %vm396_vm2, %v661_v22 }
 0x179   : > { %1227 = vmatpush3.bf16.xpose.msra.mxu1 %v795_v23  ;;  %1228 = vmatprep.mubr.msk.bf16.mxu1 %vm1335_vm0, %v1334_v1 }
 0x17a   : > { %1238 = vmatprep.subr.bf16.mxu1 %v1334_v1 }
 0x180   : > { %1229 = vmatmul.mubr.msk.bf16.vlgmr.msra.gmra.mrb[12].mxu1 %vm396_vm2, %v788_v24 }
 0x181   : > { %1242 = vmatprep.mubr.msk.bf16.mxu1 %vm1335_vm0, %v1334_v1 }
 0x23b   : > { %v437_v26 = vpop.f32.mrb[0].mxu1 }
 0x23c   : > { %v444_v27 = vmul.f32 0.35355338, %v437_v26  ;;  %v1194_v28 = vpop.f32.mrb[1].mxu1 }
 0x23d   : > { %v440_v29 = vpop.f32.mrb[2].mxu1 }
 0x23e   : > { %v445_v30 = vmul.f32 0.35355338, %v440_v29  ;;  %v1195_v31 = vpop.f32.mrb[3].mxu1  ;;  %v453_v32 = vadd.f32 %v1142_v25, %v444_v27 }
 0x240   : > { %v456_v33 = vsel %vm455_vm3, %v453_v32, -inf  ;;  %v454_v34 = vadd.f32 %v1142_v25, %v445_v30 }
 0x241   : > { %457 = vmax.xlane.f32.xlu1 %v456_v33 }
 0x242   : > { %v460_v35 = vsel %vm459_vm4, %v454_v34, -inf }
 0x243   : > { %461 = vmax.xlane.f32.xlu0 %v460_v35  ;;  %v577_v36 = vpop.f32.mrb[4].mxu1 }
 0x244   : > { %v584_v37 = vmul.f32 0.35355338, %v577_v36  ;;  %v1206_v38 = vpop.f32.mrb[5].mxu1 }
 0x245   : > { %v580_v39 = vpop.f32.mrb[6].mxu1 }
 0x246   : > { %v585_v40 = vmul.f32 0.35355338, %v580_v39  ;;  %v1207_v41 = vpop.f32.mrb[7].mxu1  ;;  %v1474_v42 = vadd.f32 %v1142_v25, %v584_v37 }
 0x248   : > { %v588_v43 = vsel %vm455_vm3, %v1474_v42, -inf  ;;  %v587_v44 = vadd.f32 %v1142_v25, %v585_v40 }
 0x249   : > { %589 = vmax.xlane.f32.xlu0 %v588_v43 }
 0x24a   : > { %v591_v45 = vsel %vm459_vm4, %v587_v44, -inf }
 0x24b   : > { %592 = vmax.xlane.f32.xlu1 %v591_v45  ;;  %v704_v46 = vpop.f32.mrb[8].mxu1 }
 0x24c   : > { %v711_v47 = vmul.f32 0.35355338, %v704_v46  ;;  %v1218_v48 = vpop.f32.mrb[9].mxu1 }
 0x24d   : > { %v707_v49 = vpop.f32.mrb[10].mxu1 }
 0x24e   : > { %v712_v50 = vmul.f32 0.35355338, %v707_v49  ;;  %v1219_v51 = vpop.f32.mrb[11].mxu1  ;;  %v1479_v52 = vadd.f32 %v1142_v25, %v711_v47 }
 0x250   : > { %v715_v53 = vsel %vm455_vm3, %v1479_v52, -inf  ;;  %v714_v54 = vadd.f32 %v1142_v25, %v712_v50 }
 0x251   : > { %716 = vmax.xlane.f32.xlu0 %v715_v53 }
 0x252   : > { %v718_v55 = vsel %vm459_vm4, %v714_v54, -inf }
 0x253   : > { %719 = vmax.xlane.f32.xlu1 %v718_v55  ;;  %v831_v56 = vpop.f32.mrb[12].mxu1 }
 0x254   : > { %v838_v57 = vmul.f32 0.35355338, %v831_v56  ;;  %v1230_v58 = vpop.f32.mrb[13].mxu1 }
 0x255   : > { %v834_v59 = vpop.f32.mrb[14].mxu1 }
 0x256   : > { %v839_v60 = vmul.f32 0.35355338, %v834_v59  ;;  %v1231_v61 = vpop.f32.mrb[15].mxu1  ;;  %v840_v62 = vadd.f32 %v1142_v25, %v838_v57 }
 0x258   : > { %v842_v63 = vsel %vm455_vm3, %v840_v62, -inf  ;;  %v841_v0 = vadd.f32 %v1142_v25, %v839_v60 }
 0x259   : > { %843 = vmax.xlane.f32.xlu0 %v842_v63 }
 0x25a   : > { %v845_v2 = vsel %vm459_vm4, %v841_v0, -inf }
 0x25b   : > { %846 = vmax.xlane.f32.xlu1 %v845_v2 }
 0x2ce   : > { %v458_v5 = vpop.xlane.xlu1 %457 }
 0x2cf   : > { %v463_v6 = vsub.f32 %v453_v32, %v458_v5 }
 0x2d0   : > { %v462_v7 = vpop.xlane.xlu0 %461 }
 0x2d1   : > { %v465_v8 = vmul.f32 1.442695, %v463_v6  ;;  %v464_v9 = vsub.f32 %v454_v34, %v462_v7 }
 0x2d3   : > { %1290 = vpow2.f32 %v465_v8  ;;  %v467_v10 = vmul.f32 1.442695, %v464_v9 }
 0x2d5   : > { %1292 = vpow2.f32 %v467_v10 }
 0x2d6   : > { %v590_v16 = vpop.xlane.xlu0 %589 }
 0x2d7   : > { %v594_v38 = vsub.f32 %v1474_v42, %v590_v16  ;;  %v1347_v42 = vmov 65535  }
 0x2d8   : > { %v593_v11 = vpop.xlane.xlu1 %592  ;;  %v487_v47 = vsel %vm485_vm5, 4294967295, %v1347_v42 }
 0x2d9   : > { %v595_v12 = vsub.f32 %v587_v44, %v593_v11  ;;  %v596_v39 = vmul.f32 1.442695, %v594_v38  ;;  %v488_v50 = vsel %vm486_vm6, %v487_v47, 0 }
 0x2db   : > { %v598_v14 = vmul.f32 1.442695, %v595_v12 }
 0x2dd   : > { %v1486_v15 = vpop.eup %1290  ;;  %1294 = vpow2.f32 %v598_v14 }
 0x2de   : > { %v469_v17 = vsel %vm455_vm3, %v1486_v15, 0.0  ;;  %v717_v22 = vpop.xlane.xlu0 %716 }
 0x2df   : > { %v1490_v18 = vpop.eup %1292  ;;  %470 = vadd.xlane.f32.xlu0 %v469_v17  ;;  %v721_v40 = vsub.f32 %v1479_v52, %v717_v22 }
 0x2e0   : > { %v720_v19 = vpop.xlane.xlu1 %719  ;;  %v472_v20 = vsel %vm459_vm4, %v1490_v18, 0.0 }
 0x2e1   : > { %v722_v21 = vsub.f32 %v714_v54, %v720_v19  ;;  %473 = vadd.xlane.f32.xlu1 %v472_v20  ;;  %v723_v41 = vmul.f32 1.442695, %v721_v40 }
 0x2e3   : > { %v725_v23 = vmul.f32 1.442695, %v722_v21 }
 0x2e5   : > { %1296 = vpow2.f32 %v725_v23 }
 0x2e6   : > { %v844_v24 = vpop.xlane.xlu0 %843 }
 0x2e7   : > { %v1494_v25 = vpop.eup %1294  ;;  %v848_v26 = vsub.f32 %v840_v62, %v844_v24 }
 0x2e8   : > { %v847_v27 = vpop.xlane.xlu1 %846  ;;  %v603_v28 = vsel %vm459_vm4, %v1494_v25, 0.0 }
 0x2e9   : > { %v850_v29 = vmul.f32 1.442695, %v848_v26  ;;  %v849_v30 = vsub.f32 %v841_v0, %v847_v27  ;;  %604 = vadd.xlane.f32.xlu1 %v603_v28 }
 0x2eb   : > { %1298 = vpow2.f32 %v850_v29  ;;  %v852_v31 = vmul.f32 1.442695, %v849_v30 }
 0x2ed   : > { %1300 = vpow2.f32 %v852_v31  ;;  %v1288_v31 = vld [vmem:[%s1575_s3] sm:$0xff]  }
 0x2ee   : > { %1302 = vpow2.f32 %v596_v39  ;;  %1239 = vmatpush3.bf16.msra.mxu1 %v1288_v31 }
 0x2ef   : > { %v1498_v32 = vpop.eup %1296  ;;  %1304 = vpow2.f32 %v723_v41  ;;  %1240 = vmatprep.subr.bf16.mxu1 %v1334_v1 }
 0x2f0   : > { %v730_v33 = vsel %vm459_vm4, %v1498_v32, 0.0 }
 0x2f1   : > { %731 = vadd.xlane.f32.xlu1 %v730_v33 }
 0x2f5   : > { %v1502_v34 = vpop.eup %1298  ;;  %480 = vrot.lane.b32.xlu0 %v1438_v13, %s1343_s29  ;;  %s319_s29 = scalar_lea.vmem %s1580_s8, %s1158_s11 }
 0x2f6   : > { %v854_v35 = vsel %vm455_vm3, %v1502_v34, 0.0 }
 0x2f7   : > { %v1507_v36 = vpop.eup %1300  ;;  %855 = vadd.xlane.f32.xlu1 %v854_v35 }
 0x2f8   : > { %v857_v37 = vsel %vm459_vm4, %v1507_v36, 0.0  ;;  %v1303_v43 = vpop.eup %1302 }
 0x2f9   : > { %v600_v44 = vsel %vm455_vm3, %v1303_v43, 0.0  ;;  %v1305_v45 = vpop.eup %1304 }
 0x2fa   : > { %v727_v46 = vsel %vm455_vm3, %v1305_v45, 0.0 }
 0x2fb   : > { %858 = vadd.xlane.f32.xlu1 %v857_v37 }
 0x30c   : > { %611 = vrot.lane.b32.xlu1 %v1438_v13, %s1344_s30 }
 0x314   : > { %601 = vadd.xlane.f32.xlu0 %v600_v44 }
 0x318   : > { %728 = vadd.xlane.f32.xlu0 %v727_v46 }
 0x32e   : > { %738 = vrot.lane.b32.xlu0 %v1438_v13, %s1345_s9 }
 0x332   : > { %865 = vrot.lane.b32.xlu0 %v1438_v13, %s1346_s10 }
 0x36c   : > { %v471_v48 = vpop.xlane.xlu0 %470 }
 0x36d   : > { %1306 = vrcp.f32 %v471_v48 }
 0x36e   : > { %v474_v49 = vpop.xlane.xlu1 %473 }
 0x36f   : > { %1308 = vrcp.f32 %v474_v49 }
 0x370   : > { %v481_v51 = vpop.permute.xlu0 %480 }
 0x371   : > { %v490_v52 = vand.u32 %v488_v50, %v481_v51 }
 0x373   : > { %1197 = vmatpush3.bf16.msra.mxu0 %v490_v52 }
 0x374   : > { %1208 = vmatprep.subr.bf16.mxu0 %v1334_v1 }
 0x376   : > { %v605_v56 = vpop.xlane.xlu1 %604 }
 0x377   : > { %v1307_v53 = vpop.eup %1306  ;;  %1310 = vrcp.f32 %v605_v56 }
 0x378   : > { %v477_v55 = vmul.f32 %v1307_v53, %v1486_v15 }
 0x379   : > { %v1309_v54 = vpop.eup %1308 }
 0x37a   : > { %v478_v13 = vmul.f32 %v1309_v54, %v1490_v18 }
 0x37c   : > { %v479_v57 = vpack.c.bf16 %v478_v13, %v477_v55 }
 0x37e   : > { %1199 = vmatmul.mubr.msk.bf16.vlgmr.msra.gmra.mrb[4].mxu0 %vm455_vm3, %v479_v57  ;;  %v732_v58 = vpop.xlane.xlu1 %731 }
 0x37f   : > { %1210 = vmatprep.mubr.msk.bf16.mxu0 %vm1335_vm0, %v1334_v1 }
 0x381   : > { %v1311_v2 = vpop.eup %1310 }
 0x382   : > { %v609_v6 = vmul.f32 %v1311_v2, %v1494_v25 }
 0x384   : > { %v856_v59 = vpop.xlane.xlu1 %855 }
 0x388   : > { %v859_v60 = vpop.xlane.xlu1 %858 }
 0x38c   : > { %v612_v61 = vpop.permute.xlu1 %611 }
 0x38d   : > { %v617_v62 = vand.u32 %v612_v61, %v488_v50 }
 0x38f   : > { %1209 = vmatpush3.bf16.msra.mxu0 %v617_v62 }
 0x390   : > { %1220 = vmatprep.subr.bf16.mxu0 %v1334_v1 }
 0x3a1   : > { %v602_v63 = vpop.xlane.xlu0 %601 }
 0x3a2   : > { %1312 = vrcp.f32 %v602_v63 }
 0x3a5   : > { %v729_v0 = vpop.xlane.xlu0 %728 }
 0x3a6   : > { %1314 = vrcp.f32 %v729_v0 }
 0x3a7   : > { %1316 = vrcp.f32 %v732_v58 }
 0x3a8   : > { %1318 = vrcp.f32 %v859_v60 }
 0x3a9   : > { %v739_v8 = vpop.permute.xlu0 %738  ;;  %1320 = vrcp.f32 %v856_v59  ;;  %v1150_v59 = vld [vmem:[%s1576_s4] ss:$0 sm:$0xff] }
 0x3aa   : > { %v744_v11 = vand.u32 %v739_v8, %v488_v50 }
 0x3ac   : > { %v1313_v5 = vpop.eup %1312 }
 0x3ad   : > { %v608_v7 = vmul.f32 %v1313_v5, %v1303_v43  ;;  %v866_v16 = vpop.permute.xlu0 %865 }
 0x3ae   : > { %v871_v19 = vand.u32 %v866_v16, %v488_v50 }
 0x3af   : > { %v610_v9 = vpack.c.bf16 %v609_v6, %v608_v7 }
 0x3b0   : > { %v1315_v10 = vpop.eup %1314 }
 0x3b1   : > { %1211 = vmatmul.mubr.msk.bf16.vlgmr.msra.gmra.mrb[8].mxu0 %vm455_vm3, %v610_v9  ;;  %v1317_v12 = vpop.eup %1316  ;;  %v735_v14 = vmul.f32 %v1315_v10, %v1305_v45 }
 0x3b2   : > { %1221 = vmatpush3.bf16.msra.mxu0 %v744_v11  ;;  %1222 = vmatprep.mubr.msk.bf16.mxu0 %vm1335_vm0, %v1334_v1  ;;  %v736_v15 = vmul.f32 %v1317_v12, %v1498_v32  ;;  %v1319_v18 = vpop.eup %1318 }
 0x3b3   : > { %1232 = vmatprep.subr.bf16.mxu0 %v1334_v1  ;;  %v1321_v20 = vpop.eup %1320  ;;  %v863_v21 = vmul.f32 %v1319_v18, %v1507_v36  ;;  %v1289_v36 = vld [vmem:[%s1575_s3 + $0x8] sm:$0xff]  }
 0x3b4   : > { %v737_v17 = vpack.c.bf16 %v736_v15, %v735_v14  ;;  %v862_v22 = vmul.f32 %v1321_v20, %v1502_v34  ;;  %1241 = vmatpush3.bf16.msra.mxu1 %v1289_v36 }
 0x3b6   : > { %v864_v23 = vpack.c.bf16 %v863_v21, %v862_v22 }
 0x3b9   : > { %1223 = vmatmul.mubr.msk.bf16.vlgmr.msra.gmra.mrb[12].mxu0 %vm455_vm3, %v737_v17 }
 0x3ba   : > { %1233 = vmatpush3.bf16.msra.mxu0 %v871_v19  ;;  %1234 = vmatprep.mubr.msk.bf16.mxu0 %vm1335_vm0, %v1334_v1 }
 0x3c1   : > { %1235 = vmatmul.mubr.msk.bf16.vlgmr.msra.gmra.mrb[16].mxu0 %vm455_vm3, %v864_v23 }
 0x451   : > { %v526_v24 = vpop.f32.mrb[4].mxu0 }
 0x452   : > { %v1200_v25 = vpop.f32.mrb[5].mxu0 }
 0x453   : > { %v529_v26 = vpop.f32.mrb[6].mxu0  ;;  %v1154_v25 = vld [vmem:[%s1577_s5] ss:$0 sm:$0xff] }
 0x454   : > { %v1201_v27 = vpop.f32.mrb[7].mxu0 }
 0x455   : > { %v1155_v27 = vld [vmem:[%s1578_s6] ss:$0 sm:$0xff] }
 0x484   : > { %v653_v28 = vpop.f32.mrb[8].mxu0 }
 0x485   : > { %v1212_v29 = vpop.f32.mrb[9].mxu0 }
 0x486   : > { %v656_v30 = vpop.f32.mrb[10].mxu0 }
 0x487   : > { %v1271_v32 = vpack.i.bf16 %v656_v30, %v653_v28  ;;  %v1213_v33 = vpop.f32.mrb[11].mxu0 }
 0x489   : > { %1272 = vrot.lane.b32.xlu1 %v1271_v32, %s1348_s14 }
 0x48c   : > { %v780_v34 = vpop.f32.mrb[12].mxu0 }
 0x48d   : > { %v1224_v35 = vpop.f32.mrb[13].mxu0 }
 0x48e   : > { %v783_v37 = vpop.f32.mrb[14].mxu0 }
 0x48f   : > { %v1276_v38 = vpack.i.bf16 %v783_v37, %v780_v34  ;;  %v1225_v39 = vpop.f32.mrb[15].mxu0 }
 0x491   : > { %1277 = vrot.lane.b32.xlu0 %v1276_v38, %s1349_s17 }
 0x494   : > { %v907_v40 = vpop.f32.mrb[16].mxu0 }
 0x495   : > { %v1236_v41 = vpop.f32.mrb[17].mxu0 }
 0x496   : > { %v910_v43 = vpop.f32.mrb[18].mxu0 }
 0x497   : > { %v1281_v44 = vpack.i.bf16 %v910_v43, %v907_v40  ;;  %v1237_v45 = vpop.f32.mrb[19].mxu0 }
 0x499   : > { %1282 = vrot.lane.b32.xlu1 %v1281_v44, %s1350_s18 }
 0x4fb   : > { %v1273_v1 = vpop.permute.xlu1 %1272 }
 0x4fc   : > { %v1275_v42 = vunpack.i.h.bf16 %v1273_v1  ;;  %v1274_v47 = vunpack.i.l.bf16 %v1273_v1 }
 0x4fe   : > { %v939_v51 = vsel %vm396_vm2, %v529_v26, %v1275_v42  ;;  %v938_v52 = vsel %vm396_vm2, %v526_v24, %v1274_v47 }
 0x503   : > { %v1278_v46 = vpop.permute.xlu0 %1277 }
 0x504   : > { %v1280_v48 = vunpack.i.h.bf16 %v1278_v46  ;;  %v1279_v49 = vunpack.i.l.bf16 %v1278_v46 }
 0x506   : > { %v942_v55 = vsel %vm940_vm7, %v939_v51, %v1280_v48  ;;  %v941_v13 = vsel %vm940_vm7, %v938_v52, %v1279_v49 }
 0x50b   : > { %v1283_v50 = vpop.permute.xlu1 %1282 }
 0x50c   : > { %v1285_v53 = vunpack.i.h.bf16 %v1283_v50  ;;  %v1284_v54 = vunpack.i.l.bf16 %v1283_v50 }
 0x50e   : > { %v945_v56 = vsel %vm943_vm8, %v942_v55, %v1285_v53  ;;  %v944_v57 = vsel %vm943_vm8, %v941_v13, %v1284_v54 }
 0x50f   : > { %v946_v58 = vpack.c.bf16 %v945_v56, %v944_v57 }
 0x511   : > { %1243 = vmatmul.mubr.msk.bf16.vlgmr.msra.gmra.mrb[16].mxu1 %vm347_vm1, %v946_v58 }
 0x5e4   : > { %v1007_v60 = vpop.f32.mrb[16].mxu1 }
 0x5e5   : > { %v1008_v61 = vadd.f32 %v1150_v59, %v1007_v60  ;;  %v1244_v62 = vpop.f32.mrb[17].mxu1 }
 0x5e6   : > { %v1010_v63 = vpop.f32.mrb[18].mxu1 }
 0x5e7   : > { %v1011_v0 = vadd.f32 %v1150_v59, %v1010_v63  ;;  %v1245_v2 = vpop.f32.mrb[19].mxu1  ;;  %v1014_v5 = vadd.f32 %v1008_v61, %v1426_v3 }
 0x5e9   : > { %v1016_v6 = vsel %vm347_vm1, %v1014_v5, 0.0  ;;  %v1015_v7 = vadd.f32 %v1011_v0, %v1428_v4 }
 0x5ea   : > { %1017 = vadd.xlane.f32.xlu0 %v1016_v6 }
 0x5eb   : > { %v1020_v8 = vsel %vm1019_vm9, %v1015_v7, 0.0 }
 0x5ec   : > { %1021 = vadd.xlane.f32.xlu1 %v1020_v8 }
 0x677   : > { %v1018_v9 = vpop.xlane.xlu0 %1017 }
 0x678   : > { %v1024_v10 = vmul.f32 0.03125, %v1018_v9 }
 0x679   : > { %v1022_v11 = vpop.xlane.xlu1 %1021 }
 0x67a   : > { %v1026_v12 = vsub.f32 %v1014_v5, %v1024_v10  ;;  %v1025_v14 = vmul.f32 0.03125, %v1022_v11 }
 0x67c   : > { %v1027_v15 = vsub.f32 %v1015_v7, %v1025_v14  ;;  %v1028_v16 = vmul.f32 %v1026_v12, %v1026_v12 }
 0x67e   : > { %v1030_v17 = vsel %vm347_vm1, %v1028_v16, 0.0  ;;  %v1029_v18 = vmul.f32 %v1027_v15, %v1027_v15 }
 0x67f   : > { %1031 = vadd.xlane.f32.xlu0 %v1030_v17 }
 0x680   : > { %v1033_v3 = vsel %vm1019_vm9, %v1029_v18, 0.0 }
 0x683   : > { %1034 = vadd.xlane.f32.xlu0 %v1033_v3 }
 0x70c   : > { %v1032_v4 = vpop.xlane.xlu0 %1031 }
 0x70d   : > { %v1036_v19 = vmul.f32 0.03125, %v1032_v4 }
 0x70f   : > { %v1038_v20 = vadd.f32 1e-05, %v1036_v19 }
 0x710   : > { %v1035_v21 = vpop.xlane.xlu0 %1034 }
 0x711   : > { %1322 = vrsqrt.f32 %v1038_v20  ;;  %v1037_v22 = vmul.f32 0.03125, %v1035_v21 }
 0x713   : > { %v1039_v23 = vadd.f32 1e-05, %v1037_v22 }
 0x715   : > { %1324 = vrsqrt.f32 %v1039_v23 }
 0x71b   : > { %v1323_v24 = vpop.eup %1322 }
 0x71c   : > { %v1042_v26 = vmul.f32 %v1323_v24, %v1026_v12 }
 0x71e   : > { %v1051_v28 = vmul.f32 %v1154_v25, %v1042_v26 }
 0x71f   : > { %v1325_v29 = vpop.eup %1324 }
 0x720   : > { %v1060_v30 = vadd.f32 %v1155_v27, %v1051_v28  ;;  %v1043_v31 = vmul.f32 %v1325_v29, %v1027_v15 }
 0x722   : > { %1062 = vst.msk [vmem:[%s319_s29] sm:$0xff] %vm347_vm1, %v1060_v30  ;;  %v1052_v32 = vmul.f32 %v1154_v25, %v1043_v31 }
 0x724   : > { %v1061_v33 = vadd.f32 %v1155_v27, %v1052_v32 }
 0x726   : > { %1063 = vst.msk [vmem:[%s319_s29 + $0x8] sm:$0x7f] %vm1019_vm9, %v1061_v33 }
 0x727 PF: > { %s18_s27 = sadd.s32 1, %s1332_s27  }
 0x728   : > { %p15_p4 = scmp.ge.s32.totalorder %s18_s27, 4  }
 0x72a   :  { %17 = sbr.rel (!%p15_p4) target bundleno = 1 (0x1), region = 85 }

// kernel: _lambda_.16
= control target key start
LH: loop header
LB: loop body
LE: loop exit
PB: predicated region body
PF: predicated region fallthrough
CT: control target
= control target key end

     0   :  { %s1688_s12 = smov 0   ;;  %s1894_s0 = inlined_call_operand.vmem [shape: f32[2,15,32], index: 0, kind: input, shape index: {}]   ;;  %s1895_s1 = inlined_call_operand.vmem [shape: bf16[20,8,8], index: 1, kind: input, shape index: {}]   ;;  %s1896_s2 = inlined_call_operand.vmem [shape: f32[1,32], index: 2, kind: input, shape index: {}]   ;;  %s1897_s3 = inlined_call_operand.vmem [shape: f32[2,15,32], index: 3, kind: output, shape index: {}]  }
   0x1 LB: > { %s1355_s13 = sadd.s32 4294967295, %s1658_s12   ;;  %p1359_p0 = scmp.ge.s32.totalorder %s1658_s12, 1  ;;  %s1658_s12 = sphi %s1688_s12, %s13_s12  }
   0x2   : > { %p137_p1 = scmp.lt.s32.totalorder %s1658_s12, 3 }
   0x4   : > { %p138_p2 = pnand %p1359_p0, %p137_p1 }
   0x5   : > { %p161_p3 = scmp.lt.s32.totalorder (!%p138_p2), %s1355_s13, 1  ;;  %vm174_vm0 = vcmask (!%p138_p2), 261120   ;;  %vm177_vm1 = vcmask (!%p138_p2), 256000   ;;  %v1660_v0 = vmov (!%p138_p2), 0.0   ;;  %v1364_v1 = vld [vmem:[%s1895_s1 + $0x10] sm:$0xf] (!%p138_p2) }
   0x6   : > { %141 = sbr.rel (%p138_p2) target bundleno = 608 (0x260), region = 32  ;;  %175 = vst.msk [vmem:[#allocation2] sm:$0xff] (!%p138_p2), %vm174_vm0, %v1660_v0  ;;  %176 = vst.msk [vmem:[#allocation2 + $0x8] sm:$0xff] (!%p138_p2), %vm174_vm0, %v1660_v0  ;;  %1448 = vmatprep.subr.bf16.mxu0 (!%p138_p2), %v1660_v0  ;;  %vm195_vm2 = vcmask (!%p138_p2), 1043456   ;;  %1478 = vmatprep.subr.bf16.mxu1 (!%p138_p2), %v1660_v0  ;;  %vm1661_vm3 = vmmov (!%p138_p2), 0   ;;  %vm180_vm4 = vcmask (!%p138_p2), 260096  }
   0x7   : > { %178 = vst.msk [vmem:[#allocation2 + $0x10] sm:$0x7] (!%p138_p2), %vm177_vm1, %v1660_v0  ;;  %v197_v2 = vsel (!%p138_p2), %vm195_vm2, %v1364_v1, 0  ;;  %1450 = vmatprep.mubr.msk.bf16.mxu0 (!%p138_p2), %vm1661_vm3, %v1660_v0  ;;  %1480 = vmatprep.mubr.msk.bf16.mxu1 (!%p138_p2), %vm1661_vm3, %v1660_v0  ;;  %v1374_v3 = vld [vmem:[%s1895_s1 + $0x14] sm:$0xf] (!%p138_p2)  ;;  %vm191_vm5 = vcmask (!%p138_p2), 64512  }
   0x8   : > { %1449 = vmatpush3.bf16.msra.mxu0 (!%p138_p2), %v197_v2  ;;  %v460_v6 = vsel (!%p138_p2), %vm195_vm2, %v1374_v3, 0  ;;  %v185_v7 = vld [vmem:[%s1895_s1] sm:$0xf] (!%p138_p2)  ;;  %s1662_s24 = smov (!%p138_p2), 120   ;;  %s1663_s25 = smov (!%p138_p2), 112   ;;  %vm1263_vm6 = vcmask (!%p138_p2), 130048  }
   0x9   : > { %1454 = vmatprep.subr.bf16.mxu0 (!%p138_p2), %v1660_v0  ;;  %1479 = vmatpush3.bf16.msra.mxu1 (!%p138_p2), %v460_v6  ;;  %v244_v18 = vsel (!%p138_p2), %vm195_vm2, %v185_v7, 0  ;;  %v1367_v24 = vld [vmem:[%s1895_s1 + $0x20] sm:$0xf] (!%p138_p2)  ;;  %s1664_s28 = smov (!%p138_p2), 104   ;;  %v1369_v26 = vld [vmem:[%s1895_s1 + $0x30] sm:$0xf] (!%p138_p2) }
   0xa   : > { %1484 = vmatprep.subr.bf16.mxu1 (!%p138_p2), %v1660_v0  ;;  %v296_v25 = vsel (!%p138_p2), %vm195_vm2, %v1367_v24, 0  ;;  %v350_v27 = vsel (!%p138_p2), %vm195_vm2, %v1369_v26, 0  ;;  %v1371_v28 = vld [vmem:[%s1895_s1 + $0x40] sm:$0xf] (!%p138_p2)  ;;  %v1384_v30 = vld [vmem:[%s1895_s1 + $0x18] sm:$0xf] (!%p138_p2) }
   0xb   : > { %v404_v29 = vsel (!%p138_p2), %vm195_vm2, %v1371_v28, 0  ;;  %v725_v31 = vsel (!%p138_p2), %vm195_vm2, %v1384_v30, 0  ;;  %v1373_v32 = vld [vmem:[%s1895_s1 + $0x4] sm:$0xf] (!%p138_p2)  ;;  %v1383_v37 = vld [vmem:[%s1895_s1 + $0x8] sm:$0xf] (!%p138_p2) }
   0xc   : > { %v510_v34 = vsel (!%p138_p2), %vm195_vm2, %v1373_v32, 0  ;;  %v774_v38 = vsel (!%p138_p2), %vm195_vm2, %v1383_v37, 0  ;;  %v1377_v40 = vld [vmem:[%s1895_s1 + $0x24] sm:$0xf] (!%p138_p2)  ;;  %v1387_v43 = vld [vmem:[%s1895_s1 + $0x28] sm:$0xf] (!%p138_p2) }
   0xd   : > { %s1899_s13 = smov (!%p161_p3, %s1355_s13), 1  ;;  %v562_v42 = vsel %vm195_vm2, %v1377_v40, 0  ;;  %v825_v45 = vsel %vm195_vm2, %v1387_v43, 0  ;;  %v1379_v46 = vld [vmem:[%s1895_s1 + $0x34] sm:$0xf]  ;;  %s1665_s10 = smov 8  }
   0xe   : > { %s1406_s16 = sshll.u32 %s1899_s13, 4  ;;  %v616_v47 = vsel %vm195_vm2, %v1379_v46, 0  ;;  %v1389_v48 = vld [vmem:[%s1895_s1 + $0x38] sm:$0xf]  ;;  %v1381_v51 = vld [vmem:[%s1895_s1 + $0x44] sm:$0xf] }
   0xf   : > { %s165_s19 = scalar_lea.vmem %s1894_s0, %s1406_s16  ;;  %v878_v50 = vsel %vm195_vm2, %v1389_v48, 0  ;;  %v670_v52 = vsel %vm195_vm2, %v1381_v51, 0  ;;  %v1391_v53 = vld [vmem:[%s1895_s1 + $0x48] sm:$0xf]  ;;  %v1394_v56 = vld [vmem:[%s1895_s1 + $0x1c] sm:$0xf]  ;;  %s170_s20 = scalar_lea.vmem %s1897_s3, %s1406_s16 }
  0x10   : > { %v1723_v4 = vld [vmem:[%s165_s19] sm:$0xff]  ;;  %v1725_v5 = vld [vmem:[%s165_s19 + $0x8] sm:$0x7f]  ;;  %v931_v55 = vsel %vm195_vm2, %v1391_v53, 0  ;;  %v986_v58 = vsel %vm195_vm2, %v1394_v56, 0  ;;  %s1666_s11 = smov 16  }
  0x11   : > { %179 = vst.msk [vmem:[#allocation2 + $0x2] sm:$0xff] %vm174_vm0, %v1723_v4  ;;  %v1393_v59 = vld [vmem:[%s1895_s1 + $0xc] sm:$0xf]  ;;  %v1399_v3 = vld [vmem:[%s1895_s1 + $0x3c] sm:$0xf]  ;;  %s1667_s14 = smov 24  }
  0x12   : > { %181 = vst.msk [vmem:[#allocation2 + $0xa] sm:$0x7f] %vm180_vm4, %v1725_v5  ;;  %v1035_v62 = vsel %vm195_vm2, %v1393_v59, 0  ;;  %v1397_v63 = vld [vmem:[%s1895_s1 + $0x2c] sm:$0xf]  ;;  %v1139_v7 = vsel %vm195_vm2, %v1399_v3, 0 }
  0x13   : > { %v1086_v2 = vsel %vm195_vm2, %v1397_v63, 0  ;;  %vm1266_vm7 = vcmask 195584   ;;  %v1403_v32 = vld [vmem:[%s1896_s2] ss:$0 sm:$0xff] }
  0x18   : > { %v287_v8 = vld [vmem:[#allocation2 + $0x2] sm:$0xff] }
  0x19   : > { %v288_v9 = vld [vmem:[#allocation2 + $0xa] sm:$0x7f]  ;;  %v186_v10 = vld [vmem:[#allocation2 + $0x1] sm:$0xff] }
  0x1a   : > { %v289_v11 = vpack.c.bf16 %v288_v9, %v287_v8  ;;  %v187_v12 = vld [vmem:[#allocation2 + $0x9] sm:$0x7f]  ;;  %v182_v16 = vld [vmem:[#allocation2] sm:$0xff] }
  0x1b   : > { %v341_v13 = vld [vmem:[#allocation2 + $0x3] sm:$0xff]  ;;  %v342_v14 = vld [vmem:[#allocation2 + $0xb] sm:$0x7f]  ;;  %v188_v15 = vpack.c.bf16 %v187_v12, %v186_v10 }
  0x1c   : > { %v183_v17 = vld [vmem:[#allocation2 + $0x8] sm:$0x7f]  ;;  %556 = vrot.lane.b32.xlu1 %v289_v11, %s1662_s24  ;;  %v343_v19 = vpack.c.bf16 %v342_v14, %v341_v13 }
  0x1d   : > { %454 = vrot.lane.b32.xlu0 %v188_v15, %s1662_s24  ;;  %v184_v20 = vpack.c.bf16 %v183_v17, %v182_v16  ;;  %1451 = vmatmul.mubr.msk.bf16.vlgmr.msra.gmra.mrb[0].mxu0 %vm191_vm5, %v188_v15  ;;  %v395_v21 = vld [vmem:[#allocation2 + $0x4] sm:$0xff]  ;;  %v396_v22 = vld [vmem:[#allocation2 + $0xc] sm:$0x7f] }
  0x1e   : > { %1455 = vmatpush3.bf16.msra.mxu0 %v244_v18  ;;  %1456 = vmatprep.mubr.msk.bf16.mxu0 %vm1661_vm3, %v1660_v0  ;;  %v397_v23 = vpack.c.bf16 %v396_v22, %v395_v21  ;;  %v1401_v8 = vld [vmem:[%s1895_s1 + $0x4c] sm:$0xf] }
  0x1f   : > { %1460 = vmatprep.subr.bf16.mxu0 %v1660_v0  ;;  %v1192_v10 = vsel %vm195_vm2, %v1401_v8, 0 }
  0x20   : > { %610 = vrot.lane.b32.xlu1 %v343_v19, %s1662_s24 }
  0x21   : > { %504 = vrot.lane.b32.xlu0 %v184_v20, %s1662_s24 }
  0x24   : > { %719 = vrot.lane.b32.xlu1 %v188_v15, %s1663_s25 }
  0x25   : > { %664 = vrot.lane.b32.xlu0 %v397_v23, %s1662_s24 }
  0x28   : > { %768 = vrot.lane.b32.xlu1 %v184_v20, %s1663_s25 }
  0x29   : > { %980 = vrot.lane.b32.xlu0 %v188_v15, %s1664_s28  ;;  %1457 = vmatmul.mubr.msk.bf16.vlgmr.msra.gmra.mrb[0].mxu0 %vm191_vm5, %v184_v20 }
  0x2a   : > { %1461 = vmatpush3.bf16.msra.mxu0 %v296_v25  ;;  %1462 = vmatprep.mubr.msk.bf16.mxu0 %vm1661_vm3, %v1660_v0 }
  0x2b   : > { %1466 = vmatprep.subr.bf16.mxu0 %v1660_v0 }
  0x2c   : > { %819 = vrot.lane.b32.xlu1 %v289_v11, %s1663_s25 }
  0x2d   : > { %1029 = vrot.lane.b32.xlu0 %v184_v20, %s1664_s28 }
  0x30   : > { %872 = vrot.lane.b32.xlu1 %v343_v19, %s1663_s25 }
  0x31   : > { %1080 = vrot.lane.b32.xlu0 %v289_v11, %s1664_s28 }
  0x34   : > { %925 = vrot.lane.b32.xlu1 %v397_v23, %s1663_s25 }
  0x35   : > { %1463 = vmatmul.mubr.msk.bf16.vlgmr.msra.gmra.mrb[0].mxu0 %vm191_vm5, %v289_v11  ;;  %1133 = vrot.lane.b32.xlu0 %v343_v19, %s1664_s28 }
  0x36   : > { %1467 = vmatpush3.bf16.msra.mxu0 %v350_v27  ;;  %1468 = vmatprep.mubr.msk.bf16.mxu0 %vm1661_vm3, %v1660_v0 }
  0x37   : > { %1472 = vmatprep.subr.bf16.mxu0 %v1660_v0 }
  0x39   : > { %1186 = vrot.lane.b32.xlu0 %v397_v23, %s1664_s28 }
  0x41   : > { %1469 = vmatmul.mubr.msk.bf16.vlgmr.msra.gmra.mrb[0].mxu0 %vm191_vm5, %v343_v19 }
  0x42   : > { %1473 = vmatpush3.bf16.msra.mxu0 %v404_v29  ;;  %1474 = vmatprep.mubr.msk.bf16.mxu0 %vm1661_vm3, %v1660_v0 }
  0x43   : > { %1508 = vmatprep.subr.bf16.mxu0 %v1660_v0 }
  0x4d   : > { %1475 = vmatmul.mubr.msk.bf16.vlgmr.msra.gmra.mrb[0].mxu0 %vm191_vm5, %v397_v23 }
  0x4e   : > { %1509 = vmatpush3.bf16.msra.mxu0 %v725_v31  ;;  %1510 = vmatprep.mubr.msk.bf16.mxu0 %vm1661_vm3, %v1660_v0 }
  0x4f   : > { %1514 = vmatprep.subr.bf16.mxu0 %v1660_v0 }
  0x8e   : > { %v557_v33 = vpop.permute.xlu1 %556 }
  0x8f   : > { %v455_v35 = vpop.permute.xlu0 %454 }
  0x90   : > { %1481 = vmatmul.mubr.msk.bf16.vlgmr.msra.gmra.mrb[0].mxu1 %vm191_vm5, %v455_v35 }
  0x91   : > { %1485 = vmatpush3.bf16.msra.mxu1 %v510_v34  ;;  %1486 = vmatprep.mubr.msk.bf16.mxu1 %vm1661_vm3, %v1660_v0 }
  0x92   : > { %v611_v36 = vpop.permute.xlu1 %610  ;;  %1490 = vmatprep.subr.bf16.mxu1 %v1660_v0 }
  0x93   : > { %v505_v41 = vpop.permute.xlu0 %504 }
  0x96   : > { %v720_v39 = vpop.permute.xlu1 %719 }
  0x97   : > { %1511 = vmatmul.mubr.msk.bf16.vlgmr.msra.gmra.mrb[4].mxu0 %vm191_vm5, %v720_v39  ;;  %v665_v57 = vpop.permute.xlu0 %664 }
  0x98   : > { %1515 = vmatpush3.bf16.msra.mxu0 %v774_v38  ;;  %1516 = vmatprep.mubr.msk.bf16.mxu0 %vm1661_vm3, %v1660_v0 }
  0x99   : > { %1520 = vmatprep.subr.bf16.mxu0 %v1660_v0 }
  0x9a   : > { %v769_v44 = vpop.permute.xlu1 %768 }
  0x9b   : > { %v981_v61 = vpop.permute.xlu0 %980 }
  0x9c   : > { %1487 = vmatmul.mubr.msk.bf16.vlgmr.msra.gmra.mrb[0].mxu1 %vm191_vm5, %v505_v41 }
  0x9d   : > { %1491 = vmatpush3.bf16.msra.mxu1 %v562_v42  ;;  %1492 = vmatprep.mubr.msk.bf16.mxu1 %vm1661_vm3, %v1660_v0 }
  0x9e   : > { %1496 = vmatprep.subr.bf16.mxu1 %v1660_v0  ;;  %v820_v49 = vpop.permute.xlu1 %819 }
  0x9f   : > { %v1030_v1 = vpop.permute.xlu0 %1029 }
  0xa2   : > { %v873_v54 = vpop.permute.xlu1 %872 }
  0xa3   : > { %1517 = vmatmul.mubr.msk.bf16.vlgmr.msra.gmra.mrb[4].mxu0 %vm191_vm5, %v769_v44  ;;  %v1081_v6 = vpop.permute.xlu0 %1080 }
  0xa4   : > { %1521 = vmatpush3.bf16.msra.mxu0 %v825_v45  ;;  %1522 = vmatprep.mubr.msk.bf16.mxu0 %vm1661_vm3, %v1660_v0 }
  0xa5   : > { %1526 = vmatprep.subr.bf16.mxu0 %v1660_v0 }
  0xa6   : > { %v926_v60 = vpop.permute.xlu1 %925 }
  0xa7   : > { %v1134_v9 = vpop.permute.xlu0 %1133 }
  0xa8   : > { %1493 = vmatmul.mubr.msk.bf16.vlgmr.msra.gmra.mrb[0].mxu1 %vm191_vm5, %v557_v33 }
  0xa9   : > { %1497 = vmatpush3.bf16.msra.mxu1 %v616_v47  ;;  %1498 = vmatprep.mubr.msk.bf16.mxu1 %vm1661_vm3, %v1660_v0 }
  0xaa   : > { %1502 = vmatprep.subr.bf16.mxu1 %v1660_v0 }
  0xab   : > { %v1187_v11 = vpop.permute.xlu0 %1186 }
  0xaf   : > { %1523 = vmatmul.mubr.msk.bf16.vlgmr.msra.gmra.mrb[4].mxu0 %vm191_vm5, %v820_v49 }
  0xb0   : > { %1527 = vmatpush3.bf16.msra.mxu0 %v878_v50  ;;  %1528 = vmatprep.mubr.msk.bf16.mxu0 %vm1661_vm3, %v1660_v0 }
  0xb1   : > { %1532 = vmatprep.subr.bf16.mxu0 %v1660_v0 }
  0xb4   : > { %1499 = vmatmul.mubr.msk.bf16.vlgmr.msra.gmra.mrb[0].mxu1 %vm191_vm5, %v611_v36 }
  0xb5   : > { %1503 = vmatpush3.bf16.msra.mxu1 %v670_v52  ;;  %1504 = vmatprep.mubr.msk.bf16.mxu1 %vm1661_vm3, %v1660_v0 }
  0xb6   : > { %1538 = vmatprep.subr.bf16.mxu1 %v1660_v0 }
  0xbb   : > { %1529 = vmatmul.mubr.msk.bf16.vlgmr.msra.gmra.mrb[4].mxu0 %vm191_vm5, %v873_v54 }
  0xbc   : > { %1533 = vmatpush3.bf16.msra.mxu0 %v931_v55  ;;  %1534 = vmatprep.mubr.msk.bf16.mxu0 %vm1661_vm3, %v1660_v0 }
  0xc0   : > { %1505 = vmatmul.mubr.msk.bf16.vlgmr.msra.gmra.mrb[0].mxu1 %vm191_vm5, %v665_v57 }
  0xc1   : > { %1539 = vmatpush3.bf16.msra.mxu1 %v986_v58  ;;  %1540 = vmatprep.mubr.msk.bf16.mxu1 %vm1661_vm3, %v1660_v0 }
  0xc2   : > { %1544 = vmatprep.subr.bf16.mxu1 %v1660_v0 }
  0xc7   : > { %1535 = vmatmul.mubr.msk.bf16.vlgmr.msra.gmra.mrb[4].mxu0 %vm191_vm5, %v926_v60 }
  0xc8   : > { %1541 = vmatmul.mubr.msk.bf16.vlgmr.msra.gmra.mrb[4].mxu1 %vm191_vm5, %v981_v61 }
  0xc9   : > { %1545 = vmatpush3.bf16.msra.mxu1 %v1035_v62  ;;  %1546 = vmatprep.mubr.msk.bf16.mxu1 %vm1661_vm3, %v1660_v0 }
  0xca   : > { %1550 = vmatprep.subr.bf16.mxu1 %v1660_v0 }
  0xd4   : > { %1547 = vmatmul.mubr.msk.bf16.vlgmr.msra.gmra.mrb[4].mxu1 %vm191_vm5, %v1030_v1 }
  0xd5   : > { %1551 = vmatpush3.bf16.msra.mxu1 %v1086_v2  ;;  %1552 = vmatprep.mubr.msk.bf16.mxu1 %vm1661_vm3, %v1660_v0 }
  0xd6   : > { %1556 = vmatprep.subr.bf16.mxu1 %v1660_v0 }
  0xe0   : > { %1553 = vmatmul.mubr.msk.bf16.vlgmr.msra.gmra.mrb[4].mxu1 %vm191_vm5, %v1081_v6 }
  0xe1   : > { %1557 = vmatpush3.bf16.msra.mxu1 %v1139_v7  ;;  %1558 = vmatprep.mubr.msk.bf16.mxu1 %vm1661_vm3, %v1660_v0 }
  0xe2   : > { %1562 = vmatprep.subr.bf16.mxu1 %v1660_v0 }
  0xec   : > { %1559 = vmatmul.mubr.msk.bf16.vlgmr.msra.gmra.mrb[4].mxu1 %vm191_vm5, %v1134_v9 }
  0xed   : > { %1563 = vmatpush3.bf16.msra.mxu1 %v1192_v10  ;;  %1564 = vmatprep.mubr.msk.bf16.mxu1 %vm1661_vm3, %v1660_v0 }
  0xf8   : > { %1565 = vmatmul.mubr.msk.bf16.vlgmr.msra.gmra.mrb[4].mxu1 %vm191_vm5, %v1187_v11 }
 0x120   : > { %v440_v12 = vpop.f32.mrb[0].mxu0 }
 0x121   : > { %v1476_v13 = vpop.f32.mrb[1].mxu0 }
 0x122   : > { %v443_v14 = vpop.f32.mrb[2].mxu0 }
 0x123   : > { %v1477_v15 = vpop.f32.mrb[3].mxu0 }
 0x193   : > { %v706_v16 = vpop.f32.mrb[0].mxu1 }
 0x194   : > { %1239 = vrot.lane.b32.xlu1 %v706_v16, %s1665_s10  ;;  %v1506_v17 = vpop.f32.mrb[1].mxu1 }
 0x195   : > { %v709_v18 = vpop.f32.mrb[2].mxu1 }
 0x196   : > { %1241 = vrot.lane.b32.xlu0 %v709_v18, %s1665_s10  ;;  %v1507_v19 = vpop.f32.mrb[3].mxu1 }
 0x19a   : > { %v967_v20 = vpop.f32.mrb[4].mxu0 }
 0x19b   : > { %1247 = vrot.lane.b32.xlu1 %v967_v20, %s1666_s11  ;;  %v1536_v21 = vpop.f32.mrb[5].mxu0 }
 0x19c   : > { %v970_v22 = vpop.f32.mrb[6].mxu0 }
 0x19d   : > { %1249 = vrot.lane.b32.xlu0 %v970_v22, %s1666_s11  ;;  %v1537_v0 = vpop.f32.mrb[7].mxu0 }
 0x1cb   : > { %v1228_v23 = vpop.f32.mrb[4].mxu1 }
 0x1cc   : > { %v1566_v24 = vpop.f32.mrb[5].mxu1  ;;  %1255 = vrot.lane.b32.xlu1 %v1228_v23, %s1667_s14 }
 0x1cd   : > { %v1231_v25 = vpop.f32.mrb[6].mxu1 }
 0x1ce   : > { %v1567_v26 = vpop.f32.mrb[7].mxu1  ;;  %1257 = vrot.lane.b32.xlu0 %v1231_v25, %s1667_s14 }
 0x206   : > { %v1240_v27 = vpop.permute.xlu1 %1239 }
 0x207   : > { %v1261_v31 = vsel %vm191_vm5, %v440_v12, %v1240_v27 }
 0x208   : > { %v1242_v28 = vpop.permute.xlu0 %1241 }
 0x209   : > { %v1262_v35 = vsel %vm191_vm5, %v443_v14, %v1242_v28 }
 0x20d   : > { %v1248_v29 = vpop.permute.xlu1 %1247 }
 0x20e   : > { %v1264_v33 = vsel %vm1263_vm6, %v1261_v31, %v1248_v29 }
 0x20f   : > { %v1250_v30 = vpop.permute.xlu0 %1249 }
 0x210   : > { %v1265_v37 = vsel %vm1263_vm6, %v1262_v35, %v1250_v30 }
 0x23e   : > { %v1256_v34 = vpop.permute.xlu1 %1255 }
 0x23f   : > { %v1267_v36 = vsel %vm1266_vm7, %v1264_v33, %v1256_v34 }
 0x240   : > { %v1276_v38 = vadd.f32 %v1403_v32, %v1267_v36  ;;  %v1258_v39 = vpop.permute.xlu0 %1257 }
 0x241   : > { %v1268_v40 = vsel %vm1266_vm7, %v1265_v37, %v1258_v39 }
 0x242   : > { %v1280_v41 = vmul.f32 0.044715, %v1276_v38  ;;  %v1277_v42 = vadd.f32 %v1403_v32, %v1268_v40  ;;  %v1278_v53 = vmul.f32 0.5, %v1276_v38 }
 0x244   : > { %v1282_v43 = vmul.f32 %v1280_v41, %v1276_v38  ;;  %v1281_v44 = vmul.f32 0.044715, %v1277_v42  ;;  %v1279_v57 = vmul.f32 0.5, %v1277_v42 }
 0x246   : > { %v1284_v45 = vmul.f32 %v1282_v43, %v1276_v38  ;;  %v1283_v46 = vmul.f32 %v1281_v44, %v1277_v42 }
 0x248   : > { %v1286_v47 = vadd.f32 %v1284_v45, %v1276_v38  ;;  %v1285_v48 = vmul.f32 %v1283_v46, %v1277_v42 }
 0x24a   : > { %v1288_v49 = vmul.f32 0.7978846, %v1286_v47  ;;  %v1287_v50 = vadd.f32 %v1285_v48, %v1277_v42 }
 0x24c   : > { %1648 = vtanh.f32 %v1288_v49  ;;  %v1289_v51 = vmul.f32 0.7978846, %v1287_v50 }
 0x24e   : > { %1650 = vtanh.f32 %v1289_v51 }
 0x256   : > { %v1649_v52 = vpop.eup %1648 }
 0x257   : > { %v1292_v54 = vadd.f32 1.0, %v1649_v52 }
 0x258   : > { %v1651_v55 = vpop.eup %1650 }
 0x259   : > { %v1294_v56 = vmul.f32 %v1292_v54, %v1278_v53  ;;  %v1293_v58 = vadd.f32 1.0, %v1651_v55 }
 0x25b   : > { %v1296_v59 = vadd.f32 %v1294_v56, %v1723_v4  ;;  %v1295_v60 = vmul.f32 %v1293_v58, %v1279_v57 }
 0x25d   : > { %1298 = vst.msk [vmem:[%s170_s20] sm:$0xff] %vm174_vm0, %v1296_v59  ;;  %v1297_v61 = vadd.f32 %v1295_v60, %v1725_v5 }
 0x25f   : > { %1299 = vst.msk [vmem:[%s170_s20 + $0x8] sm:$0x7f] %vm180_vm4, %v1297_v61 }
 0x260 PF: > { %s13_s12 = sadd.s32 1, %s1658_s12  }
 0x261   : > { %p10_p4 = scmp.ge.s32.totalorder %s13_s12, 4  }
 0x263   :  { %12 = sbr.rel (!%p10_p4) target bundleno = 1 (0x1), region = 81 }

// kernel: _lambda_.18
= control target key start
LH: loop header
LB: loop body
LE: loop exit
PB: predicated region body
PF: predicated region fallthrough
CT: control target
= control target key end

     0   :  { %s1087_s24 = smov 0   ;;  %s1240_s0 = inlined_call_operand.vmem [shape: f32[2,15,32], index: 0, kind: input, shape index: {}]   ;;  %s1241_s1 = inlined_call_operand.vmem [shape: bf16[3,32,64], index: 1, kind: input, shape index: {}]   ;;  %s1242_s2 = inlined_call_operand.vmem [shape: f32[1,64], index: 2, kind: input, shape index: {}]   ;;  %s1243_s3 = inlined_call_operand.vmem [shape: bf16[3,64,32], index: 3, kind: input, shape index: {}]   ;;  %s1244_s4 = inlined_call_operand.vmem [shape: f32[1,32], index: 4, kind: input, shape index: {}]   ;;  %s1245_s5 = inlined_call_operand.vmem [shape: f32[1,32], index: 5, kind: input, shape index: {}]   ;;  %s1246_s6 = inlined_call_operand.vmem [shape: f32[1,32], index: 6, kind: input, shape index: {}]   ;;  %s1247_s7 = inlined_call_operand.vmem [shape: f32[2,15,32], index: 7, kind: output, shape index: {}]  }
   0x1 LB: > { %s856_s25 = sadd.s32 4294967295, %s1043_s24   ;;  %p860_p0 = scmp.ge.s32.totalorder %s1043_s24, 1  ;;  %s1043_s24 = sphi %s1087_s24, %s17_s24  }
   0x2   : > { %p237_p1 = scmp.lt.s32.totalorder %s1043_s24, 3 }
   0x4   : > { %p238_p2 = pnand %p860_p0, %p237_p1 }
   0x5   : > { %v1015_v0 = vld [vmem:[%s1241_s1 + $0x10] sm:$0xff] (!%p238_p2)   ;;  %v1045_v1 = vmov (!%p238_p2), 0.0   ;;  %v1016_v2 = vld [vmem:[%s1241_s1] sm:$0xff] (!%p238_p2)   ;;  %v1017_v3 = vld [vmem:[%s1241_s1 + $0x18] sm:$0xff] (!%p238_p2)   ;;  %vm1046_vm0 = vmmov (!%p238_p2), 0   ;;  %p269_p3 = scmp.lt.s32.totalorder (!%p238_p2), %s856_s25, 1 }
   0x6   : > { %241 = sbr.rel (%p238_p2) target bundleno = 818 (0x332), region = 48  ;;  %945 = vmatprep.subr.bf16.mxu0 (!%p238_p2), %v1045_v1  ;;  %953 = vmatprep.subr.bf16.mxu1 (!%p238_p2), %v1045_v1  ;;  %v1018_v4 = vld [vmem:[%s1241_s1 + $0x8] sm:$0xff] (!%p238_p2)   ;;  %vm282_vm1 = vcmask (!%p238_p2), 261120   ;;  %vm285_vm2 = vcmask (!%p238_p2), 253952   ;;  %vm288_vm3 = vcmask (!%p238_p2), 260096   ;;  %v1019_v7 = vld [vmem:[%s1241_s1 + $0x20] sm:$0xff] (!%p238_p2)  }
   0x7   : > { %946 = vmatpush3.bf16.msra.mxu0 (!%p238_p2), %v1015_v0  ;;  %949 = vmatprep.mubr.msk.bf16.mxu0 (!%p238_p2), %vm1046_vm0, %v1045_v1  ;;  %283 = vst.msk [vmem:[#allocation2] sm:$0xff] (!%p238_p2), %vm282_vm1, %v1045_v1  ;;  %284 = vst.msk [vmem:[#allocation2 + $0x8] sm:$0xff] (!%p238_p2), %vm282_vm1, %v1045_v1  ;;  %v1020_v14 = vld [vmem:[%s1241_s1 + $0x28] sm:$0xff] (!%p238_p2)   ;;  %v1021_v18 = vld [vmem:[%s1243_s3 + $0x20] sm:$0xff] (!%p238_p2)   ;;  %vm494_vm4 = vcmask (!%p238_p2), 523264   ;;  %vm497_vm5 = vcmask (!%p238_p2), 516096  }
   0x8   : > { %954 = vmatpush3.bf16.msra.mxu1 (!%p238_p2), %v1016_v2  ;;  %947 = vmatprep.subr.bf16.mxu0 (!%p238_p2), %v1045_v1  ;;  %286 = vst.msk [vmem:[#allocation2 + $0x10] sm:$0x1] (!%p238_p2), %vm285_vm2, %v1045_v1  ;;  %v1022_v19 = vld [vmem:[%s1243_s3] sm:$0xff] (!%p238_p2)   ;;  %v1023_v20 = vld [vmem:[%s1243_s3 + $0x28] sm:$0xff] (!%p238_p2)   ;;  %v1025_v22 = vld [vmem:[%s1243_s3 + $0x30] sm:$0xff] (!%p238_p2)   ;;  %vm500_vm6 = vcmask (!%p238_p2), 522240  }
   0x9   : > { %955 = vmatprep.subr.bf16.mxu1 (!%p238_p2), %v1045_v1  ;;  %957 = vmatprep.mubr.msk.bf16.mxu1 (!%p238_p2), %vm1046_vm0, %v1045_v1  ;;  %495 = vst.msk [vmem:[#allocation3] sm:$0xff] (!%p238_p2), %vm494_vm4, %v1045_v1  ;;  %496 = vst.msk [vmem:[#allocation3 + $0x8] sm:$0xff] (!%p238_p2), %vm494_vm4, %v1045_v1  ;;  %v1024_v21 = vld [vmem:[%s1243_s3 + $0x8] sm:$0xff] (!%p238_p2)   ;;  %v1026_v23 = vld [vmem:[%s1243_s3 + $0x10] sm:$0xff] (!%p238_p2)  }
   0xa   : > { %498 = vst.msk [vmem:[#allocation3 + $0x10] sm:$0x1] (!%p238_p2), %vm497_vm5, %v1045_v1  ;;  %v1027_v24 = vld [vmem:[%s1243_s3 + $0x38] sm:$0xff] (!%p238_p2)   ;;  %v882_v37 = vld [vmem:[%s1242_s2] ss:$0 sm:$0xff] (!%p238_p2)  ;;  %v1030_v54 = vld [vmem:[%s1243_s3 + $0x48] sm:$0xff] (!%p238_p2)  }
   0xb   : > { %948 = vmatpush3.bf16.msra.mxu0 (!%p238_p2), %v1017_v3  ;;  %v1028_v25 = vld [vmem:[%s1243_s3 + $0x18] sm:$0xff] (!%p238_p2)   ;;  %v1029_v48 = vld [vmem:[%s1243_s3 + $0x40] sm:$0xff] (!%p238_p2)   ;;  %v1031_v55 = vld [vmem:[%s1243_s3 + $0x50] sm:$0xff] (!%p238_p2)  }
   0xc   : > { %956 = vmatpush3.bf16.msra.mxu1 (!%p238_p2), %v1018_v4  ;;  %961 = vmatprep.subr.bf16.mxu0 (!%p238_p2), %v1045_v1  ;;  %v1032_v56 = vld [vmem:[%s1243_s3 + $0x58] sm:$0xff] (!%p238_p2)  }
   0xd   : > { %s1249_s25 = smov (!%p269_p3, %s856_s25), 1  ;;  %969 = vmatprep.subr.bf16.mxu1 %v1045_v1 }
   0xe   : > { %s919_s11 = sshll.u32 %s1249_s25, 4 }
   0xf   : > { %s273_s14 = scalar_lea.vmem %s1240_s0, %s919_s11  ;;  %s278_s13 = scalar_lea.vmem %s1247_s7, %s919_s11 }
  0x10   : > { %v1129_v5 = vld [vmem:[%s273_s14] sm:$0xff]  ;;  %v1131_v6 = vld [vmem:[%s273_s14 + $0x8] sm:$0x7f] }
  0x11   : > { %287 = vst.msk [vmem:[#allocation2 + $0x1] sm:$0xff] %vm282_vm1, %v1129_v5 }
  0x12   : > { %289 = vst.msk [vmem:[#allocation2 + $0x9] sm:$0x7f] %vm288_vm3, %v1131_v6 }
  0x18   : > { %v297_v8 = vld [vmem:[#allocation2 + $0x1] sm:$0xff] }
  0x19   : > { %v298_v9 = vld [vmem:[#allocation2 + $0x9] sm:$0x7f]  ;;  %v290_v10 = vld [vmem:[#allocation2] sm:$0xff] }
  0x1a   : > { %v299_v11 = vpack.c.bf16 %v298_v9, %v297_v8  ;;  %v291_v12 = vld [vmem:[#allocation2 + $0x8] sm:$0x7f] }
  0x1b   : > { %v292_v13 = vpack.c.bf16 %v291_v12, %v290_v10  ;;  %v417_v15 = vld [vmem:[#allocation2 + $0x2] sm:$0xff]  ;;  %v418_v16 = vld [vmem:[#allocation2 + $0xa] sm:$0x7f]  ;;  %v914_v12 = vld [vmem:[%s1244_s4] ss:$0 sm:$0xff] }
  0x1c   : > { %950 = vmatmul.mubr.msk.bf16.vlgmr.msra.gmra.mrb[0].mxu0 %vm282_vm1, %v299_v11  ;;  %v419_v17 = vpack.c.bf16 %v418_v16, %v417_v15 }
  0x1d   : > { %958 = vmatmul.mubr.msk.bf16.vlgmr.msra.gmra.mrb[0].mxu1 %vm282_vm1, %v292_v13  ;;  %962 = vmatpush3.bf16.msra.mxu0 %v1019_v7 }
  0x1e   : > { %963 = vmatprep.subr.bf16.mxu0 %v1045_v1  ;;  %965 = vmatprep.mubr.msk.bf16.mxu0 %vm1046_vm0, %v1045_v1 }
  0x1f   : > { %977 = vmatprep.mubr.msk.bf16.mxu1 %vm1046_vm0, %v1045_v1  ;;  %970 = vmatpush3.bf16.msra.mxu1 %v1021_v18 }
  0x20   : > { %971 = vmatprep.subr.bf16.mxu1 %v1045_v1 }
  0x21   : > { %964 = vmatpush3.bf16.msra.mxu0 %v1020_v14 }
  0x22   : > { %981 = vmatprep.subr.bf16.mxu0 %v1045_v1 }
  0x23   : > { %972 = vmatpush3.bf16.msra.mxu1 %v1023_v20 }
  0x24   : > { %966 = vmatmul.mubr.msk.bf16.vlgmr.msra.gmra.mrb[4].mxu0 %vm282_vm1, %v419_v17  ;;  %973 = vmatprep.subr.bf16.mxu1 %v1045_v1 }
  0x25   : > { %989 = vmatprep.mubr.msk.bf16.mxu0 %vm1046_vm0, %v1045_v1  ;;  %982 = vmatpush3.bf16.msra.mxu0 %v1022_v19 }
  0x26   : > { %983 = vmatprep.subr.bf16.mxu0 %v1045_v1 }
  0x27   : > { %974 = vmatpush3.bf16.msra.mxu1 %v1025_v22 }
  0x28   : > { %975 = vmatprep.subr.bf16.mxu1 %v1045_v1 }
  0x29   : > { %984 = vmatpush3.bf16.msra.mxu0 %v1024_v21 }
  0x2a   : > { %985 = vmatprep.subr.bf16.mxu0 %v1045_v1 }
  0x2b   : > { %976 = vmatpush3.bf16.msra.mxu1 %v1027_v24 }
  0x2c   : > { %993 = vmatprep.subr.bf16.mxu1 %v1045_v1 }
  0x2d   : > { %986 = vmatpush3.bf16.msra.mxu0 %v1026_v23 }
  0x2e   : > { %987 = vmatprep.subr.bf16.mxu0 %v1045_v1 }
  0x31   : > { %988 = vmatpush3.bf16.msra.mxu0 %v1028_v25 }
  0xef   : > { %v354_v26 = vpop.f32.mrb[0].mxu0 }
  0xf0   : > { %v410_v27 = vpop.f32.mrb[0].mxu1  ;;  %v951_v28 = vpop.f32.mrb[1].mxu0 }
  0xf1   : > { %v411_v29 = vadd.f32 %v410_v27, %v354_v26  ;;  %v959_v30 = vpop.f32.mrb[1].mxu1  ;;  %v357_v31 = vpop.f32.mrb[2].mxu0 }
  0xf2   : > { %v413_v32 = vpop.f32.mrb[2].mxu1  ;;  %v952_v33 = vpop.f32.mrb[3].mxu0 }
  0xf3   : > { %v414_v34 = vadd.f32 %v413_v32, %v357_v31  ;;  %v960_v35 = vpop.f32.mrb[3].mxu1 }
  0xf7   : > { %v474_v36 = vpop.f32.mrb[4].mxu0 }
  0xf8   : > { %v481_v38 = vadd.f32 %v474_v36, %v411_v29  ;;  %v967_v39 = vpop.f32.mrb[5].mxu0  ;;  %v915_v36 = vld [vmem:[%s1245_s5] ss:$0 sm:$0xff] }
  0xf9   : > { %v477_v40 = vpop.f32.mrb[6].mxu0 }
  0xfa   : > { %v490_v41 = vadd.f32 %v882_v37, %v481_v38  ;;  %v482_v42 = vadd.f32 %v477_v40, %v414_v34  ;;  %v968_v43 = vpop.f32.mrb[7].mxu0  ;;  %v916_v38 = vld [vmem:[%s1246_s6] ss:$0 sm:$0xff] }
  0xfc   : > { %v492_v44 = vmax.f32 %v490_v41, 0.0  ;;  %v491_v45 = vadd.f32 %v882_v37, %v482_v42 }
  0xfe   : > { %v493_v46 = vmax.f32 %v491_v45, 0.0  ;;  %499 = vst.msk [vmem:[#allocation3 + $0x1] sm:$0xff] %vm494_vm4, %v492_v44 }
 0x100   : > { %501 = vst.msk [vmem:[#allocation3 + $0x9] sm:$0x7f] %vm500_vm6, %v493_v46 }
 0x105   : > { %v513_v47 = vld [vmem:[#allocation3 + $0x1] sm:$0xff] }
 0x106   : > { %v502_v50 = vld [vmem:[#allocation3] sm:$0xff] }
 0x107   : > { %v514_v49 = vld [vmem:[#allocation3 + $0x9] sm:$0x7f] }
 0x108   : > { %v503_v51 = vld [vmem:[#allocation3 + $0x8] sm:$0x7f]  ;;  %v515_v52 = vpack.c.bf16 %v514_v49, %v513_v47 }
 0x109   : > { %v504_v53 = vpack.c.bf16 %v503_v51, %v502_v50  ;;  %v661_v57 = vld [vmem:[#allocation3 + $0x2] sm:$0xff]  ;;  %v662_v58 = vld [vmem:[#allocation3 + $0xa] sm:$0x7f] }
 0x10a   : > { %978 = vmatmul.mubr.msk.bf16.vlgmr.msra.gmra.mrb[4].mxu1 %vm494_vm4, %v515_v52  ;;  %v663_v59 = vpack.c.bf16 %v662_v58, %v661_v57 }
 0x10b   : > { %990 = vmatmul.mubr.msk.bf16.vlgmr.msra.gmra.mrb[8].mxu0 %vm494_vm4, %v504_v53  ;;  %994 = vmatpush3.bf16.msra.mxu1 %v1029_v48 }
 0x10c   : > { %1001 = vmatprep.mubr.msk.bf16.mxu1 %vm1046_vm0, %v1045_v1  ;;  %995 = vmatprep.subr.bf16.mxu1 %v1045_v1 }
 0x10f   : > { %996 = vmatpush3.bf16.msra.mxu1 %v1030_v54 }
 0x110   : > { %997 = vmatprep.subr.bf16.mxu1 %v1045_v1 }
 0x113   : > { %998 = vmatpush3.bf16.msra.mxu1 %v1031_v55 }
 0x114   : > { %999 = vmatprep.subr.bf16.mxu1 %v1045_v1 }
 0x117   : > { %1000 = vmatpush3.bf16.msra.mxu1 %v1032_v56 }
 0x11a   : > { %1002 = vmatmul.mubr.msk.bf16.vlgmr.msra.gmra.mrb[8].mxu1 %vm494_vm4, %v663_v59 }
 0x1dd   : > { %v586_v60 = vpop.f32.mrb[4].mxu1 }
 0x1de   : > { %v654_v61 = vpop.f32.mrb[8].mxu0  ;;  %v979_v63 = vpop.f32.mrb[5].mxu1 }
 0x1df   : > { %v655_v62 = vadd.f32 %v654_v61, %v586_v60  ;;  %v991_v0 = vpop.f32.mrb[9].mxu0  ;;  %v589_v2 = vpop.f32.mrb[6].mxu1 }
 0x1e0   : > { %v657_v3 = vpop.f32.mrb[10].mxu0  ;;  %v980_v7 = vpop.f32.mrb[7].mxu1 }
 0x1e1   : > { %v658_v4 = vadd.f32 %v657_v3, %v589_v2  ;;  %v992_v8 = vpop.f32.mrb[11].mxu0 }
 0x1ed   : > { %v734_v9 = vpop.f32.mrb[8].mxu1 }
 0x1ee   : > { %v741_v10 = vadd.f32 %v734_v9, %v655_v62  ;;  %v1003_v11 = vpop.f32.mrb[9].mxu1 }
 0x1ef   : > { %v737_v1 = vpop.f32.mrb[10].mxu1 }
 0x1f0   : > { %v743_v13 = vadd.f32 %v741_v10, %v1129_v5  ;;  %v742_v14 = vadd.f32 %v737_v1, %v658_v4  ;;  %v1004_v15 = vpop.f32.mrb[11].mxu1 }
 0x1f2   : > { %v744_v16 = vadd.f32 %v742_v14, %v1131_v6  ;;  %v752_v17 = vadd.f32 %v914_v12, %v743_v13 }
 0x1f4   : > { %v754_v18 = vsel %vm282_vm1, %v752_v17, 0.0  ;;  %v753_v19 = vadd.f32 %v914_v12, %v744_v16 }
 0x1f5   : > { %755 = vadd.xlane.f32.xlu0 %v754_v18 }
 0x1f6   : > { %v757_v20 = vsel %vm288_vm3, %v753_v19, 0.0 }
 0x1f9   : > { %758 = vadd.xlane.f32.xlu0 %v757_v20 }
 0x282   : > { %v756_v21 = vpop.xlane.xlu0 %755 }
 0x283   : > { %v761_v22 = vmul.f32 0.03125, %v756_v21 }
 0x285   : > { %v763_v23 = vsub.f32 %v752_v17, %v761_v22 }
 0x286   : > { %v759_v24 = vpop.xlane.xlu0 %758 }
 0x287   : > { %v762_v25 = vmul.f32 0.03125, %v759_v24  ;;  %v765_v26 = vmul.f32 %v763_v23, %v763_v23 }
 0x289   : > { %v764_v27 = vsub.f32 %v753_v19, %v762_v25  ;;  %v767_v5 = vsel %vm282_vm1, %v765_v26, 0.0 }
 0x28a   : > { %768 = vadd.xlane.f32.xlu1 %v767_v5 }
 0x28b   : > { %v766_v28 = vmul.f32 %v764_v27, %v764_v27 }
 0x28d   : > { %v770_v6 = vsel %vm288_vm3, %v766_v28, 0.0 }
 0x28e   : > { %771 = vadd.xlane.f32.xlu1 %v770_v6 }
 0x317   : > { %v769_v29 = vpop.xlane.xlu1 %768 }
 0x318   : > { %v773_v30 = vmul.f32 0.03125, %v769_v29 }
 0x31a   : > { %v775_v31 = vadd.f32 1e-05, %v773_v30 }
 0x31b   : > { %v772_v32 = vpop.xlane.xlu1 %771 }
 0x31c   : > { %1033 = vrsqrt.f32 %v775_v31  ;;  %v774_v33 = vmul.f32 0.03125, %v772_v32 }
 0x31e   : > { %v776_v34 = vadd.f32 1e-05, %v774_v33 }
 0x320   : > { %1035 = vrsqrt.f32 %v776_v34 }
 0x326   : > { %v1034_v35 = vpop.eup %1033 }
 0x327   : > { %v779_v37 = vmul.f32 %v1034_v35, %v763_v23 }
 0x329   : > { %v788_v39 = vmul.f32 %v915_v36, %v779_v37 }
 0x32a   : > { %v1036_v40 = vpop.eup %1035 }
 0x32b   : > { %v797_v41 = vadd.f32 %v916_v38, %v788_v39  ;;  %v780_v42 = vmul.f32 %v1036_v40, %v764_v27 }
 0x32d   : > { %799 = vst.msk [vmem:[%s278_s13] sm:$0xff] %vm282_vm1, %v797_v41  ;;  %v789_v43 = vmul.f32 %v915_v36, %v780_v42 }
 0x32f   : > { %v798_v44 = vadd.f32 %v916_v38, %v789_v43 }
 0x331   : > { %800 = vst.msk [vmem:[%s278_s13 + $0x8] sm:$0x7f] %vm288_vm3, %v798_v44 }
 0x332 PF: > { %s17_s24 = sadd.s32 1, %s1043_s24  }
 0x333   : > { %p14_p4 = scmp.ge.s32.totalorder %s17_s24, 4  }
 0x335   :  { %16 = sbr.rel (!%p14_p4) target bundleno = 1 (0x1), region = 82 }

// kernel: _lambda_.21
= control target key start
LH: loop header
LB: loop body
LE: loop exit
PB: predicated region body
PF: predicated region fallthrough
CT: control target
= control target key end

     0   :  { %s1185_s24 = smov 0   ;;  %s1314_s0 = inlined_call_operand.vmem [shape: f32[2,6,32], index: 0, kind: input, shape index: {}]   ;;  %s1315_s1 = inlined_call_operand.vmem [shape: bf16[32,96], index: 1, kind: input, shape index: {}]   ;;  %s1316_s2 = inlined_call_operand.vmem [shape: f32[1,96], index: 2, kind: input, shape index: {}]   ;;  %s1317_s3 = inlined_call_operand.vmem [shape: bf16[32,32], index: 3, kind: input, shape index: {}]   ;;  %s1318_s4 = inlined_call_operand.vmem [shape: f32[1,32], index: 4, kind: input, shape index: {}]   ;;  %s1319_s5 = inlined_call_operand.vmem [shape: f32[1,32], index: 5, kind: input, shape index: {}]   ;;  %s1320_s6 = inlined_call_operand.vmem [shape: f32[1,32], index: 6, kind: input, shape index: {}]   ;;  %s1321_s7 = inlined_call_operand.vmem [shape: f32[2,6,32], index: 7, kind: output, shape index: {}]  }
   0x1 LB: > { %s962_s25 = sadd.s32 4294967295, %s1127_s24   ;;  %p966_p0 = scmp.ge.s32.totalorder %s1127_s24, 1  ;;  %s1127_s24 = sphi %s1185_s24, %s17_s24  }
   0x2   : > { %p236_p1 = scmp.lt.s32.totalorder %s1127_s24, 3 }
   0x4   : > { %p237_p2 = pnand %p966_p0, %p236_p1 }
   0x5   : > { %v1099_v0 = vld [vmem:[%s1315_s1] sm:$0xff] (!%p237_p2)   ;;  %v1129_v1 = vmov (!%p237_p2), 0.0   ;;  %v1100_v2 = vld [vmem:[%s1315_s1 + $0x8] sm:$0xff] (!%p237_p2)   ;;  %vm1130_vm0 = vmmov (!%p237_p2), 0   ;;  %p266_p3 = scmp.lt.s32.totalorder (!%p237_p2), %s962_s25, 1  ;;  %vm300_vm1 = vcmask (!%p237_p2), 261120  }
   0x6   : > { %240 = sbr.rel (%p237_p2) target bundleno = 1810 (0x712), region = 48  ;;  %1011 = vmatprep.subr.bf16.mxu0 (!%p237_p2), %v1129_v1  ;;  %1019 = vmatprep.subr.bf16.mxu1 (!%p237_p2), %v1129_v1  ;;  %v969_v5 = vld [vmem:[%s1316_s2] ss:$0 sm:$0xff] (!%p237_p2)  ;;  %s1131_s13 = smov (!%p237_p2), 120   ;;  %vm348_vm2 = vcmask (!%p237_p2), 64512   ;;  %vm396_vm3 = vcmask (!%p237_p2), 46080  }
   0x7   : > { %1012 = vmatpush3.bf16.msra.mxu0 (!%p237_p2), %v1099_v0  ;;  %1015 = vmatprep.mubr.msk.bf16.mxu0 (!%p237_p2), %vm1130_vm0, %v1129_v1  ;;  %s1132_s14 = smov (!%p237_p2), 96   ;;  %s1133_s15 = smov (!%p237_p2), 80   ;;  %vm415_vm4 = vcmask (!%p237_p2), 1042432   ;;  %vm411_vm5 = vcmask (!%p237_p2), 48128   ;;  %vm805_vm6 = vcmask (!%p237_p2), 130048   ;;  %vm807_vm7 = vcmask (!%p237_p2), 195584  }
   0x8   : > { %1013 = vmatprep.subr.bf16.mxu0 (!%p237_p2), %v1129_v1  ;;  %1021 = vmatprep.mubr.msk.bf16.mxu1 (!%p237_p2), %vm1130_vm0, %v1129_v1  ;;  %s1134_s16 = smov (!%p237_p2), 88   ;;  %s1135_s17 = smov (!%p237_p2), 72   ;;  %vm877_vm8 = vcmask (!%p237_p2), 259072  }
   0x9   : > { %s1136_s18 = smov (!%p237_p2), 112   ;;  %s1137_s19 = smov (!%p237_p2), 104  }
   0xa   : > { %s1138_s20 = smov (!%p237_p2), 56   ;;  %s1139_s21 = smov (!%p237_p2), 64  }
   0xb   : > { %1014 = vmatpush3.bf16.msra.mxu0 (!%p237_p2), %v1100_v2  ;;  %s1140_s22 = smov (!%p237_p2), 40   ;;  %s1141_s23 = smov (!%p237_p2), 48  }
   0xc   : > { %1025 = vmatprep.subr.bf16.mxu0 (!%p237_p2), %v1129_v1  ;;  %s1142_s26 = smov (!%p237_p2), 8   ;;  %s1143_s9 = smov (!%p237_p2), 16  }
   0xd   : > { %s1323_s25 = smov (!%p266_p3, %s962_s25), 1 }
   0xe   : > { %s967_s30 = sshll.u32 %s1323_s25, 3 }
   0xf   : > { %s269_s10 = scalar_lea.vmem %s1314_s0, %s967_s30 }
  0x10   : > { %v1215_v3 = vld [vmem:[%s269_s10] sm:$0x3f]  ;;  %s1144_s10 = smov 24  }
  0x11   : > { %v276_v4 = vpack.c.bf16 %v1215_v3, %v1215_v3 }
  0x13   : > { %1016 = vmatmul.mubr.msk.bf16.vlgmr.msra.gmra.mrb[0].mxu0 %vm300_vm1, %v276_v4 }
  0x14   : > { %1027 = vmatprep.mubr.msk.bf16.mxu0 %vm1130_vm0, %v1129_v1 }
  0xe6   : > { %v338_v6 = vpop.f32.mrb[0].mxu0 }
  0xe7   : > { %v339_v7 = vadd.f32 %v969_v5, %v338_v6  ;;  %v1017_v8 = vpop.f32.mrb[1].mxu0 }
  0xe8   : > { %v341_v9 = vpop.f32.mrb[2].mxu0 }
  0xe9   : > { %v1225_v10 = vpack.c.bf16 %v339_v7, %v339_v7  ;;  %v1018_v11 = vpop.f32.mrb[3].mxu0 }
  0xeb   : > { %459 = vrot.lane.b32.xlu1 %v1225_v10, %s1131_s13  ;;  %346 = vrot.lane.b32.xlu0 %v1225_v10, %s1132_s14 }
  0xef   : > { %572 = vrot.lane.b32.xlu1 %v1225_v10, %s1133_s15  ;;  %461 = vrot.lane.b32.xlu0 %v1225_v10, %s1134_s16 }
  0xf3   : > { %683 = vrot.lane.b32.xlu1 %v1225_v10, %s1135_s17  ;;  %570 = vrot.lane.b32.xlu0 %v1225_v10, %s1136_s18 }
  0xf7   : > { %681 = vrot.lane.b32.xlu0 %v1225_v10, %s1137_s19  ;;  %s273_s19 = scalar_lea.vmem %s1321_s7, %s967_s30 }
 0x15d   : > { %v347_v12 = vpop.permute.xlu0 %346  ;;  %v460_v15 = vpop.permute.xlu1 %459 }
 0x15e   : > { %v353_v13 = vsel %vm348_vm2, %v347_v12, 0 }
 0x15f   : > { %1020 = vmatpush3.bf16.xpose.msra.mxu1 %v353_v13 }
 0x160   : > { %1031 = vmatprep.subr.bf16.mxu1 %v1129_v1 }
 0x161   : > { %v462_v14 = vpop.permute.xlu0 %461  ;;  %v573_v17 = vpop.permute.xlu1 %572 }
 0x162   : > { %v467_v16 = vsel %vm348_vm2, %v462_v14, 0  ;;  %v578_v18 = vsel %vm348_vm2, %v573_v17, 0 }
 0x165   : > { %v684_v19 = vpop.permute.xlu1 %683  ;;  %v571_v20 = vpop.permute.xlu0 %570 }
 0x166   : > { %1022 = vmatmul.mubr.msk.bf16.vlgmr.msra.gmra.mrb[0].mxu1 %vm348_vm2, %v1225_v10  ;;  %v689_v21 = vsel %vm348_vm2, %v684_v19, 0 }
 0x167   : > { %1032 = vmatpush3.bf16.xpose.msra.mxu1 %v467_v16  ;;  %1033 = vmatprep.mubr.msk.bf16.mxu1 %vm1130_vm0, %v1129_v1 }
 0x168   : > { %1043 = vmatprep.subr.bf16.mxu1 %v1129_v1 }
 0x169   : > { %v682_v22 = vpop.permute.xlu0 %681 }
 0x16e   : > { %1034 = vmatmul.mubr.msk.bf16.vlgmr.msra.gmra.mrb[4].mxu1 %vm348_vm2, %v460_v15 }
 0x16f   : > { %1044 = vmatpush3.bf16.xpose.msra.mxu1 %v578_v18  ;;  %1045 = vmatprep.mubr.msk.bf16.mxu1 %vm1130_vm0, %v1129_v1 }
 0x170   : > { %1055 = vmatprep.subr.bf16.mxu1 %v1129_v1 }
 0x176   : > { %1046 = vmatmul.mubr.msk.bf16.vlgmr.msra.gmra.mrb[8].mxu1 %vm348_vm2, %v571_v20 }
 0x177   : > { %1056 = vmatpush3.bf16.xpose.msra.mxu1 %v689_v21  ;;  %1057 = vmatprep.mubr.msk.bf16.mxu1 %vm1130_vm0, %v1129_v1 }
 0x178   : > { %1067 = vmatprep.subr.bf16.mxu1 %v1129_v1 }
 0x17e   : > { %1058 = vmatmul.mubr.msk.bf16.vlgmr.msra.gmra.mrb[12].mxu1 %vm348_vm2, %v682_v22 }
 0x17f   : > { %1071 = vmatprep.mubr.msk.bf16.mxu1 %vm1130_vm0, %v1129_v1 }
 0x239   : > { %v389_v23 = vpop.f32.mrb[0].mxu1 }
 0x23a   : > { %v395_v24 = vmul.f32 0.35355338, %v389_v23  ;;  %v1023_v25 = vpop.f32.mrb[1].mxu1 }
 0x23b   : > { %v392_v26 = vpop.f32.mrb[2].mxu1 }
 0x23c   : > { %v1024_v27 = vpop.f32.mrb[3].mxu1  ;;  %v397_v28 = vsel %vm396_vm3, %v395_v24, -inf }
 0x23d   : > { %398 = vmax.xlane.f32.xlu1 %v397_v28 }
 0x241   : > { %v503_v29 = vpop.f32.mrb[4].mxu1 }
 0x242   : > { %v509_v30 = vmul.f32 0.35355338, %v503_v29  ;;  %v1035_v31 = vpop.f32.mrb[5].mxu1 }
 0x243   : > { %v506_v32 = vpop.f32.mrb[6].mxu1 }
 0x244   : > { %v1036_v33 = vpop.f32.mrb[7].mxu1  ;;  %v510_v34 = vsel %vm396_vm3, %v509_v30, -inf }
 0x245   : > { %511 = vmax.xlane.f32.xlu0 %v510_v34 }
 0x249   : > { %v614_v35 = vpop.f32.mrb[8].mxu1 }
 0x24a   : > { %v620_v36 = vmul.f32 0.35355338, %v614_v35  ;;  %v1047_v37 = vpop.f32.mrb[9].mxu1 }
 0x24b   : > { %v617_v38 = vpop.f32.mrb[10].mxu1  ;;  %v1101_v37 = vld [vmem:[%s1317_s3] sm:$0xff]  }
 0x24c   : > { %v1048_v39 = vpop.f32.mrb[11].mxu1  ;;  %v621_v40 = vsel %vm396_vm3, %v620_v36, -inf  ;;  %1068 = vmatpush3.bf16.msra.mxu1 %v1101_v37  ;;  %v1102_v38 = vld [vmem:[%s1317_s3 + $0x8] sm:$0xff]  }
 0x24d   : > { %622 = vmax.xlane.f32.xlu0 %v621_v40  ;;  %1069 = vmatprep.subr.bf16.mxu1 %v1129_v1 }
 0x250   : > { %1070 = vmatpush3.bf16.msra.mxu1 %v1102_v38 }
 0x251   : > { %v725_v41 = vpop.f32.mrb[12].mxu1 }
 0x252   : > { %v731_v42 = vmul.f32 0.35355338, %v725_v41  ;;  %v1059_v43 = vpop.f32.mrb[13].mxu1 }
 0x253   : > { %v728_v44 = vpop.f32.mrb[14].mxu1 }
 0x254   : > { %v1060_v45 = vpop.f32.mrb[15].mxu1  ;;  %v732_v46 = vsel %vm396_vm3, %v731_v42, -inf }
 0x255   : > { %733 = vmax.xlane.f32.xlu1 %v732_v46 }
 0x2ca   : > { %v399_v47 = vpop.xlane.xlu1 %398 }
 0x2cb   : > { %v400_v48 = vsub.f32 %v395_v24, %v399_v47 }
 0x2cd   : > { %v401_v49 = vmul.f32 1.442695, %v400_v48 }
 0x2cf   : > { %1103 = vpow2.f32 %v401_v49 }
 0x2d2   : > { %v512_v50 = vpop.xlane.xlu0 %511 }
 0x2d3   : > { %v513_v51 = vsub.f32 %v509_v30, %v512_v50 }
 0x2d5   : > { %v514_v52 = vmul.f32 1.442695, %v513_v51 }
 0x2d7   : > { %1105 = vpow2.f32 %v514_v52 }
 0x2d9   : > { %v1104_v53 = vpop.eup %1103 }
 0x2da   : > { %v623_v54 = vpop.xlane.xlu0 %622  ;;  %v403_v55 = vsel %vm396_vm3, %v1104_v53, 0.0 }
 0x2db   : > { %v624_v56 = vsub.f32 %v620_v36, %v623_v54  ;;  %404 = vadd.xlane.f32.xlu0 %v403_v55 }
 0x2dd   : > { %v625_v57 = vmul.f32 1.442695, %v624_v56 }
 0x2df   : > { %1107 = vpow2.f32 %v625_v57 }
 0x2e1   : > { %v1106_v58 = vpop.eup %1105 }
 0x2e2   : > { %v516_v59 = vsel %vm396_vm3, %v1106_v58, 0.0  ;;  %v734_v62 = vpop.xlane.xlu1 %733 }
 0x2e3   : > { %517 = vadd.xlane.f32.xlu1 %v516_v59  ;;  %v735_v63 = vsub.f32 %v731_v42, %v734_v62 }
 0x2e5   : > { %v736_v0 = vmul.f32 1.442695, %v735_v63 }
 0x2e7   : > { %1109 = vpow2.f32 %v736_v0 }
 0x2e9   : > { %v1108_v60 = vpop.eup %1107 }
 0x2ea   : > { %v627_v61 = vsel %vm396_vm3, %v1108_v60, 0.0 }
 0x2eb   : > { %628 = vadd.xlane.f32.xlu0 %v627_v61 }
 0x2f1   : > { %v1110_v2 = vpop.eup %1109 }
 0x2f2   : > { %v738_v4 = vsel %vm396_vm3, %v1110_v2, 0.0 }
 0x2f4   : > { %522 = vrot.lane.b32.xlu1 %v1225_v10, %s1138_s20 }
 0x301   : > { %409 = vrot.lane.b32.xlu0 %v1225_v10, %s1139_s21 }
 0x305   : > { %744 = vrot.lane.b32.xlu0 %v1225_v10, %s1140_s22 }
 0x318   : > { %739 = vadd.xlane.f32.xlu1 %v738_v4 }
 0x329   : > { %633 = vrot.lane.b32.xlu1 %v1225_v10, %s1141_s23 }
 0x368   : > { %v405_v5 = vpop.xlane.xlu0 %404 }
 0x369   : > { %1111 = vrcp.f32 %v405_v5 }
 0x370   : > { %v518_v6 = vpop.xlane.xlu1 %517 }
 0x371   : > { %1113 = vrcp.f32 %v518_v6 }
 0x373   : > { %v1112_v7 = vpop.eup %1111 }
 0x374   : > { %v407_v9 = vmul.f32 %v1112_v7, %v1104_v53  ;;  %v523_v13 = vpop.permute.xlu1 %522  ;;  %v981_v53 = vld [vmem:[%s1318_s4] ss:$0 sm:$0xff] }
 0x375   : > { %v528_v10 = vsel %vm415_vm4, %v523_v13, 0 }
 0x376   : > { %v408_v14 = vpack.c.bf16 %v407_v9, %v407_v9  ;;  %v986_v9 = vld [vmem:[%s1320_s6] ss:$0 sm:$0xff] }
 0x378   : > { %v629_v8 = vpop.xlane.xlu0 %628 }
 0x379   : > { %1115 = vrcp.f32 %v629_v8 }
 0x37b   : > { %v1114_v15 = vpop.eup %1113 }
 0x37c   : > { %v410_v11 = vpop.permute.xlu0 %409  ;;  %v520_v16 = vmul.f32 %v1114_v15, %v1106_v58 }
 0x37d   : > { %v417_v12 = vsel %vm415_vm4, %v410_v11, 0 }
 0x37e   : > { %1026 = vmatpush3.bf16.msra.mxu0 %v417_v12  ;;  %v521_v17 = vpack.c.bf16 %v520_v16, %v520_v16 }
 0x37f   : > { %1037 = vmatprep.subr.bf16.mxu0 %v1129_v1 }
 0x380   : > { %v745_v23 = vpop.permute.xlu0 %744 }
 0x381   : > { %1028 = vmatmul.mubr.msk.bf16.vlgmr.msra.gmra.mrb[4].mxu0 %vm411_vm5, %v408_v14  ;;  %v750_v25 = vsel %vm415_vm4, %v745_v23, 0 }
 0x382   : > { %1038 = vmatpush3.bf16.msra.mxu0 %v528_v10  ;;  %1039 = vmatprep.mubr.msk.bf16.mxu0 %vm1130_vm0, %v1129_v1 }
 0x383   : > { %1049 = vmatprep.subr.bf16.mxu0 %v1129_v1  ;;  %v1116_v18 = vpop.eup %1115 }
 0x384   : > { %v631_v20 = vmul.f32 %v1116_v18, %v1108_v60 }
 0x386   : > { %v632_v24 = vpack.c.bf16 %v631_v20, %v631_v20 }
 0x389   : > { %1040 = vmatmul.mubr.msk.bf16.vlgmr.msra.gmra.mrb[8].mxu0 %vm411_vm5, %v521_v17 }
 0x38a   : > { %1051 = vmatprep.mubr.msk.bf16.mxu0 %vm1130_vm0, %v1129_v1 }
 0x3a5   : > { %v740_v19 = vpop.xlane.xlu1 %739 }
 0x3a6   : > { %1117 = vrcp.f32 %v740_v19 }
 0x3a9   : > { %v634_v21 = vpop.permute.xlu1 %633 }
 0x3aa   : > { %v639_v22 = vsel %vm415_vm4, %v634_v21, 0 }
 0x3ab   : > { %1050 = vmatpush3.bf16.msra.mxu0 %v639_v22 }
 0x3ac   : > { %1061 = vmatprep.subr.bf16.mxu0 %v1129_v1 }
 0x3ae   : > { %1052 = vmatmul.mubr.msk.bf16.vlgmr.msra.gmra.mrb[12].mxu0 %vm411_vm5, %v632_v24 }
 0x3af   : > { %1062 = vmatpush3.bf16.msra.mxu0 %v750_v25  ;;  %1063 = vmatprep.mubr.msk.bf16.mxu0 %vm1130_vm0, %v1129_v1 }
 0x3b0   : > { %v1118_v26 = vpop.eup %1117 }
 0x3b1   : > { %v742_v27 = vmul.f32 %v1118_v26, %v1110_v2 }
 0x3b3   : > { %v743_v28 = vpack.c.bf16 %v742_v27, %v742_v27 }
 0x3b6   : > { %1064 = vmatmul.mubr.msk.bf16.vlgmr.msra.gmra.mrb[16].mxu0 %vm411_vm5, %v743_v28 }
 0x454   : > { %v453_v29 = vpop.f32.mrb[4].mxu0 }
 0x455   : > { %v1029_v30 = vpop.f32.mrb[5].mxu0 }
 0x456   : > { %v456_v31 = vpop.f32.mrb[6].mxu0 }
 0x457   : > { %v1030_v32 = vpop.f32.mrb[7].mxu0 }
 0x45c   : > { %v564_v33 = vpop.f32.mrb[8].mxu0 }
 0x45d   : > { %793 = vrot.lane.b32.xlu1 %v564_v33, %s1142_s26  ;;  %v1041_v34 = vpop.f32.mrb[9].mxu0 }
 0x45e   : > { %v567_v35 = vpop.f32.mrb[10].mxu0 }
 0x45f   : > { %v1042_v36 = vpop.f32.mrb[11].mxu0 }
 0x481   : > { %v675_v39 = vpop.f32.mrb[12].mxu0 }
 0x482   : > { %797 = vrot.lane.b32.xlu0 %v675_v39, %s1143_s9  ;;  %v1053_v40 = vpop.f32.mrb[13].mxu0 }
 0x483   : > { %v678_v41 = vpop.f32.mrb[14].mxu0 }
 0x484   : > { %v1054_v42 = vpop.f32.mrb[15].mxu0 }
 0x489   : > { %v786_v43 = vpop.f32.mrb[16].mxu0 }
 0x48a   : > { %801 = vrot.lane.b32.xlu1 %v786_v43, %s1144_s10  ;;  %v1065_v44 = vpop.f32.mrb[17].mxu0 }
 0x48b   : > { %v789_v45 = vpop.f32.mrb[18].mxu0 }
 0x48c   : > { %v1066_v46 = vpop.f32.mrb[19].mxu0 }
 0x4cf   : > { %v794_v47 = vpop.permute.xlu1 %793 }
 0x4d0   : > { %v804_v48 = vsel %vm348_vm2, %v453_v29, %v794_v47 }
 0x4f4   : > { %v798_v1 = vpop.permute.xlu0 %797 }
 0x4f5   : > { %v806_v49 = vsel %vm805_vm6, %v804_v48, %v798_v1 }
 0x4fc   : > { %v802_v50 = vpop.permute.xlu1 %801 }
 0x4fd   : > { %v808_v51 = vsel %vm807_vm7, %v806_v49, %v802_v50 }
 0x4fe   : > { %v809_v52 = vpack.c.bf16 %v808_v51, %v808_v51 }
 0x500   : > { %1072 = vmatmul.mubr.msk.bf16.vlgmr.msra.gmra.mrb[16].mxu1 %vm300_vm1, %v809_v52 }
 0x5d3   : > { %v870_v54 = vpop.f32.mrb[16].mxu1 }
 0x5d4   : > { %v871_v55 = vadd.f32 %v981_v53, %v870_v54  ;;  %v1073_v56 = vpop.f32.mrb[17].mxu1 }
 0x5d5   : > { %v873_v57 = vpop.f32.mrb[18].mxu1 }
 0x5d6   : > { %v1074_v58 = vpop.f32.mrb[19].mxu1  ;;  %v876_v59 = vadd.f32 %v871_v55, %v1215_v3  ;;  %v985_v3 = vld [vmem:[%s1319_s5] ss:$0 sm:$0xff] }
 0x5d8   : > { %v878_v60 = vsel %vm877_vm8, %v876_v59, 0.0 }
 0x5d9   : > { %879 = vadd.xlane.f32.xlu0 %v878_v60 }
 0x666   : > { %v880_v61 = vpop.xlane.xlu0 %879 }
 0x667   : > { %v882_v62 = vmul.f32 0.03125, %v880_v61 }
 0x669   : > { %v883_v63 = vsub.f32 %v876_v59, %v882_v62 }
 0x66b   : > { %v884_v0 = vmul.f32 %v883_v63, %v883_v63 }
 0x66d   : > { %v885_v2 = vsel %vm877_vm8, %v884_v0, 0.0 }
 0x66e   : > { %886 = vadd.xlane.f32.xlu1 %v885_v2 }
 0x6fb   : > { %v887_v4 = vpop.xlane.xlu1 %886 }
 0x6fc   : > { %v888_v5 = vmul.f32 0.03125, %v887_v4 }
 0x6fe   : > { %v889_v6 = vadd.f32 1e-05, %v888_v5 }
 0x700   : > { %1119 = vrsqrt.f32 %v889_v6 }
 0x70a   : > { %v1120_v7 = vpop.eup %1119 }
 0x70b   : > { %v891_v8 = vmul.f32 %v1120_v7, %v883_v63 }
 0x70d   : > { %v899_v11 = vmul.f32 %v985_v3, %v891_v8 }
 0x70f   : > { %v907_v12 = vadd.f32 %v986_v9, %v899_v11 }
 0x711   : > { %908 = vst.msk [vmem:[%s273_s19] sm:$0x3f] %vm877_vm8, %v907_v12 }
 0x712 PF: > { %s17_s24 = sadd.s32 1, %s1127_s24  }
 0x713   : > { %p14_p4 = scmp.ge.s32.totalorder %s17_s24, 4  }
 0x715   :  { %16 = sbr.rel (!%p14_p4) target bundleno = 1 (0x1), region = 78 }

// kernel: _lambda_.22
= control target key start
LH: loop header
LB: loop body
LE: loop exit
PB: predicated region body
PF: predicated region fallthrough
CT: control target
= control target key end

     0   :  { %s1400_s13 = smov 0   ;;  %s1539_s0 = inlined_call_operand.vmem [shape: f32[2,6,32], index: 0, kind: input, shape index: {}]   ;;  %s1540_s1 = inlined_call_operand.vmem [shape: f32[2,15,32], index: 1, kind: input, shape index: {}]   ;;  %s1541_s2 = inlined_call_operand.vmem [shape: bf16[32,32], index: 2, kind: input, shape index: {}]   ;;  %s1542_s3 = inlined_call_operand.vmem [shape: f32[1,32], index: 3, kind: input, shape index: {}]   ;;  %s1543_s4 = inlined_call_operand.vmem [shape: bf16[32,64], index: 4, kind: input, shape index: {}]   ;;  %s1544_s5 = inlined_call_operand.vmem [shape: f32[1,64], index: 5, kind: input, shape index: {}]   ;;  %s1545_s6 = inlined_call_operand.vmem [shape: bf16[32,32], index: 6, kind: input, shape index: {}]   ;;  %s1546_s7 = inlined_call_operand.vmem [shape: f32[1,32], index: 7, kind: input, shape index: {}]   ;;  %s1547_s8 = inlined_call_operand.vmem [shape: f32[1,32], index: 8, kind: input, shape index: {}]   ;;  %s1548_s9 = inlined_call_operand.vmem [shape: f32[1,32], index: 9, kind: input, shape index: {}]   ;;  %s1549_s10 = inlined_call_operand.vmem [shape: f32[2,6,32], index: 10, kind: output, shape index: {}]  }
   0x1 LB: > { %s1148_s14 = sadd.s32 4294967295, %s1330_s13   ;;  %p1152_p0 = scmp.ge.s32.totalorder %s1330_s13, 1  ;;  %s1330_s13 = sphi %s1400_s13, %s20_s13  }
   0x2   : > { %p321_p1 = scmp.lt.s32.totalorder %s1330_s13, 3 }
   0x4   : > { %p322_p2 = pnand %p1152_p0, %p321_p1 }
   0x5   : > { %v1300_v0 = vld [vmem:[%s1543_s4] sm:$0xff] (!%p322_p2)   ;;  %v1332_v1 = vmov (!%p322_p2), 0.0   ;;  %v1301_v2 = vld [vmem:[%s1543_s4 + $0x8] sm:$0xff] (!%p322_p2)   ;;  %vm1333_vm0 = vmmov (!%p322_p2), 0   ;;  %p362_p3 = scmp.lt.s32.totalorder (!%p322_p2), %s1148_s14, 1  ;;  %vm403_vm1 = vcmask (!%p322_p2), 261120  }
   0x6   : > { %325 = sbr.rel (%p322_p2) target bundleno = 1768 (0x6e8), region = 60  ;;  %1215 = vmatprep.subr.bf16.mxu1 (!%p322_p2), %v1332_v1  ;;  %1207 = vmatprep.subr.bf16.mxu0 (!%p322_p2), %v1332_v1  ;;  %v1302_v3 = vld [vmem:[%s1541_s2] sm:$0xff] (!%p322_p2)   ;;  %v1303_v4 = vld [vmem:[%s1541_s2 + $0x8] sm:$0xff] (!%p322_p2)   ;;  %vm517_vm2 = vcmask (!%p322_p2), 64512   ;;  %s1334_s17 = smov (!%p322_p2), 112   ;;  %vm565_vm3 = vcmask (!%p322_p2), 119808  }
   0x7   : > { %1216 = vmatpush3.bf16.msra.mxu1 (!%p322_p2), %v1300_v0  ;;  %1219 = vmatprep.mubr.msk.bf16.mxu1 (!%p322_p2), %vm1333_vm0, %v1332_v1  ;;  %v1161_v10 = vld [vmem:[%s1544_s5] ss:$0 sm:$0xff] (!%p322_p2)  ;;  %s1335_s18 = smov (!%p322_p2), 120   ;;  %s1336_s19 = smov (!%p322_p2), 104   ;;  %vm585_vm4 = vcmask (!%p322_p2), 1046528   ;;  %vm586_vm5 = vcmask (!%p322_p2), 1047552  }
   0x8   : > { %1217 = vmatprep.subr.bf16.mxu1 (!%p322_p2), %v1332_v1  ;;  %1211 = vmatprep.mubr.msk.bf16.mxu0 (!%p322_p2), %vm1333_vm0, %v1332_v1  ;;  %v1157_v12 = vld [vmem:[%s1542_s3] ss:$0 sm:$0xff] (!%p322_p2)  ;;  %s1337_s20 = smov (!%p322_p2), 88   ;;  %s1338_s21 = smov (!%p322_p2), 96   ;;  %vm581_vm6 = vcmask (!%p322_p2), 121856   ;;  %vm979_vm7 = vcmask (!%p322_p2), 130048  }
   0x9   : > { %1208 = vmatpush3.bf16.msra.mxu0 (!%p322_p2), %v1302_v3  ;;  %s1339_s22 = smov (!%p322_p2), 80   ;;  %s1344_s11 = smov (!%p322_p2), 24   ;;  %vm981_vm8 = vcmask (!%p322_p2), 195584   ;;  %vm1051_vm9 = vcmask (!%p322_p2), 259072  }
   0xa   : > { %1209 = vmatprep.subr.bf16.mxu0 (!%p322_p2), %v1332_v1 }
   0xb   : > { %1218 = vmatpush3.bf16.msra.mxu1 (!%p322_p2), %v1301_v2 }
   0xc   : > { %1229 = vmatprep.subr.bf16.mxu1 (!%p322_p2), %v1332_v1 }
   0xd   : > { %s1551_s14 = smov (!%p362_p3, %s1148_s14), 1  ;;  %1210 = vmatpush3.bf16.msra.mxu0 %v1303_v4 }
   0xe   : > { %s1181_s23 = sshll.u32 %s1551_s14, 4  ;;  %s1153_s24 = sshll.u32 %s1551_s14, 3  ;;  %1223 = vmatprep.subr.bf16.mxu0 %v1332_v1 }
   0xf   : > { %s370_s27 = scalar_lea.vmem %s1540_s1, %s1181_s23  ;;  %s365_s30 = scalar_lea.vmem %s1539_s0, %s1153_s24 }
  0x10   : > { %v377_v5 = vld [vmem:[%s370_s27] sm:$0xff]  ;;  %v378_v6 = vld [vmem:[%s370_s27 + $0x8] sm:$0x7f]  ;;  %s1340_s23 = smov 72   ;;  %s1342_s27 = smov 8  }
  0x11   : > { %v1441_v7 = vld [vmem:[%s365_s30] sm:$0x3f]  ;;  %v447_v8 = vpack.c.bf16 %v378_v6, %v377_v5  ;;  %s1343_s30 = smov 16  }
  0x12   : > { %v379_v9 = vpack.c.bf16 %v1441_v7, %v1441_v7 }
  0x13   : > { %1220 = vmatmul.mubr.msk.bf16.vlgmr.msra.gmra.mrb[0].mxu1 %vm403_vm1, %v447_v8 }
  0x14   : > { %1212 = vmatmul.mubr.msk.bf16.vlgmr.msra.gmra.mrb[0].mxu0 %vm403_vm1, %v379_v9  ;;  %1231 = vmatprep.mubr.msk.bf16.mxu1 %vm1333_vm0, %v1332_v1 }
  0x15   : > { %1225 = vmatprep.mubr.msk.bf16.mxu0 %vm1333_vm0, %v1332_v1 }
  0xe6   : > { %v508_v11 = vpop.f32.mrb[0].mxu1 }
  0xe7   : > { %v441_v13 = vpop.f32.mrb[0].mxu0  ;;  %v1221_v14 = vpop.f32.mrb[1].mxu1  ;;  %v509_v18 = vadd.f32 %v1161_v10, %v508_v11 }
  0xe8   : > { %v1213_v15 = vpop.f32.mrb[1].mxu0  ;;  %v511_v16 = vpop.f32.mrb[2].mxu1  ;;  %v442_v21 = vadd.f32 %v1157_v12, %v441_v13 }
  0xe9   : > { %v444_v17 = vpop.f32.mrb[2].mxu0  ;;  %v512_v19 = vadd.f32 %v1161_v10, %v511_v16  ;;  %v1222_v20 = vpop.f32.mrb[3].mxu1 }
  0xea   : > { %v1214_v22 = vpop.f32.mrb[3].mxu0  ;;  %v515_v24 = vpack.c.bf16 %v442_v21, %v442_v21  ;;  %v1341_v20 = vmov 65535  }
  0xeb   : > { %v1458_v23 = vpack.c.bf16 %v512_v19, %v509_v18  ;;  %v587_v21 = vsel %vm585_vm4, 4294967295, %v1341_v20 }
  0xed   : > { %746 = vrot.lane.b32.xlu1 %v1458_v23, %s1334_s17  ;;  %635 = vrot.lane.b32.xlu0 %v1458_v23, %s1335_s18  ;;  %v522_v25 = vsel %vm517_vm2, %v1458_v23, 0 }
  0xee   : > { %1224 = vmatpush3.bf16.xpose.msra.mxu0 %v522_v25 }
  0xef   : > { %1235 = vmatprep.subr.bf16.mxu0 %v1332_v1 }
  0xf1   : > { %744 = vrot.lane.b32.xlu1 %v515_v24, %s1334_s17  ;;  %633 = vrot.lane.b32.xlu0 %v515_v24, %s1335_s18 }
  0xf5   : > { %855 = vrot.lane.b32.xlu1 %v515_v24, %s1336_s19  ;;  %857 = vrot.lane.b32.xlu0 %v1458_v23, %s1336_s19 }
  0xf6   : > { %1226 = vmatmul.mubr.msk.bf16.vlgmr.msra.gmra.mrb[4].mxu0 %vm517_vm2, %v515_v24  ;;  %v588_v24 = vsel %vm586_vm5, %v587_v21, 0 }
  0xf7   : > { %1237 = vmatprep.mubr.msk.bf16.mxu0 %vm1333_vm0, %v1332_v1 }
 0x15f   : > { %v636_v26 = vpop.permute.xlu0 %635  ;;  %v747_v28 = vpop.permute.xlu1 %746 }
 0x160   : > { %v641_v27 = vsel %vm517_vm2, %v636_v26, 0  ;;  %v752_v30 = vsel %vm517_vm2, %v747_v28, 0 }
 0x161   : > { %1236 = vmatpush3.bf16.xpose.msra.mxu0 %v641_v27 }
 0x162   : > { %1247 = vmatprep.subr.bf16.mxu0 %v1332_v1 }
 0x163   : > { %v634_v29 = vpop.permute.xlu0 %633  ;;  %v745_v32 = vpop.permute.xlu1 %744 }
 0x167   : > { %v858_v31 = vpop.permute.xlu0 %857  ;;  %v856_v34 = vpop.permute.xlu1 %855 }
 0x168   : > { %1238 = vmatmul.mubr.msk.bf16.vlgmr.msra.gmra.mrb[8].mxu0 %vm517_vm2, %v634_v29  ;;  %v863_v33 = vsel %vm517_vm2, %v858_v31, 0 }
 0x169   : > { %1248 = vmatpush3.bf16.xpose.msra.mxu0 %v752_v30  ;;  %1249 = vmatprep.mubr.msk.bf16.mxu0 %vm1333_vm0, %v1332_v1 }
 0x16a   : > { %1259 = vmatprep.subr.bf16.mxu0 %v1332_v1 }
 0x170   : > { %1250 = vmatmul.mubr.msk.bf16.vlgmr.msra.gmra.mrb[12].mxu0 %vm517_vm2, %v745_v32 }
 0x171   : > { %1260 = vmatpush3.bf16.xpose.msra.mxu0 %v863_v33  ;;  %1261 = vmatprep.mubr.msk.bf16.mxu0 %vm1333_vm0, %v1332_v1 }
 0x172   : > { %1271 = vmatprep.subr.bf16.mxu0 %v1332_v1 }
 0x178   : > { %1262 = vmatmul.mubr.msk.bf16.vlgmr.msra.gmra.mrb[16].mxu0 %vm517_vm2, %v856_v34 }
 0x179   : > { %1275 = vmatprep.mubr.msk.bf16.mxu0 %vm1333_vm0, %v1332_v1 }
 0x1c9   : > { %v558_v35 = vpop.f32.mrb[4].mxu0 }
 0x1ca   : > { %v564_v36 = vmul.f32 0.35355338, %v558_v35  ;;  %v1227_v37 = vpop.f32.mrb[5].mxu0 }
 0x1cb   : > { %v561_v38 = vpop.f32.mrb[6].mxu0 }
 0x1cc   : > { %v1228_v39 = vpop.f32.mrb[7].mxu0  ;;  %v566_v40 = vsel %vm565_vm3, %v564_v36, -inf }
 0x1cd   : > { %567 = vmax.xlane.f32.xlu0 %v566_v40 }
 0x23b   : > { %v677_v41 = vpop.f32.mrb[8].mxu0 }
 0x23c   : > { %v683_v42 = vmul.f32 0.35355338, %v677_v41  ;;  %v1239_v43 = vpop.f32.mrb[9].mxu0 }
 0x23d   : > { %v680_v44 = vpop.f32.mrb[10].mxu0 }
 0x23e   : > { %v1240_v45 = vpop.f32.mrb[11].mxu0  ;;  %v684_v46 = vsel %vm565_vm3, %v683_v42, -inf }
 0x23f   : > { %685 = vmax.xlane.f32.xlu1 %v684_v46 }
 0x243   : > { %v788_v47 = vpop.f32.mrb[12].mxu0 }
 0x244   : > { %v794_v48 = vmul.f32 0.35355338, %v788_v47  ;;  %v1251_v49 = vpop.f32.mrb[13].mxu0 }
 0x245   : > { %v791_v50 = vpop.f32.mrb[14].mxu0 }
 0x246   : > { %v1252_v51 = vpop.f32.mrb[15].mxu0  ;;  %v795_v52 = vsel %vm565_vm3, %v794_v48, -inf }
 0x247   : > { %796 = vmax.xlane.f32.xlu0 %v795_v52 }
 0x24b   : > { %v899_v53 = vpop.f32.mrb[16].mxu0 }
 0x24c   : > { %v905_v54 = vmul.f32 0.35355338, %v899_v53  ;;  %v1263_v55 = vpop.f32.mrb[17].mxu0  ;;  %v1305_v53 = vld [vmem:[%s1545_s6 + $0x8] sm:$0xff]  }
 0x24d   : > { %v902_v56 = vpop.f32.mrb[18].mxu0 }
 0x24e   : > { %v1264_v57 = vpop.f32.mrb[19].mxu0  ;;  %v906_v58 = vsel %vm565_vm3, %v905_v54, -inf }
 0x24f   : > { %907 = vmax.xlane.f32.xlu0 %v906_v58 }
 0x25a   : > { %v568_v59 = vpop.xlane.xlu0 %567 }
 0x25b   : > { %v569_v60 = vsub.f32 %v564_v36, %v568_v59 }
 0x25d   : > { %v570_v61 = vmul.f32 1.442695, %v569_v60 }
 0x25f   : > { %1306 = vpow2.f32 %v570_v61 }
 0x269   : > { %v1307_v62 = vpop.eup %1306 }
 0x26a   : > { %v572_v63 = vsel %vm565_vm3, %v1307_v62, 0.0 }
 0x26b   : > { %573 = vadd.xlane.f32.xlu1 %v572_v63 }
 0x27c   : > { %696 = vrot.lane.b32.xlu1 %v1458_v23, %s1337_s20 }
 0x2cc   : > { %v686_v0 = vpop.xlane.xlu1 %685 }
 0x2cd   : > { %v687_v2 = vsub.f32 %v683_v42, %v686_v0 }
 0x2cf   : > { %v688_v3 = vmul.f32 1.442695, %v687_v2 }
 0x2d1   : > { %1308 = vpow2.f32 %v688_v3 }
 0x2d4   : > { %v797_v4 = vpop.xlane.xlu0 %796 }
 0x2d5   : > { %v798_v5 = vsub.f32 %v794_v48, %v797_v4  ;;  %v1304_v48 = vld [vmem:[%s1545_s6] sm:$0xff]  }
 0x2d6   : > { %1272 = vmatpush3.bf16.msra.mxu0 %v1304_v48 }
 0x2d7   : > { %v799_v6 = vmul.f32 1.442695, %v798_v5  ;;  %1273 = vmatprep.subr.bf16.mxu0 %v1332_v1  ;;  %v1173_v5 = vld [vmem:[%s1546_s7] ss:$0 sm:$0xff] }
 0x2d9   : > { %1310 = vpow2.f32 %v799_v6 }
 0x2da   : > { %1274 = vmatpush3.bf16.msra.mxu0 %v1305_v53 }
 0x2db   : > { %v1309_v8 = vpop.eup %1308 }
 0x2dc   : > { %v908_v9 = vpop.xlane.xlu0 %907  ;;  %v690_v10 = vsel %vm565_vm3, %v1309_v8, 0.0 }
 0x2dd   : > { %v909_v11 = vsub.f32 %v905_v54, %v908_v9  ;;  %691 = vadd.xlane.f32.xlu0 %v690_v10 }
 0x2df   : > { %v910_v12 = vmul.f32 1.442695, %v909_v11 }
 0x2e1   : > { %1312 = vpow2.f32 %v910_v12 }
 0x2e3   : > { %v1311_v13 = vpop.eup %1310 }
 0x2e4   : > { %v801_v14 = vsel %vm565_vm3, %v1311_v13, 0.0 }
 0x2e5   : > { %802 = vadd.xlane.f32.xlu1 %v801_v14 }
 0x2eb   : > { %v1313_v15 = vpop.eup %1312 }
 0x2ec   : > { %v912_v16 = vsel %vm565_vm3, %v1313_v15, 0.0 }
 0x2ed   : > { %913 = vadd.xlane.f32.xlu1 %v912_v16 }
 0x2f3   : > { %579 = vrot.lane.b32.xlu0 %v1458_v23, %s1338_s21 }
 0x2f7   : > { %807 = vrot.lane.b32.xlu0 %v1458_v23, %s1339_s22  ;;  %s374_s22 = scalar_lea.vmem %s1549_s10, %s1153_s24 }
 0x2f8   : > { %v574_v17 = vpop.xlane.xlu1 %573 }
 0x2f9   : > { %1314 = vrcp.f32 %v574_v17 }
 0x2fc   : > { %v697_v25 = vpop.permute.xlu1 %696 }
 0x2fe   : > { %918 = vrot.lane.b32.xlu1 %v1458_v23, %s1340_s23  ;;  %v702_v23 = vand.u32 %v697_v25, %v588_v24  ;;  %v1178_v25 = vld [vmem:[%s1548_s9] ss:$0 sm:$0xff] }
 0x303   : > { %v1315_v19 = vpop.eup %1314 }
 0x304   : > { %v576_v22 = vmul.f32 %v1315_v19, %v1307_v62 }
 0x306   : > { %v577_v29 = vpack.c.bf16 %v576_v22, %v576_v22 }
 0x36a   : > { %v692_v18 = vpop.xlane.xlu0 %691 }
 0x36b   : > { %1316 = vrcp.f32 %v692_v18 }
 0x36e   : > { %v580_v26 = vpop.permute.xlu0 %579 }
 0x36f   : > { %v590_v27 = vand.u32 %v588_v24, %v580_v26 }
 0x371   : > { %1230 = vmatpush3.bf16.msra.mxu1 %v590_v27 }
 0x372   : > { %v803_v28 = vpop.xlane.xlu1 %802  ;;  %1241 = vmatprep.subr.bf16.mxu1 %v1332_v1  ;;  %v808_v32 = vpop.permute.xlu0 %807 }
 0x373   : > { %1318 = vrcp.f32 %v803_v28  ;;  %v813_v35 = vand.u32 %v808_v32, %v588_v24 }
 0x374   : > { %1232 = vmatmul.mubr.msk.bf16.vlgmr.msra.gmra.mrb[4].mxu1 %vm581_vm6, %v577_v29 }
 0x375   : > { %v1317_v30 = vpop.eup %1316  ;;  %1242 = vmatpush3.bf16.msra.mxu1 %v702_v23  ;;  %1243 = vmatprep.mubr.msk.bf16.mxu1 %vm1333_vm0, %v1332_v1 }
 0x376   : > { %v694_v31 = vmul.f32 %v1317_v30, %v1309_v8  ;;  %1253 = vmatprep.subr.bf16.mxu1 %v1332_v1 }
 0x378   : > { %v695_v34 = vpack.c.bf16 %v694_v31, %v694_v31 }
 0x37a   : > { %v914_v33 = vpop.xlane.xlu1 %913 }
 0x37b   : > { %1320 = vrcp.f32 %v914_v33 }
 0x37c   : > { %1244 = vmatmul.mubr.msk.bf16.vlgmr.msra.gmra.mrb[8].mxu1 %vm581_vm6, %v695_v34 }
 0x37d   : > { %v1319_v36 = vpop.eup %1318  ;;  %1254 = vmatpush3.bf16.msra.mxu1 %v813_v35  ;;  %1255 = vmatprep.mubr.msk.bf16.mxu1 %vm1333_vm0, %v1332_v1 }
 0x37e   : > { %v805_v37 = vmul.f32 %v1319_v36, %v1311_v13  ;;  %1265 = vmatprep.subr.bf16.mxu1 %v1332_v1  ;;  %v919_v38 = vpop.permute.xlu1 %918 }
 0x37f   : > { %v924_v40 = vand.u32 %v919_v38, %v588_v24 }
 0x380   : > { %v806_v39 = vpack.c.bf16 %v805_v37, %v805_v37 }
 0x384   : > { %1256 = vmatmul.mubr.msk.bf16.vlgmr.msra.gmra.mrb[12].mxu1 %vm581_vm6, %v806_v39 }
 0x385   : > { %v1321_v41 = vpop.eup %1320  ;;  %1266 = vmatpush3.bf16.msra.mxu1 %v924_v40  ;;  %1267 = vmatprep.mubr.msk.bf16.mxu1 %vm1333_vm0, %v1332_v1 }
 0x386   : > { %v916_v42 = vmul.f32 %v1321_v41, %v1313_v15 }
 0x388   : > { %v917_v43 = vpack.c.bf16 %v916_v42, %v916_v42 }
 0x38c   : > { %1268 = vmatmul.mubr.msk.bf16.vlgmr.msra.gmra.mrb[16].mxu1 %vm581_vm6, %v917_v43 }
 0x447   : > { %v626_v44 = vpop.f32.mrb[4].mxu1 }
 0x448   : > { %v1233_v45 = vpop.f32.mrb[5].mxu1 }
 0x449   : > { %v629_v46 = vpop.f32.mrb[6].mxu1 }
 0x44a   : > { %v1234_v47 = vpop.f32.mrb[7].mxu1 }
 0x44f   : > { %v738_v49 = vpop.f32.mrb[8].mxu1 }
 0x450   : > { %967 = vrot.lane.b32.xlu0 %v738_v49, %s1342_s27  ;;  %v1245_v50 = vpop.f32.mrb[9].mxu1 }
 0x451   : > { %v741_v51 = vpop.f32.mrb[10].mxu1 }
 0x452   : > { %v1246_v52 = vpop.f32.mrb[11].mxu1 }
 0x457   : > { %v849_v54 = vpop.f32.mrb[12].mxu1 }
 0x458   : > { %971 = vrot.lane.b32.xlu1 %v849_v54, %s1343_s30  ;;  %v1257_v55 = vpop.f32.mrb[13].mxu1 }
 0x459   : > { %v852_v56 = vpop.f32.mrb[14].mxu1 }
 0x45a   : > { %v1258_v57 = vpop.f32.mrb[15].mxu1 }
 0x45f   : > { %v960_v58 = vpop.f32.mrb[16].mxu1 }
 0x460   : > { %975 = vrot.lane.b32.xlu0 %v960_v58, %s1344_s11  ;;  %v1269_v1 = vpop.f32.mrb[17].mxu1 }
 0x461   : > { %v963_v59 = vpop.f32.mrb[18].mxu1 }
 0x462   : > { %v1270_v60 = vpop.f32.mrb[19].mxu1 }
 0x4c2   : > { %v968_v61 = vpop.permute.xlu0 %967 }
 0x4c3   : > { %v978_v63 = vsel %vm517_vm2, %v626_v44, %v968_v61 }
 0x4ca   : > { %v972_v62 = vpop.permute.xlu1 %971 }
 0x4cb   : > { %v980_v0 = vsel %vm979_vm7, %v978_v63, %v972_v62 }
 0x4d2   : > { %v976_v2 = vpop.permute.xlu0 %975 }
 0x4d3   : > { %v982_v3 = vsel %vm981_vm8, %v980_v0, %v976_v2 }
 0x4d4   : > { %v983_v4 = vpack.c.bf16 %v982_v3, %v982_v3 }
 0x4d6   : > { %1276 = vmatmul.mubr.msk.bf16.vlgmr.msra.gmra.mrb[20].mxu0 %vm403_vm1, %v983_v4 }
 0x5a9   : > { %v1044_v6 = vpop.f32.mrb[20].mxu0 }
 0x5aa   : > { %v1045_v8 = vadd.f32 %v1173_v5, %v1044_v6  ;;  %v1277_v9 = vpop.f32.mrb[21].mxu0 }
 0x5ab   : > { %v1047_v10 = vpop.f32.mrb[22].mxu0 }
 0x5ac   : > { %v1278_v11 = vpop.f32.mrb[23].mxu0  ;;  %v1050_v12 = vadd.f32 %v1045_v8, %v1441_v7  ;;  %v1177_v7 = vld [vmem:[%s1547_s8] ss:$0 sm:$0xff] }
 0x5ae   : > { %v1052_v13 = vsel %vm1051_vm9, %v1050_v12, 0.0 }
 0x5af   : > { %1053 = vadd.xlane.f32.xlu1 %v1052_v13 }
 0x63c   : > { %v1054_v14 = vpop.xlane.xlu1 %1053 }
 0x63d   : > { %v1056_v15 = vmul.f32 0.03125, %v1054_v14 }
 0x63f   : > { %v1057_v16 = vsub.f32 %v1050_v12, %v1056_v15 }
 0x641   : > { %v1058_v17 = vmul.f32 %v1057_v16, %v1057_v16 }
 0x643   : > { %v1059_v18 = vsel %vm1051_vm9, %v1058_v17, 0.0 }
 0x644   : > { %1060 = vadd.xlane.f32.xlu0 %v1059_v18 }
 0x6d1   : > { %v1061_v19 = vpop.xlane.xlu0 %1060 }
 0x6d2   : > { %v1062_v20 = vmul.f32 0.03125, %v1061_v19 }
 0x6d4   : > { %v1063_v21 = vadd.f32 1e-05, %v1062_v20 }
 0x6d6   : > { %1322 = vrsqrt.f32 %v1063_v21 }
 0x6e0   : > { %v1323_v22 = vpop.eup %1322 }
 0x6e1   : > { %v1065_v24 = vmul.f32 %v1323_v22, %v1057_v16 }
 0x6e3   : > { %v1073_v26 = vmul.f32 %v1177_v7, %v1065_v24 }
 0x6e5   : > { %v1081_v27 = vadd.f32 %v1178_v25, %v1073_v26 }
 0x6e7   : > { %1082 = vst.msk [vmem:[%s374_s22] sm:$0x3f] %vm1051_vm9, %v1081_v27 }
 0x6e8 PF: > { %s20_s13 = sadd.s32 1, %s1330_s13  }
 0x6e9   : > { %p17_p4 = scmp.ge.s32.totalorder %s20_s13, 4  }
 0x6eb   :  { %19 = sbr.rel (!%p17_p4) target bundleno = 1 (0x1), region = 93 }

// kernel: _lambda_.23
= control target key start
LH: loop header
LB: loop body
LE: loop exit
PB: predicated region body
PF: predicated region fallthrough
CT: control target
= control target key end

     0   :  { %s1031_s24 = smov 0   ;;  %s1169_s0 = inlined_call_operand.vmem [shape: f32[2,6,32], index: 0, kind: input, shape index: {}]   ;;  %s1170_s1 = inlined_call_operand.vmem [shape: bf16[3,32,64], index: 1, kind: input, shape index: {}]   ;;  %s1171_s2 = inlined_call_operand.vmem [shape: f32[1,64], index: 2, kind: input, shape index: {}]   ;;  %s1172_s3 = inlined_call_operand.vmem [shape: bf16[3,64,32], index: 3, kind: input, shape index: {}]   ;;  %s1173_s4 = inlined_call_operand.vmem [shape: f32[1,32], index: 4, kind: input, shape index: {}]   ;;  %s1174_s5 = inlined_call_operand.vmem [shape: f32[1,32], index: 5, kind: input, shape index: {}]   ;;  %s1175_s6 = inlined_call_operand.vmem [shape: f32[1,32], index: 6, kind: input, shape index: {}]   ;;  %s1176_s7 = inlined_call_operand.vmem [shape: f32[2,6,32], index: 7, kind: output, shape index: {}]  }
   0x1 LB: > { %s806_s25 = sadd.s32 4294967295, %s987_s24   ;;  %p810_p0 = scmp.ge.s32.totalorder %s987_s24, 1  ;;  %s987_s24 = sphi %s1031_s24, %s17_s24  }
   0x2   : > { %p236_p1 = scmp.lt.s32.totalorder %s987_s24, 3 }
   0x4   : > { %p237_p2 = pnand %p810_p0, %p236_p1 }
   0x5   : > { %v961_v0 = vld [vmem:[%s1170_s1 + $0x10] sm:$0xff] (!%p237_p2)   ;;  %v989_v1 = vmov (!%p237_p2), 0.0   ;;  %v962_v2 = vld [vmem:[%s1170_s1] sm:$0xff] (!%p237_p2)   ;;  %v963_v3 = vld [vmem:[%s1170_s1 + $0x18] sm:$0xff] (!%p237_p2)   ;;  %vm990_vm0 = vmmov (!%p237_p2), 0   ;;  %p266_p3 = scmp.lt.s32.totalorder (!%p237_p2), %s806_s25, 1 }
   0x6   : > { %240 = sbr.rel (%p237_p2) target bundleno = 811 (0x32b), region = 48  ;;  %891 = vmatprep.subr.bf16.mxu0 (!%p237_p2), %v989_v1  ;;  %899 = vmatprep.subr.bf16.mxu1 (!%p237_p2), %v989_v1  ;;  %v964_v4 = vld [vmem:[%s1170_s1 + $0x8] sm:$0xff] (!%p237_p2)   ;;  %vm276_vm1 = vcmask (!%p237_p2), 261120   ;;  %vm278_vm2 = vcmask (!%p237_p2), 259072   ;;  %v965_v8 = vld [vmem:[%s1170_s1 + $0x20] sm:$0xff] (!%p237_p2)   ;;  %v971_v18 = vld [vmem:[%s1172_s3 + $0x30] sm:$0xff] (!%p237_p2)  }
   0x7   : > { %892 = vmatpush3.bf16.msra.mxu0 (!%p237_p2), %v961_v0  ;;  %895 = vmatprep.mubr.msk.bf16.mxu0 (!%p237_p2), %vm990_vm0, %v989_v1  ;;  %277 = vst.msk [vmem:[#allocation2] sm:$0xff] (!%p237_p2), %vm276_vm1, %v989_v1  ;;  %v966_v11 = vld [vmem:[%s1170_s1 + $0x28] sm:$0xff] (!%p237_p2)   ;;  %v967_v14 = vld [vmem:[%s1172_s3 + $0x20] sm:$0xff] (!%p237_p2)   ;;  %vm475_vm3 = vcmask (!%p237_p2), 523264   ;;  %v972_v19 = vld [vmem:[%s1172_s3 + $0x10] sm:$0xff] (!%p237_p2)   ;;  %vm477_vm4 = vcmask (!%p237_p2), 521216  }
   0x8   : > { %900 = vmatpush3.bf16.msra.mxu1 (!%p237_p2), %v962_v2  ;;  %893 = vmatprep.subr.bf16.mxu0 (!%p237_p2), %v989_v1  ;;  %v968_v15 = vld [vmem:[%s1172_s3] sm:$0xff] (!%p237_p2)   ;;  %v969_v16 = vld [vmem:[%s1172_s3 + $0x28] sm:$0xff] (!%p237_p2)   ;;  %476 = vst.msk [vmem:[#allocation3] sm:$0xff] (!%p237_p2), %vm475_vm3, %v989_v1  ;;  %v973_v20 = vld [vmem:[%s1172_s3 + $0x38] sm:$0xff] (!%p237_p2)  }
   0x9   : > { %901 = vmatprep.subr.bf16.mxu1 (!%p237_p2), %v989_v1  ;;  %903 = vmatprep.mubr.msk.bf16.mxu1 (!%p237_p2), %vm990_vm0, %v989_v1  ;;  %v970_v17 = vld [vmem:[%s1172_s3 + $0x8] sm:$0xff] (!%p237_p2)   ;;  %v974_v21 = vld [vmem:[%s1172_s3 + $0x18] sm:$0xff] (!%p237_p2)   ;;  %v830_v32 = vld [vmem:[%s1171_s2] ss:$0 sm:$0xff] (!%p237_p2) }
   0xa   : > { %v975_v41 = vld [vmem:[%s1172_s3 + $0x40] sm:$0xff] (!%p237_p2)   ;;  %v976_v44 = vld [vmem:[%s1172_s3 + $0x48] sm:$0xff] (!%p237_p2)   ;;  %v977_v45 = vld [vmem:[%s1172_s3 + $0x50] sm:$0xff] (!%p237_p2)  }
   0xb   : > { %894 = vmatpush3.bf16.msra.mxu0 (!%p237_p2), %v963_v3  ;;  %v978_v46 = vld [vmem:[%s1172_s3 + $0x58] sm:$0xff] (!%p237_p2)   ;;  %v862_v62 = vld [vmem:[%s1173_s4] ss:$0 sm:$0xff] (!%p237_p2) }
   0xc   : > { %902 = vmatpush3.bf16.msra.mxu1 (!%p237_p2), %v964_v4  ;;  %907 = vmatprep.subr.bf16.mxu0 (!%p237_p2), %v989_v1 }
   0xd   : > { %s1178_s25 = smov (!%p266_p3, %s806_s25), 1  ;;  %915 = vmatprep.subr.bf16.mxu1 %v989_v1 }
   0xe   : > { %s811_s11 = sshll.u32 %s1178_s25, 3 }
   0xf   : > { %s269_s14 = scalar_lea.vmem %s1169_s0, %s811_s11  ;;  %s273_s13 = scalar_lea.vmem %s1176_s7, %s811_s11 }
  0x10   : > { %v1070_v5 = vld [vmem:[%s269_s14] sm:$0x3f] }
  0x11   : > { %279 = vst.msk [vmem:[#allocation2 + $0x1] sm:$0x3f] %vm278_vm2, %v1070_v5 }
  0x18   : > { %v286_v6 = vld [vmem:[#allocation2 + $0x1] sm:$0x3f] }
  0x19   : > { %v280_v7 = vld [vmem:[#allocation2] sm:$0x3f]  ;;  %v287_v9 = vpack.c.bf16 %v286_v6, %v286_v6 }
  0x1a   : > { %v281_v10 = vpack.c.bf16 %v280_v7, %v280_v7  ;;  %v403_v12 = vld [vmem:[#allocation2 + $0x2] sm:$0x3f] }
  0x1b   : > { %896 = vmatmul.mubr.msk.bf16.vlgmr.msra.gmra.mrb[0].mxu0 %vm276_vm1, %v287_v9  ;;  %v404_v13 = vpack.c.bf16 %v403_v12, %v403_v12 }
  0x1c   : > { %904 = vmatmul.mubr.msk.bf16.vlgmr.msra.gmra.mrb[0].mxu1 %vm276_vm1, %v281_v10  ;;  %908 = vmatpush3.bf16.msra.mxu0 %v965_v8 }
  0x1d   : > { %911 = vmatprep.mubr.msk.bf16.mxu0 %vm990_vm0, %v989_v1  ;;  %909 = vmatprep.subr.bf16.mxu0 %v989_v1 }
  0x1e   : > { %923 = vmatprep.mubr.msk.bf16.mxu1 %vm990_vm0, %v989_v1  ;;  %916 = vmatpush3.bf16.msra.mxu1 %v967_v14  ;;  %v864_v14 = vld [vmem:[%s1175_s6] ss:$0 sm:$0xff] }
  0x1f   : > { %917 = vmatprep.subr.bf16.mxu1 %v989_v1 }
  0x20   : > { %910 = vmatpush3.bf16.msra.mxu0 %v966_v11 }
  0x21   : > { %927 = vmatprep.subr.bf16.mxu0 %v989_v1 }
  0x22   : > { %918 = vmatpush3.bf16.msra.mxu1 %v969_v16 }
  0x23   : > { %912 = vmatmul.mubr.msk.bf16.vlgmr.msra.gmra.mrb[4].mxu0 %vm276_vm1, %v404_v13  ;;  %919 = vmatprep.subr.bf16.mxu1 %v989_v1 }
  0x24   : > { %935 = vmatprep.mubr.msk.bf16.mxu0 %vm990_vm0, %v989_v1  ;;  %928 = vmatpush3.bf16.msra.mxu0 %v968_v15 }
  0x25   : > { %929 = vmatprep.subr.bf16.mxu0 %v989_v1 }
  0x26   : > { %920 = vmatpush3.bf16.msra.mxu1 %v971_v18 }
  0x27   : > { %921 = vmatprep.subr.bf16.mxu1 %v989_v1 }
  0x28   : > { %930 = vmatpush3.bf16.msra.mxu0 %v970_v17 }
  0x29   : > { %931 = vmatprep.subr.bf16.mxu0 %v989_v1 }
  0x2a   : > { %922 = vmatpush3.bf16.msra.mxu1 %v973_v20 }
  0x2b   : > { %939 = vmatprep.subr.bf16.mxu1 %v989_v1 }
  0x2c   : > { %932 = vmatpush3.bf16.msra.mxu0 %v972_v19 }
  0x2d   : > { %933 = vmatprep.subr.bf16.mxu0 %v989_v1 }
  0x30   : > { %934 = vmatpush3.bf16.msra.mxu0 %v974_v21 }
  0xee   : > { %v342_v22 = vpop.f32.mrb[0].mxu0 }
  0xef   : > { %v397_v23 = vpop.f32.mrb[0].mxu1  ;;  %v897_v25 = vpop.f32.mrb[1].mxu0 }
  0xf0   : > { %v398_v24 = vadd.f32 %v397_v23, %v342_v22  ;;  %v905_v26 = vpop.f32.mrb[1].mxu1  ;;  %v345_v27 = vpop.f32.mrb[2].mxu0 }
  0xf1   : > { %v400_v28 = vpop.f32.mrb[2].mxu1  ;;  %v898_v29 = vpop.f32.mrb[3].mxu0 }
  0xf2   : > { %v906_v30 = vpop.f32.mrb[3].mxu1 }
  0xf6   : > { %v459_v31 = vpop.f32.mrb[4].mxu0 }
  0xf7   : > { %v465_v33 = vadd.f32 %v459_v31, %v398_v24  ;;  %v913_v34 = vpop.f32.mrb[5].mxu0 }
  0xf8   : > { %v462_v35 = vpop.f32.mrb[6].mxu0 }
  0xf9   : > { %v473_v36 = vadd.f32 %v830_v32, %v465_v33  ;;  %v914_v37 = vpop.f32.mrb[7].mxu0 }
  0xfb   : > { %v474_v38 = vmax.f32 %v473_v36, 0.0 }
  0xfd   : > { %478 = vst.msk [vmem:[#allocation3 + $0x1] sm:$0x3f] %vm477_vm4, %v474_v38 }
 0x104   : > { %v489_v39 = vld [vmem:[#allocation3 + $0x1] sm:$0x3f] }
 0x105   : > { %v479_v40 = vld [vmem:[#allocation3] sm:$0x3f]  ;;  %v490_v42 = vpack.c.bf16 %v489_v39, %v489_v39 }
 0x106   : > { %v480_v43 = vpack.c.bf16 %v479_v40, %v479_v40  ;;  %v634_v47 = vld [vmem:[#allocation3 + $0x2] sm:$0x3f] }
 0x107   : > { %924 = vmatmul.mubr.msk.bf16.vlgmr.msra.gmra.mrb[4].mxu1 %vm475_vm3, %v490_v42  ;;  %v635_v48 = vpack.c.bf16 %v634_v47, %v634_v47 }
 0x108   : > { %936 = vmatmul.mubr.msk.bf16.vlgmr.msra.gmra.mrb[8].mxu0 %vm475_vm3, %v480_v43  ;;  %940 = vmatpush3.bf16.msra.mxu1 %v975_v41 }
 0x109   : > { %947 = vmatprep.mubr.msk.bf16.mxu1 %vm990_vm0, %v989_v1  ;;  %941 = vmatprep.subr.bf16.mxu1 %v989_v1 }
 0x10c   : > { %942 = vmatpush3.bf16.msra.mxu1 %v976_v44 }
 0x10d   : > { %943 = vmatprep.subr.bf16.mxu1 %v989_v1 }
 0x110   : > { %944 = vmatpush3.bf16.msra.mxu1 %v977_v45 }
 0x111   : > { %945 = vmatprep.subr.bf16.mxu1 %v989_v1 }
 0x114   : > { %946 = vmatpush3.bf16.msra.mxu1 %v978_v46 }
 0x117   : > { %948 = vmatmul.mubr.msk.bf16.vlgmr.msra.gmra.mrb[8].mxu1 %vm475_vm3, %v635_v48 }
 0x1da   : > { %v561_v49 = vpop.f32.mrb[4].mxu1 }
 0x1db   : > { %v628_v50 = vpop.f32.mrb[8].mxu0  ;;  %v925_v52 = vpop.f32.mrb[5].mxu1 }
 0x1dc   : > { %v629_v51 = vadd.f32 %v628_v50, %v561_v49  ;;  %v937_v53 = vpop.f32.mrb[9].mxu0  ;;  %v564_v54 = vpop.f32.mrb[6].mxu1 }
 0x1dd   : > { %v631_v55 = vpop.f32.mrb[10].mxu0  ;;  %v926_v56 = vpop.f32.mrb[7].mxu1 }
 0x1de   : > { %v938_v57 = vpop.f32.mrb[11].mxu0 }
 0x1ea   : > { %v706_v58 = vpop.f32.mrb[8].mxu1 }
 0x1eb   : > { %v712_v59 = vadd.f32 %v706_v58, %v629_v51  ;;  %v949_v60 = vpop.f32.mrb[9].mxu1 }
 0x1ec   : > { %v709_v61 = vpop.f32.mrb[10].mxu1 }
 0x1ed   : > { %v713_v63 = vadd.f32 %v712_v59, %v1070_v5  ;;  %v950_v0 = vpop.f32.mrb[11].mxu1  ;;  %v863_v5 = vld [vmem:[%s1174_s5] ss:$0 sm:$0xff] }
 0x1ef   : > { %v721_v1 = vadd.f32 %v862_v62, %v713_v63 }
 0x1f1   : > { %v722_v2 = vsel %vm278_vm2, %v721_v1, 0.0 }
 0x1f2   : > { %723 = vadd.xlane.f32.xlu0 %v722_v2 }
 0x27f   : > { %v724_v3 = vpop.xlane.xlu0 %723 }
 0x280   : > { %v726_v4 = vmul.f32 0.03125, %v724_v3 }
 0x282   : > { %v727_v6 = vsub.f32 %v721_v1, %v726_v4 }
 0x284   : > { %v728_v7 = vmul.f32 %v727_v6, %v727_v6 }
 0x286   : > { %v729_v8 = vsel %vm278_vm2, %v728_v7, 0.0 }
 0x287   : > { %730 = vadd.xlane.f32.xlu0 %v729_v8 }
 0x314   : > { %v731_v9 = vpop.xlane.xlu0 %730 }
 0x315   : > { %v732_v10 = vmul.f32 0.03125, %v731_v9 }
 0x317   : > { %v733_v11 = vadd.f32 1e-05, %v732_v10 }
 0x319   : > { %979 = vrsqrt.f32 %v733_v11 }
 0x323   : > { %v980_v12 = vpop.eup %979 }
 0x324   : > { %v735_v13 = vmul.f32 %v980_v12, %v727_v6 }
 0x326   : > { %v743_v15 = vmul.f32 %v863_v5, %v735_v13 }
 0x328   : > { %v751_v16 = vadd.f32 %v864_v14, %v743_v15 }
 0x32a   : > { %752 = vst.msk [vmem:[%s273_s13] sm:$0x3f] %vm278_vm2, %v751_v16 }
 0x32b PF: > { %s17_s24 = sadd.s32 1, %s987_s24  }
 0x32c   : > { %p14_p4 = scmp.ge.s32.totalorder %s17_s24, 4  }
 0x32e   :  { %16 = sbr.rel (!%p14_p4) target bundleno = 1 (0x1), region = 82 }

// kernel: _lambda_.27
= control target key start
LH: loop header
LB: loop body
LE: loop exit
PB: predicated region body
PF: predicated region fallthrough
CT: control target
= control target key end

     0   :  { %s466_s18 = smov 0   ;;  %s508_s0 = inlined_call_operand.vmem [shape: f32[2,6,32], index: 0, kind: input, shape index: {}]   ;;  %s509_s1 = inlined_call_operand.vmem [shape: f32[1,32], index: 1, kind: input, shape index: {}]   ;;  %s510_s2 = inlined_call_operand.vmem [shape: f32[1,32], index: 2, kind: input, shape index: {}]   ;;  %s511_s3 = inlined_call_operand.vmem [shape: bf16[32,32], index: 3, kind: input, shape index: {}]   ;;  %s512_s4 = inlined_call_operand.vmem [shape: f32[1,32], index: 4, kind: input, shape index: {}]   ;;  %s513_s5 = inlined_call_operand.vmem [shape: f32[2,6,32], index: 5, kind: output, shape index: {}]  }
   0x1 LB: > { %s384_s19 = sadd.s32 4294967295, %s432_s18   ;;  %p388_p0 = scmp.ge.s32.totalorder %s432_s18, 1  ;;  %s432_s18 = sphi %s466_s18, %s15_s18  }
   0x2   : > { %p186_p1 = scmp.lt.s32.totalorder %s432_s18, 3 }
   0x4   : > { %p187_p2 = pnand %p388_p0, %p186_p1 }
   0x5   : > { %p212_p3 = scmp.lt.s32.totalorder (!%p187_p2), %s384_s19, 1  ;;  %vm231_vm0 = vcmask (!%p187_p2), 259072   ;;  %v420_v16 = vld [vmem:[%s511_s3] sm:$0xff] (!%p187_p2)   ;;  %v434_v17 = vmov (!%p187_p2), 0.0   ;;  %v421_v18 = vld [vmem:[%s511_s3 + $0x8] sm:$0xff] (!%p187_p2)   ;;  %vm435_vm1 = vmmov (!%p187_p2), 0  }
   0x6   : > { %190 = sbr.rel (%p187_p2) target bundleno = 572 (0x23c), region = 40  ;;  %402 = vmatprep.subr.bf16.mxu0 (!%p187_p2), %v434_v17  ;;  %406 = vmatprep.mubr.msk.bf16.mxu0 (!%p187_p2), %vm435_vm1, %v434_v17  ;;  %v391_v23 = vld [vmem:[%s509_s1] ss:$0 sm:$0xff] (!%p187_p2)  ;;  %vm286_vm2 = vcmask (!%p187_p2), 261120  }
   0x7   : > { %403 = vmatpush3.bf16.msra.mxu0 (!%p187_p2), %v420_v16  ;;  %v392_v25 = vld [vmem:[%s510_s2] ss:$0 sm:$0xff] (!%p187_p2) }
   0x8   : > { %404 = vmatprep.subr.bf16.mxu0 (!%p187_p2), %v434_v17  ;;  %v393_v29 = vld [vmem:[%s512_s4] ss:$0 sm:$0xff] (!%p187_p2) }
   0xb   : > { %405 = vmatpush3.bf16.msra.mxu0 (!%p187_p2), %v421_v18 }
   0xd   : > { %s515_s19 = smov (!%p212_p3, %s384_s19), 1 }
   0xe   : > { %s389_s20 = sshll.u32 %s515_s19, 3 }
   0xf   : > { %s215_s23 = scalar_lea.vmem %s508_s0, %s389_s20  ;;  %s219_s11 = scalar_lea.vmem %s513_s5, %s389_s20 }
  0x10   : > { %v221_v0 = vld [vmem:[%s215_s23] sm:$0x3f] }
  0x11   : > { %v223_v1 = vmul.f32 0.044715, %v221_v0  ;;  %v222_v6 = vmul.f32 0.5, %v221_v0 }
  0x13   : > { %v224_v2 = vmul.f32 %v223_v1, %v221_v0 }
  0x15   : > { %v225_v3 = vmul.f32 %v224_v2, %v221_v0 }
  0x17   : > { %v226_v4 = vadd.f32 %v225_v3, %v221_v0 }
  0x19   : > { %v227_v5 = vmul.f32 0.7978846, %v226_v4 }
  0x1b   : > { %422 = vtanh.f32 %v227_v5 }
  0x25   : > { %v423_v7 = vpop.eup %422 }
  0x26   : > { %v229_v8 = vadd.f32 1.0, %v423_v7 }
  0x28   : > { %v230_v9 = vmul.f32 %v229_v8, %v222_v6 }
  0x2a   : > { %v232_v10 = vsel %vm231_vm0, %v230_v9, 0.0 }
  0x2b   : > { %233 = vadd.xlane.f32.xlu0 %v232_v10 }
  0xb8   : > { %v234_v11 = vpop.xlane.xlu0 %233 }
  0xb9   : > { %v236_v12 = vmul.f32 0.03125, %v234_v11 }
  0xbb   : > { %v237_v13 = vsub.f32 %v230_v9, %v236_v12 }
  0xbd   : > { %v238_v14 = vmul.f32 %v237_v13, %v237_v13 }
  0xbf   : > { %v239_v15 = vsel %vm231_vm0, %v238_v14, 0.0 }
  0xc0   : > { %240 = vadd.xlane.f32.xlu0 %v239_v15 }
 0x14d   : > { %v241_v19 = vpop.xlane.xlu0 %240 }
 0x14e   : > { %v242_v20 = vmul.f32 0.03125, %v241_v19 }
 0x150   : > { %v243_v21 = vadd.f32 1e-05, %v242_v20 }
 0x152   : > { %424 = vrsqrt.f32 %v243_v21 }
 0x15c   : > { %v425_v22 = vpop.eup %424 }
 0x15d   : > { %v245_v24 = vmul.f32 %v425_v22, %v237_v13 }
 0x15f   : > { %v253_v26 = vmul.f32 %v391_v23, %v245_v24 }
 0x161   : > { %v261_v27 = vadd.f32 %v392_v25, %v253_v26 }
 0x163   : > { %v262_v28 = vpack.c.bf16 %v261_v27, %v261_v27 }
 0x165   : > { %407 = vmatmul.mubr.msk.bf16.vlgmr.msra.gmra.mrb[0].mxu0 %vm286_vm2, %v262_v28 }
 0x238   : > { %v324_v30 = vpop.f32.mrb[0].mxu0 }
 0x239   : > { %v325_v31 = vadd.f32 %v393_v29, %v324_v30  ;;  %v408_v32 = vpop.f32.mrb[1].mxu0 }
 0x23a   : > { %v327_v33 = vpop.f32.mrb[2].mxu0 }
 0x23b   : > { %330 = vst.msk [vmem:[%s219_s11] sm:$0x3f] %vm231_vm0, %v325_v31  ;;  %v409_v34 = vpop.f32.mrb[3].mxu0 }
 0x23c PF: > { %s15_s18 = sadd.s32 1, %s432_s18  }
 0x23d   : > { %p12_p4 = scmp.ge.s32.totalorder %s15_s18, 4  }
 0x23f   :  { %14 = sbr.rel (!%p12_p4) target bundleno = 1 (0x1), region = 70 }

</bundles_post_ra>
